<compile_context>
chip_gen: v5e
topology: v5e:2x2
jax: 0.10.0
libtpu: 0.0.40
codegen_flags: <defaults>
</compile_context>

<pallas_src>
import functools

import jax
import jax.numpy as jnp
from jax.experimental import pallas as pl
from jax.experimental.pallas import tpu as pltpu

BN_EPS = 1e-5
MIB = 1024 * 1024


def _round_up(x, m):
    return ((x + m - 1) // m) * m


def _pad2(a, rows, cols, value=0.0):
    pr, pc = rows - a.shape[0], cols - a.shape[1]
    if pr == 0 and pc == 0:
        return a
    return jnp.pad(a, ((0, pr), (0, pc)), constant_values=value)


def _resident_spec(block_shape, index_map):
    """Grid-invariant operand: request single buffering (no redundant second
    VMEM copy).  Falls back to a plain BlockSpec if pipeline_mode is absent."""
    try:
        return pl.BlockSpec(block_shape, index_map, pipeline_mode=pl.Buffered(1))
    except (AttributeError, TypeError):
        return pl.BlockSpec(block_shape, index_map)


# ---------------------------------------------------------------------------
# Kernel 1: fused  Linear -> (ReLU) -> running BN statistics
# ---------------------------------------------------------------------------
def _linear_stats_kernel(x_ref, w_ref, b_ref,            # inputs
                         h_ref, mean_ref, var_ref,       # outputs
                         mean_acc, m2_acc,                # scratch
                         *, apply_relu, tile_b, batch_rows, rows_in_last_tile):
    i = pl.program_id(1)            # batch-tile axis (innermost, 'arbitrary')
    n_b = pl.num_programs(1)

    @pl.when(i == 0)
    def _():
        mean_acc[...] = jnp.zeros_like(mean_acc)
        m2_acc[...] = jnp.zeros_like(m2_acc)

    # MXU matmul (bf16 or f32 operands) with f32 accumulation; bias/ReLU in f32.
    h = jnp.dot(x_ref[...], w_ref[...],
                preferred_element_type=jnp.float32) + b_ref[...]
    if apply_relu:
        h = jnp.maximum(h, 0.0)
    # Store activations narrow (bf16 by default): halves inter-layer HBM traffic.
    h_ref[...] = h.astype(h_ref.dtype)

    def combine(tile_mean, tile_m2, n_prev, n_tile):
        # Chan / Welford parallel combine (avoids E[x^2]-E[x]^2 cancellation).
        delta = tile_mean - mean_acc[...]
        n_tot = n_prev + n_tile
        mean_acc[...] = mean_acc[...] + delta * (n_tile / n_tot)
        m2_acc[...] = (m2_acc[...] + tile_m2
                       + delta * delta * (n_prev * n_tile / n_tot))

    def full_tile_stats():
        tile_mean = jnp.sum(h, axis=0, keepdims=True) * (1.0 / tile_b)
        centered = h - tile_mean
        tile_m2 = jnp.sum(centered * centered, axis=0, keepdims=True)
        combine(tile_mean, tile_m2,
                (i * tile_b).astype(jnp.float32), float(tile_b))

    def masked_tile_stats():
        # Only the last batch tile can contain zero-padded rows.
        n_tile = float(rows_in_last_tile)
        local = jax.lax.broadcasted_iota(jnp.int32, (tile_b, 1), 0)
        mask = (local < rows_in_last_tile).astype(jnp.float32)
        tile_mean = jnp.sum(h * mask, axis=0, keepdims=True) * (1.0 / n_tile)
        centered = (h - tile_mean) * mask
        tile_m2 = jnp.sum(centered * centered, axis=0, keepdims=True)
        combine(tile_mean, tile_m2,
                float(batch_rows - rows_in_last_tile), n_tile)

    if rows_in_last_tile == tile_b:
        # No padded batch rows anywhere: uniform unmasked fast path.
        full_tile_stats()
    else:
        @pl.when(i < n_b - 1)
        def _():
            full_tile_stats()

        @pl.when(i == n_b - 1)
        def _():
            masked_tile_stats()

    # Finalize: mean / biased batch variance written back only after last tile.
    @pl.when(i == n_b - 1)
    def _():
        mean_ref[...] = mean_acc[...]
        var_ref[...] = m2_acc[...] * (1.0 / batch_rows)


def _linear_bn_stats(x, w, b, *, apply_relu, tile_b, batch_rows,
                     feature_splits, act_dtype, vmem_cap_bytes):
    bp, kp = x.shape
    fp = w.shape[1]
    assert bp % tile_b == 0 and kp % 128 == 0 and fp % (128 * feature_splits) == 0
    n_b = bp // tile_b
    tf = fp // feature_splits
    rows_in_last_tile = batch_rows - (n_b - 1) * tile_b

    kernel = functools.partial(
        _linear_stats_kernel, apply_relu=apply_relu, tile_b=tile_b,
        batch_rows=batch_rows, rows_in_last_tile=rows_in_last_tile)

    in_bytes = x.dtype.itemsize
    act_bytes = jnp.dtype(act_dtype).itemsize
    w_bytes = kp * fp * jnp.dtype(w.dtype).itemsize

    cost = pl.CostEstimate(
        flops=int(2 * bp * kp * fp + 8 * bp * fp),
        transcendentals=0,
        bytes_accessed=int(feature_splits * bp * kp * in_bytes   # x (re-read per f-slice)
                           + bp * fp * act_bytes                 # h write
                           + w_bytes + 12 * fp))

    # VMEM: double-buffered x/h tiles, single-buffered resident W/b slice, plus
    # the in-kernel f32 temporaries (h, centered, masked copies).
    vmem_need = (2 * tile_b * kp * in_bytes
                 + 2 * tile_b * tf * act_bytes
                 + kp * tf * jnp.dtype(w.dtype).itemsize
                 + 6 * tf * 4
                 + 4 * tile_b * tf * 4)
    vmem_limit = int(min(vmem_cap_bytes, max(16 * MIB, 2 * vmem_need)))

    if feature_splits == 1:   # truly grid-invariant -> single buffer
        w_spec = _resident_spec((kp, tf), lambda j, i: (0, j))
        b_spec = _resident_spec((1, tf), lambda j, i: (0, j))
    else:
        w_spec = pl.BlockSpec((kp, tf), lambda j, i: (0, j))
        b_spec = pl.BlockSpec((1, tf), lambda j, i: (0, j))

    return pl.pallas_call(
        kernel,
        out_shape=(jax.ShapeDtypeStruct((bp, fp), act_dtype),
                   jax.ShapeDtypeStruct((1, fp), jnp.float32),
                   jax.ShapeDtypeStruct((1, fp), jnp.float32)),
        grid=(feature_splits, n_b),            # features outer, batch inner
        in_specs=[
            pl.BlockSpec((tile_b, kp), lambda j, i: (i, 0)),   # x (pipelined)
            w_spec,                                            # W slice
            b_spec,                                            # bias slice
        ],
        out_specs=(
            pl.BlockSpec((tile_b, tf), lambda j, i: (i, j)),   # h tile
            pl.BlockSpec((1, tf), lambda j, i: (0, j)),        # mean (resident)
            pl.BlockSpec((1, tf), lambda j, i: (0, j)),        # var  (resident)
        ),
        scratch_shapes=[pltpu.VMEM((1, tf), jnp.float32),
                        pltpu.VMEM((1, tf), jnp.float32)],
        compiler_params=pltpu.CompilerParams(
            dimension_semantics=("parallel", "arbitrary"),
            vmem_limit_bytes=vmem_limit),
        cost_estimate=cost,
    )(x, w, b)


# ---------------------------------------------------------------------------
# Kernel 2: final BatchNorm applied as a per-feature affine (elementwise)
# ---------------------------------------------------------------------------
def _affine_kernel(h_ref, scale_ref, shift_ref, o_ref):
    o_ref[...] = (h_ref[...].astype(jnp.float32) * scale_ref[...]
                  + shift_ref[...]).astype(o_ref.dtype)


def _apply_affine(h, scale, shift, *, tile_b, vmem_cap_bytes):
    bp, fp = h.shape
    vmem_need = (2 * tile_b * fp * (h.dtype.itemsize + 4)
                 + 4 * fp * 4 + 2 * tile_b * fp * 4)
    vmem_limit = int(min(vmem_cap_bytes, max(16 * MIB, 2 * vmem_need)))
    return pl.pallas_call(
        _affine_kernel,
        out_shape=jax.ShapeDtypeStruct((bp, fp), jnp.float32),
        grid=(bp // tile_b,),
        in_specs=[pl.BlockSpec((tile_b, fp), lambda i: (i, 0)),
                  _resident_spec((1, fp), lambda i: (0, 0)),
                  _resident_spec((1, fp), lambda i: (0, 0))],
        out_specs=pl.BlockSpec((tile_b, fp), lambda i: (i, 0)),
        compiler_params=pltpu.CompilerParams(
            dimension_semantics=("parallel",),
            vmem_limit_bytes=vmem_limit),
    )(h, scale, shift)


def _bn_scale_shift(mean, var, gamma, beta):
    scale = gamma * jax.lax.rsqrt(var + BN_EPS)
    shift = beta - mean * scale
    return scale, shift


def _fold_bn_into_linear(scale, shift, w_f32, b, compute_dtype):
    # BN(y) @ W + b == y @ (scale^T * W) + (shift @ W + b); scale/shift: (1, K).
    w_folded = (scale.reshape(-1, 1) * w_f32).astype(compute_dtype)
    b_folded = b + jnp.dot(shift, w_f32, precision=jax.lax.Precision.HIGHEST)
    return w_folded, b_folded


# ---------------------------------------------------------------------------
# Forward wrapper
# ---------------------------------------------------------------------------
def protein_multilabel_forward(protein, params, *, tile_b=512, feature_splits=1,
                               compute_dtype=jnp.bfloat16,
                               act_dtype=jnp.bfloat16, vmem_cap_bytes=None):
    """ProteinMiltilabelModel forward (use_fuse=False, use_model=True)."""
    b_rows, k0 = protein.shape
    hidden = params["w0"].shape[1]
    out_dim = params["w2"].shape[1]
    assert feature_splits >= 1

    if vmem_cap_bytes is None:
        # Stay below the physical VMEM ceiling (64 MiB on v7x, 128 MiB v5e/v6e)
        # with headroom for Mosaic-internal scratch.
        try:
            vmem_cap_bytes = int(pltpu.get_tpu_info().vmem_capacity_bytes) - 16 * MIB
        except Exception:
            vmem_cap_bytes = 48 * MIB
        vmem_cap_bytes = max(32 * MIB, vmem_cap_bytes)

    # Batch tile: >=8 (sublane), <= padded batch; production tiles kept a
    # multiple of 256 so the 256x256 MXU (v6e/v7x) sees full M tiles.
    tile_b = min(tile_b, _round_up(b_rows, 8))
    if tile_b >= 256:
        tile_b = (tile_b // 256) * 256
    tile_b = max(8, (tile_b // 8) * 8)
    bp = _round_up(b_rows, tile_b)

    # Lane-dense feature dims; output dims are multiples of the per-core slice
    # (feature_splits=2 targets v7x's two TensorCores).
    lane = 128 * feature_splits
    k0p = _round_up(k0, 128)
    hp = _round_up(hidden, lane)
    op = _round_up(out_dim, lane)

    x = _pad2(protein, bp, k0p).astype(compute_dtype)

    w0 = _pad2(params["w0"], k0p, hp)
    w1 = _pad2(params["w1"], hp, hp)
    w2 = _pad2(params["w2"], hp, op)
    b0 = _pad2(params["b0"], 1, hp)
    b1 = _pad2(params["b1"], 1, hp)
    b2 = _pad2(params["b2"], 1, op)
    g0, be0 = _pad2(params["g0"], 1, hp, 1.0), _pad2(params["be0"], 1, hp)
    g1, be1 = _pad2(params["g1"], 1, hp, 1.0), _pad2(params["be1"], 1, hp)
    g2, be2 = _pad2(params["g2"], 1, op, 1.0), _pad2(params["be2"], 1, op)

    common = dict(tile_b=tile_b, batch_rows=b_rows,
                  feature_splits=feature_splits, act_dtype=act_dtype,
                  vmem_cap_bytes=vmem_cap_bytes)

    # Layer 0: Linear -> ReLU (+ batch stats).  Raw input, no input affine.
    h0, m0, v0 = _linear_bn_stats(x, w0.astype(compute_dtype), b0,
                                  apply_relu=True, **common)
    s0, t0 = _bn_scale_shift(m0, v0, g0, be0)

    # Layer 1: BN(h0) folded into W1/b1 -> Linear -> ReLU (+ stats).
    w1f, b1f = _fold_bn_into_linear(s0, t0, w1, b1, compute_dtype)
    h1, m1, v1 = _linear_bn_stats(h0, w1f, b1f, apply_relu=True, **common)
    s1, t1 = _bn_scale_shift(m1, v1, g1, be1)

    # Layer 2: BN(h1) folded into W2/b2 -> Linear (no ReLU) (+ stats).
    w2f, b2f = _fold_bn_into_linear(s1, t1, w2, b2, compute_dtype)
    h2, m2, v2 = _linear_bn_stats(h1, w2f, b2f, apply_relu=False, **common)
    s2, t2 = _bn_scale_shift(m2, v2, g2, be2)

    # Final BatchNorm as a per-feature affine (reads narrow h2, writes f32).
    out = _apply_affine(h2, s2, t2, tile_b=tile_b, vmem_cap_bytes=vmem_cap_bytes)
    return out[:b_rows, :out_dim]


# ---------------------------------------------------------------------------
# Parameter init (PyTorch defaults) and a pure-JAX reference
# ---------------------------------------------------------------------------
def init_params(key, protein_dim, output_dim, hidden=512):
    dims = [protein_dim, hidden, hidden, output_dim]
    params = {}
    for i in range(3):
        fan_in, fan_out = dims[i], dims[i + 1]
        key, kw, kb = jax.random.split(key, 3)
        bound = 1.0 / (fan_in ** 0.5)
        # stored (in_features, out_features) so the kernel computes x @ W
        params[f"w{i}"] = jax.random.uniform(kw, (fan_in, fan_out), jnp.float32,
                                             -bound, bound)
        params[f"b{i}"] = jax.random.uniform(kb, (1, fan_out), jnp.float32,
                                             -bound, bound)
        params[f"g{i}"] = jnp.ones((1, fan_out), jnp.float32)    # BN gamma
        params[f"be{i}"] = jnp.zeros((1, fan_out), jnp.float32)  # BN beta
    return params


def reference_forward(protein, params, compute_dtype=jnp.bfloat16, precision=None):
    """Pure-JAX reference: training-mode BN on f32 activations."""
    h = protein.astype(jnp.float32)
    for i in range(3):
        w = params[f"w{i}"].astype(compute_dtype)
        z = jnp.dot(h.astype(compute_dtype), w,
                    preferred_element_type=jnp.float32,
                    precision=precision) + params[f"b{i}"]
        if i < 2:
            z = jnp.maximum(z, 0.0)
        mean = jnp.mean(z, axis=0, keepdims=True)
        var = jnp.mean((z - mean) ** 2, axis=0, keepdims=True)
        scale = params[f"g{i}"] * jax.lax.rsqrt(var + BN_EPS)
        h = z * scale + (params[f"be{i}"] - mean * scale)
    return h


if __name__ == "__main__":
    B = 20            # not a tile multiple -> exercises the masked last tile
    protein_dim = 32  # padded to 128 lanes in the wrapper
    output_dim = 200  # padded to 256 lanes in the wrapper
    hidden = 512      # fixed by the module

    key = jax.random.PRNGKey(0)
    key, kx = jax.random.split(key)
    protein = jax.random.normal(kx, (B, protein_dim), jnp.float32)
    params = init_params(key, protein_dim, output_dim, hidden)

    # Structural check: f32 end-to-end, 2-way feature split (v7x two-TC grid),
    # multiple batch tiles with a partial (masked) last tile.
    fwd_f32 = jax.jit(functools.partial(
        protein_multilabel_forward, tile_b=8, feature_splits=2,
        compute_dtype=jnp.float32, act_dtype=jnp.float32))
    out32 = jax.block_until_ready(fwd_f32(protein, params))
    ref32 = reference_forward(protein, params, compute_dtype=jnp.float32,
                              precision=jax.lax.Precision.HIGHEST)
    assert out32.shape == (B, output_dim), out32.shape
    assert bool(jnp.all(jnp.isfinite(out32)))
    err32 = float(jnp.max(jnp.abs(out32 - ref32)))
    assert err32 < 2e-2, err32

    # Production path: bf16 MXU matmuls, bf16 activation storage, folded BN.
    fwd = jax.jit(functools.partial(
        protein_multilabel_forward, tile_b=8, feature_splits=1,
        compute_dtype=jnp.bfloat16, act_dtype=jnp.bfloat16))
    out = jax.block_until_ready(fwd(protein, params))
    ref = reference_forward(protein, params, compute_dtype=jnp.bfloat16)
    assert out.shape == (B, output_dim), out.shape
    assert bool(jnp.all(jnp.isfinite(out)))
    err = float(jnp.max(jnp.abs(out - ref)))
    assert err < 4e-2, err

    print("KERNEL_OK")
</pallas_src>

<mosaic_0001>
module attributes {stable_mosaic.version = 11 : i64} {
  func.func @_linear_stats_kernel(%arg0: i32, %arg1: i32, %arg2: memref<8x128xf32, #tpu.memory_space<vmem>>, %arg3: memref<128x256xf32, #tpu.memory_space<vmem>>, %arg4: memref<1x256xf32, #tpu.memory_space<vmem>>, %arg5: memref<8x256xf32, #tpu.memory_space<vmem>>, %arg6: memref<1x256xf32, #tpu.memory_space<vmem>>, %arg7: memref<1x256xf32, #tpu.memory_space<vmem>>, %arg8: memref<1x256xf32, #tpu.memory_space<vmem>>, %arg9: memref<1x256xf32, #tpu.memory_space<vmem>>) attributes {dimension_semantics = [#tpu.dimension_semantics<parallel>, #tpu.dimension_semantics<arbitrary>], iteration_bounds = array<i64: 2, 3>, scalar_prefetch = 0 : i64, scratch_operands = 2 : i64, tpu.core_type = #tpu.core_type<tc>, window_params = [{transform_indices = @transform_0, window_bounds = array<i64: 8, 128>}, {transform_indices = @transform_1, window_bounds = array<i64: 128, 256>}, {transform_indices = @transform_2, window_bounds = array<i64: 1, 256>}, {transform_indices = @transform_3, window_bounds = array<i64: 8, 256>}, {transform_indices = @transform_4, window_bounds = array<i64: 1, 256>}, {transform_indices = @transform_5, window_bounds = array<i64: 1, 256>}]} {
    %c0_i32 = arith.constant 0 : i32
    %0 = arith.cmpi eq, %arg1, %c0_i32 : i32
    %1 = arith.extui %0 : i1 to i32
    %c0_i32_0 = arith.constant 0 : i32
    %2 = arith.cmpi ne, %1, %c0_i32_0 : i32
    scf.if %2 {
      %cst_14 = arith.constant 0.000000e+00 : f32
      %21 = vector.broadcast %cst_14 : f32 to vector<1x256xf32>
      %c0_15 = arith.constant 0 : index
      %c0_16 = arith.constant 0 : index
      %22 = vector.load %arg8[%c0_15, %c0_16] : memref<1x256xf32, #tpu.memory_space<vmem>>, vector<1x256xf32>
      tpu.vector_store %arg8[%c0_15, %c0_16], %21 {strides = array<i32>} : memref<1x256xf32, #tpu.memory_space<vmem>>, vector<1x256xf32>,
      %cst_17 = arith.constant 0.000000e+00 : f32
      %23 = vector.broadcast %cst_17 : f32 to vector<1x256xf32>
      %c0_18 = arith.constant 0 : index
      %c0_19 = arith.constant 0 : index
      %24 = vector.load %arg9[%c0_18, %c0_19] : memref<1x256xf32, #tpu.memory_space<vmem>>, vector<1x256xf32>
      tpu.vector_store %arg9[%c0_18, %c0_19], %23 {strides = array<i32>} : memref<1x256xf32, #tpu.memory_space<vmem>>, vector<1x256xf32>,
    } else {
    }
    %c0 = arith.constant 0 : index
    %c0_1 = arith.constant 0 : index
    %3 = vector.load %arg2[%c0, %c0_1] : memref<8x128xf32, #tpu.memory_space<vmem>>, vector<8x128xf32>
    %c0_2 = arith.constant 0 : index
    %c0_3 = arith.constant 0 : index
    %4 = vector.load %arg3[%c0_2, %c0_3] : memref<128x256xf32, #tpu.memory_space<vmem>>, vector<128x256xf32>
    %cst = arith.constant dense<0.000000e+00> : vector<8x256xf32>
    %5 = tpu.matmul %3, %4, %cst {dimension_numbers = #tpu.dot_dimension_numbers<[1], [0], [0], [1], [0, 0, 1, 1], [], []>} : vector<8x128xf32>, vector<128x256xf32>, vector<8x256xf32> -> vector<8x256xf32>
    %c0_4 = arith.constant 0 : index
    %c0_5 = arith.constant 0 : index
    %6 = vector.load %arg4[%c0_4, %c0_5] : memref<1x256xf32, #tpu.memory_space<vmem>>, vector<1x256xf32>
    %7 = vector.broadcast %6 : vector<1x256xf32> to vector<8x256xf32>
    %8 = arith.addf %5, %7 : vector<8x256xf32>
    %cst_6 = arith.constant 0.000000e+00 : f32
    %9 = vector.broadcast %cst_6 : f32 to vector<8x256xf32>
    %10 = arith.maximumf %8, %9 : vector<8x256xf32>
    %c0_7 = arith.constant 0 : index
    %c0_8 = arith.constant 0 : index
    %11 = vector.load %arg5[%c0_7, %c0_8] : memref<8x256xf32, #tpu.memory_space<vmem>>, vector<8x256xf32>
    tpu.vector_store %arg5[%c0_7, %c0_8], %10 {strides = array<i32>} : memref<8x256xf32, #tpu.memory_space<vmem>>, vector<8x256xf32>,
    %c2_i32 = arith.constant 2 : i32
    %12 = arith.cmpi slt, %arg1, %c2_i32 : i32
    %13 = arith.extui %12 : i1 to i32
    %c0_i32_9 = arith.constant 0 : i32
    %14 = arith.cmpi ne, %13, %c0_i32_9 : i32
    scf.if %14 {
      %cst_14 = arith.constant dense<0.000000e+00> : vector<256xf32>
      %21 = vector.multi_reduction <add>, %10, %cst_14 [0] : vector<8x256xf32> to vector<256xf32>
      %22 = vector.shape_cast %21 : vector<256xf32> to vector<1x256xf32>
      %cst_15 = arith.constant 1.250000e-01 : f32
      %23 = vector.broadcast %cst_15 : f32 to vector<1x256xf32>
      %24 = arith.mulf %22, %23 : vector<1x256xf32>
      %25 = vector.broadcast %24 : vector<1x256xf32> to vector<8x256xf32>
      %26 = arith.subf %10, %25 : vector<8x256xf32>
      %27 = arith.mulf %26, %26 : vector<8x256xf32>
      %cst_16 = arith.constant dense<0.000000e+00> : vector<256xf32>
      %28 = vector.multi_reduction <add>, %27, %cst_16 [0] : vector<8x256xf32> to vector<256xf32>
      %29 = vector.shape_cast %28 : vector<256xf32> to vector<1x256xf32>
      %c8_i32 = arith.constant 8 : i32
      %30 = arith.muli %arg1, %c8_i32 : i32
      %31 = arith.sitofp %30 : i32 to f32
      %c0_17 = arith.constant 0 : index
      %c0_18 = arith.constant 0 : index
      %32 = vector.load %arg8[%c0_17, %c0_18] : memref<1x256xf32, #tpu.memory_space<vmem>>, vector<1x256xf32>
      %33 = arith.subf %24, %32 : vector<1x256xf32>
      %cst_19 = arith.constant 8.000000e+00 : f32
      %34 = arith.addf %31, %cst_19 : f32
      %c0_20 = arith.constant 0 : index
      %c0_21 = arith.constant 0 : index
      %35 = vector.load %arg8[%c0_20, %c0_21] : memref<1x256xf32, #tpu.memory_space<vmem>>, vector<1x256xf32>
      %cst_22 = arith.constant 8.000000e+00 : f32
      %36 = arith.divf %cst_22, %34 : f32
      %37 = vector.broadcast %36 : f32 to vector<1x256xf32>
      %38 = arith.mulf %33, %37 : vector<1x256xf32>
      %39 = arith.addf %35, %38 : vector<1x256xf32>
      %c0_23 = arith.constant 0 : index
      %c0_24 = arith.constant 0 : index
      %40 = vector.load %arg8[%c0_23, %c0_24] : memref<1x256xf32, #tpu.memory_space<vmem>>, vector<1x256xf32>
      tpu.vector_store %arg8[%c0_23, %c0_24], %39 {strides = array<i32>} : memref<1x256xf32, #tpu.memory_space<vmem>>, vector<1x256xf32>,
      %c0_25 = arith.constant 0 : index
      %c0_26 = arith.constant 0 : index
      %41 = vector.load %arg9[%c0_25, %c0_26] : memref<1x256xf32, #tpu.memory_space<vmem>>, vector<1x256xf32>
      %42 = arith.addf %41, %29 : vector<1x256xf32>
      %43 = arith.mulf %33, %33 : vector<1x256xf32>
      %cst_27 = arith.constant 8.000000e+00 : f32
      %44 = arith.mulf %31, %cst_27 : f32
      %45 = arith.divf %44, %34 : f32
      %46 = vector.broadcast %45 : f32 to vector<1x256xf32>
      %47 = arith.mulf %43, %46 : vector<1x256xf32>
      %48 = arith.addf %42, %47 : vector<1x256xf32>
      %c0_28 = arith.constant 0 : index
      %c0_29 = arith.constant 0 : index
      %49 = vector.load %arg9[%c0_28, %c0_29] : memref<1x256xf32, #tpu.memory_space<vmem>>, vector<1x256xf32>
      tpu.vector_store %arg9[%c0_28, %c0_29], %48 {strides = array<i32>} : memref<1x256xf32, #tpu.memory_space<vmem>>, vector<1x256xf32>,
    } else {
    }
    %c2_i32_10 = arith.constant 2 : i32
    %15 = arith.cmpi eq, %arg1, %c2_i32_10 : i32
    %16 = arith.extui %15 : i1 to i32
    %c0_i32_11 = arith.constant 0 : i32
    %17 = arith.cmpi ne, %16, %c0_i32_11 : i32
    scf.if %17 {
      %21 = tpu.iota {dimensions = array<i32: 0>} : vector<8x1xi32>
      %c4_i32 = arith.constant 4 : i32
      %22 = vector.broadcast %c4_i32 : i32 to vector<8x1xi32>
      %23 = arith.cmpi slt, %21, %22 : vector<8x1xi32>
      %24 = arith.extui %23 : vector<8x1xi1> to vector<8x1xi32>
      %25 = arith.sitofp %24 : vector<8x1xi32> to vector<8x1xf32>
      %26 = vector.broadcast %25 : vector<8x1xf32> to vector<8x256xf32>
      %27 = arith.mulf %10, %26 : vector<8x256xf32>
      %cst_14 = arith.constant dense<0.000000e+00> : vector<256xf32>
      %28 = vector.multi_reduction <add>, %27, %cst_14 [0] : vector<8x256xf32> to vector<256xf32>
      %29 = vector.shape_cast %28 : vector<256xf32> to vector<1x256xf32>
      %cst_15 = arith.constant 2.500000e-01 : f32
      %30 = vector.broadcast %cst_15 : f32 to vector<1x256xf32>
      %31 = arith.mulf %29, %30 : vector<1x256xf32>
      %32 = vector.broadcast %31 : vector<1x256xf32> to vector<8x256xf32>
      %33 = arith.subf %10, %32 : vector<8x256xf32>
      %34 = vector.broadcast %25 : vector<8x1xf32> to vector<8x256xf32>
      %35 = arith.mulf %33, %34 : vector<8x256xf32>
      %36 = arith.mulf %35, %35 : vector<8x256xf32>
      %cst_16 = arith.constant dense<0.000000e+00> : vector<256xf32>
      %37 = vector.multi_reduction <add>, %36, %cst_16 [0] : vector<8x256xf32> to vector<256xf32>
      %38 = vector.shape_cast %37 : vector<256xf32> to vector<1x256xf32>
      %c0_17 = arith.constant 0 : index
      %c0_18 = arith.constant 0 : index
      %39 = vector.load %arg8[%c0_17, %c0_18] : memref<1x256xf32, #tpu.memory_space<vmem>>, vector<1x256xf32>
      %40 = arith.subf %31, %39 : vector<1x256xf32>
      %c0_19 = arith.constant 0 : index
      %c0_20 = arith.constant 0 : index
      %41 = vector.load %arg8[%c0_19, %c0_20] : memref<1x256xf32, #tpu.memory_space<vmem>>, vector<1x256xf32>
      %cst_21 = arith.constant 2.000000e-01 : f32
      %42 = vector.broadcast %cst_21 : f32 to vector<1x256xf32>
      %43 = arith.mulf %40, %42 : vector<1x256xf32>
      %44 = arith.addf %41, %43 : vector<1x256xf32>
      %c0_22 = arith.constant 0 : index
      %c0_23 = arith.constant 0 : index
      %45 = vector.load %arg8[%c0_22, %c0_23] : memref<1x256xf32, #tpu.memory_space<vmem>>, vector<1x256xf32>
      tpu.vector_store %arg8[%c0_22, %c0_23], %44 {strides = array<i32>} : memref<1x256xf32, #tpu.memory_space<vmem>>, vector<1x256xf32>,
      %c0_24 = arith.constant 0 : index
      %c0_25 = arith.constant 0 : index
      %46 = vector.load %arg9[%c0_24, %c0_25] : memref<1x256xf32, #tpu.memory_space<vmem>>, vector<1x256xf32>
      %47 = arith.addf %46, %38 : vector<1x256xf32>
      %48 = arith.mulf %40, %40 : vector<1x256xf32>
      %cst_26 = arith.constant 3.200000e+00 : f32
      %49 = vector.broadcast %cst_26 : f32 to vector<1x256xf32>
      %50 = arith.mulf %48, %49 : vector<1x256xf32>
      %51 = arith.addf %47, %50 : vector<1x256xf32>
      %c0_27 = arith.constant 0 : index
      %c0_28 = arith.constant 0 : index
      %52 = vector.load %arg9[%c0_27, %c0_28] : memref<1x256xf32, #tpu.memory_space<vmem>>, vector<1x256xf32>
      tpu.vector_store %arg9[%c0_27, %c0_28], %51 {strides = array<i32>} : memref<1x256xf32, #tpu.memory_space<vmem>>, vector<1x256xf32>,
    } else {
    }
    %c2_i32_12 = arith.constant 2 : i32
    %18 = arith.cmpi eq, %arg1, %c2_i32_12 : i32
    %19 = arith.extui %18 : i1 to i32
    %c0_i32_13 = arith.constant 0 : i32
    %20 = arith.cmpi ne, %19, %c0_i32_13 : i32
    scf.if %20 {
      %c0_14 = arith.constant 0 : index
      %c0_15 = arith.constant 0 : index
      %21 = vector.load %arg8[%c0_14, %c0_15] : memref<1x256xf32, #tpu.memory_space<vmem>>, vector<1x256xf32>
      %c0_16 = arith.constant 0 : index
      %c0_17 = arith.constant 0 : index
      %22 = vector.load %arg6[%c0_16, %c0_17] : memref<1x256xf32, #tpu.memory_space<vmem>>, vector<1x256xf32>
      tpu.vector_store %arg6[%c0_16, %c0_17], %21 {strides = array<i32>} : memref<1x256xf32, #tpu.memory_space<vmem>>, vector<1x256xf32>,
      %c0_18 = arith.constant 0 : index
      %c0_19 = arith.constant 0 : index
      %23 = vector.load %arg9[%c0_18, %c0_19] : memref<1x256xf32, #tpu.memory_space<vmem>>, vector<1x256xf32>
      %cst_20 = arith.constant 5.000000e-02 : f32
      %24 = vector.broadcast %cst_20 : f32 to vector<1x256xf32>
      %25 = arith.mulf %23, %24 : vector<1x256xf32>
      %c0_21 = arith.constant 0 : index
      %c0_22 = arith.constant 0 : index
      %26 = vector.load %arg7[%c0_21, %c0_22] : memref<1x256xf32, #tpu.memory_space<vmem>>, vector<1x256xf32>
      tpu.vector_store %arg7[%c0_21, %c0_22], %25 {strides = array<i32>} : memref<1x256xf32, #tpu.memory_space<vmem>>, vector<1x256xf32>,
    } else {
    }
    return
  }
  func.func @transform_0(%arg0: i32, %arg1: i32) -> (i32, i32) {
    %c0_i32 = arith.constant 0 : i32
    %c0_i32_0 = arith.constant 0 : i32
    return %arg1, %c0_i32 : i32, i32
  }
  func.func @transform_1(%arg0: i32, %arg1: i32) -> (i32, i32) {
    %c0_i32 = arith.constant 0 : i32
    %c0_i32_0 = arith.constant 0 : i32
    return %c0_i32, %arg0 : i32, i32
  }
  func.func @transform_2(%arg0: i32, %arg1: i32) -> (i32, i32) {
    %c0_i32 = arith.constant 0 : i32
    %c0_i32_0 = arith.constant 0 : i32
    return %c0_i32, %arg0 : i32, i32
  }
  func.func @transform_3(%arg0: i32, %arg1: i32) -> (i32, i32) {
    %c0_i32 = arith.constant 0 : i32
    return %arg1, %arg0 : i32, i32
  }
  func.func @transform_4(%arg0: i32, %arg1: i32) -> (i32, i32) {
    %c0_i32 = arith.constant 0 : i32
    %c0_i32_0 = arith.constant 0 : i32
    return %c0_i32, %arg0 : i32, i32
  }
  func.func @transform_5(%arg0: i32, %arg1: i32) -> (i32, i32) {
    %c0_i32 = arith.constant 0 : i32
    %c0_i32_0 = arith.constant 0 : i32
    return %c0_i32, %arg0 : i32, i32
  }
}

module attributes {stable_mosaic.version = 11 : i64} {
  func.func @_linear_stats_kernel(%arg0: i32, %arg1: i32, %arg2: memref<8x512xf32, #tpu.memory_space<vmem>>, %arg3: memref<512x256xf32, #tpu.memory_space<vmem>>, %arg4: memref<1x256xf32, #tpu.memory_space<vmem>>, %arg5: memref<8x256xf32, #tpu.memory_space<vmem>>, %arg6: memref<1x256xf32, #tpu.memory_space<vmem>>, %arg7: memref<1x256xf32, #tpu.memory_space<vmem>>, %arg8: memref<1x256xf32, #tpu.memory_space<vmem>>, %arg9: memref<1x256xf32, #tpu.memory_space<vmem>>) attributes {dimension_semantics = [#tpu.dimension_semantics<parallel>, #tpu.dimension_semantics<arbitrary>], iteration_bounds = array<i64: 2, 3>, scalar_prefetch = 0 : i64, scratch_operands = 2 : i64, tpu.core_type = #tpu.core_type<tc>, window_params = [{transform_indices = @transform_0, window_bounds = array<i64: 8, 512>}, {transform_indices = @transform_1, window_bounds = array<i64: 512, 256>}, {transform_indices = @transform_2, window_bounds = array<i64: 1, 256>}, {transform_indices = @transform_3, window_bounds = array<i64: 8, 256>}, {transform_indices = @transform_4, window_bounds = array<i64: 1, 256>}, {transform_indices = @transform_5, window_bounds = array<i64: 1, 256>}]} {
    %c0_i32 = arith.constant 0 : i32
    %0 = arith.cmpi eq, %arg1, %c0_i32 : i32
    %1 = arith.extui %0 : i1 to i32
    %c0_i32_0 = arith.constant 0 : i32
    %2 = arith.cmpi ne, %1, %c0_i32_0 : i32
    scf.if %2 {
      %cst_14 = arith.constant 0.000000e+00 : f32
      %21 = vector.broadcast %cst_14 : f32 to vector<1x256xf32>
      %c0_15 = arith.constant 0 : index
      %c0_16 = arith.constant 0 : index
      %22 = vector.load %arg8[%c0_15, %c0_16] : memref<1x256xf32, #tpu.memory_space<vmem>>, vector<1x256xf32>
      tpu.vector_store %arg8[%c0_15, %c0_16], %21 {strides = array<i32>} : memref<1x256xf32, #tpu.memory_space<vmem>>, vector<1x256xf32>,
      %cst_17 = arith.constant 0.000000e+00 : f32
      %23 = vector.broadcast %cst_17 : f32 to vector<1x256xf32>
      %c0_18 = arith.constant 0 : index
      %c0_19 = arith.constant 0 : index
      %24 = vector.load %arg9[%c0_18, %c0_19] : memref<1x256xf32, #tpu.memory_space<vmem>>, vector<1x256xf32>
      tpu.vector_store %arg9[%c0_18, %c0_19], %23 {strides = array<i32>} : memref<1x256xf32, #tpu.memory_space<vmem>>, vector<1x256xf32>,
    } else {
    }
    %c0 = arith.constant 0 : index
    %c0_1 = arith.constant 0 : index
    %3 = vector.load %arg2[%c0, %c0_1] : memref<8x512xf32, #tpu.memory_space<vmem>>, vector<8x512xf32>
    %c0_2 = arith.constant 0 : index
    %c0_3 = arith.constant 0 : index
    %4 = vector.load %arg3[%c0_2, %c0_3] : memref<512x256xf32, #tpu.memory_space<vmem>>, vector<512x256xf32>
    %cst = arith.constant dense<0.000000e+00> : vector<8x256xf32>
    %5 = tpu.matmul %3, %4, %cst {dimension_numbers = #tpu.dot_dimension_numbers<[1], [0], [0], [1], [0, 0, 1, 1], [], []>} : vector<8x512xf32>, vector<512x256xf32>, vector<8x256xf32> -> vector<8x256xf32>
    %c0_4 = arith.constant 0 : index
    %c0_5 = arith.constant 0 : index
    %6 = vector.load %arg4[%c0_4, %c0_5] : memref<1x256xf32, #tpu.memory_space<vmem>>, vector<1x256xf32>
    %7 = vector.broadcast %6 : vector<1x256xf32> to vector<8x256xf32>
    %8 = arith.addf %5, %7 : vector<8x256xf32>
    %cst_6 = arith.constant 0.000000e+00 : f32
    %9 = vector.broadcast %cst_6 : f32 to vector<8x256xf32>
    %10 = arith.maximumf %8, %9 : vector<8x256xf32>
    %c0_7 = arith.constant 0 : index
    %c0_8 = arith.constant 0 : index
    %11 = vector.load %arg5[%c0_7, %c0_8] : memref<8x256xf32, #tpu.memory_space<vmem>>, vector<8x256xf32>
    tpu.vector_store %arg5[%c0_7, %c0_8], %10 {strides = array<i32>} : memref<8x256xf32, #tpu.memory_space<vmem>>, vector<8x256xf32>,
    %c2_i32 = arith.constant 2 : i32
    %12 = arith.cmpi slt, %arg1, %c2_i32 : i32
    %13 = arith.extui %12 : i1 to i32
    %c0_i32_9 = arith.constant 0 : i32
    %14 = arith.cmpi ne, %13, %c0_i32_9 : i32
    scf.if %14 {
      %cst_14 = arith.constant dense<0.000000e+00> : vector<256xf32>
      %21 = vector.multi_reduction <add>, %10, %cst_14 [0] : vector<8x256xf32> to vector<256xf32>
      %22 = vector.shape_cast %21 : vector<256xf32> to vector<1x256xf32>
      %cst_15 = arith.constant 1.250000e-01 : f32
      %23 = vector.broadcast %cst_15 : f32 to vector<1x256xf32>
      %24 = arith.mulf %22, %23 : vector<1x256xf32>
      %25 = vector.broadcast %24 : vector<1x256xf32> to vector<8x256xf32>
      %26 = arith.subf %10, %25 : vector<8x256xf32>
      %27 = arith.mulf %26, %26 : vector<8x256xf32>
      %cst_16 = arith.constant dense<0.000000e+00> : vector<256xf32>
      %28 = vector.multi_reduction <add>, %27, %cst_16 [0] : vector<8x256xf32> to vector<256xf32>
      %29 = vector.shape_cast %28 : vector<256xf32> to vector<1x256xf32>
      %c8_i32 = arith.constant 8 : i32
      %30 = arith.muli %arg1, %c8_i32 : i32
      %31 = arith.sitofp %30 : i32 to f32
      %c0_17 = arith.constant 0 : index
      %c0_18 = arith.constant 0 : index
      %32 = vector.load %arg8[%c0_17, %c0_18] : memref<1x256xf32, #tpu.memory_space<vmem>>, vector<1x256xf32>
      %33 = arith.subf %24, %32 : vector<1x256xf32>
      %cst_19 = arith.constant 8.000000e+00 : f32
      %34 = arith.addf %31, %cst_19 : f32
      %c0_20 = arith.constant 0 : index
      %c0_21 = arith.constant 0 : index
      %35 = vector.load %arg8[%c0_20, %c0_21] : memref<1x256xf32, #tpu.memory_space<vmem>>, vector<1x256xf32>
      %cst_22 = arith.constant 8.000000e+00 : f32
      %36 = arith.divf %cst_22, %34 : f32
      %37 = vector.broadcast %36 : f32 to vector<1x256xf32>
      %38 = arith.mulf %33, %37 : vector<1x256xf32>
      %39 = arith.addf %35, %38 : vector<1x256xf32>
      %c0_23 = arith.constant 0 : index
      %c0_24 = arith.constant 0 : index
      %40 = vector.load %arg8[%c0_23, %c0_24] : memref<1x256xf32, #tpu.memory_space<vmem>>, vector<1x256xf32>
      tpu.vector_store %arg8[%c0_23, %c0_24], %39 {strides = array<i32>} : memref<1x256xf32, #tpu.memory_space<vmem>>, vector<1x256xf32>,
      %c0_25 = arith.constant 0 : index
      %c0_26 = arith.constant 0 : index
      %41 = vector.load %arg9[%c0_25, %c0_26] : memref<1x256xf32, #tpu.memory_space<vmem>>, vector<1x256xf32>
      %42 = arith.addf %41, %29 : vector<1x256xf32>
      %43 = arith.mulf %33, %33 : vector<1x256xf32>
      %cst_27 = arith.constant 8.000000e+00 : f32
      %44 = arith.mulf %31, %cst_27 : f32
      %45 = arith.divf %44, %34 : f32
      %46 = vector.broadcast %45 : f32 to vector<1x256xf32>
      %47 = arith.mulf %43, %46 : vector<1x256xf32>
      %48 = arith.addf %42, %47 : vector<1x256xf32>
      %c0_28 = arith.constant 0 : index
      %c0_29 = arith.constant 0 : index
      %49 = vector.load %arg9[%c0_28, %c0_29] : memref<1x256xf32, #tpu.memory_space<vmem>>, vector<1x256xf32>
      tpu.vector_store %arg9[%c0_28, %c0_29], %48 {strides = array<i32>} : memref<1x256xf32, #tpu.memory_space<vmem>>, vector<1x256xf32>,
    } else {
    }
    %c2_i32_10 = arith.constant 2 : i32
    %15 = arith.cmpi eq, %arg1, %c2_i32_10 : i32
    %16 = arith.extui %15 : i1 to i32
    %c0_i32_11 = arith.constant 0 : i32
    %17 = arith.cmpi ne, %16, %c0_i32_11 : i32
    scf.if %17 {
      %21 = tpu.iota {dimensions = array<i32: 0>} : vector<8x1xi32>
      %c4_i32 = arith.constant 4 : i32
      %22 = vector.broadcast %c4_i32 : i32 to vector<8x1xi32>
      %23 = arith.cmpi slt, %21, %22 : vector<8x1xi32>
      %24 = arith.extui %23 : vector<8x1xi1> to vector<8x1xi32>
      %25 = arith.sitofp %24 : vector<8x1xi32> to vector<8x1xf32>
      %26 = vector.broadcast %25 : vector<8x1xf32> to vector<8x256xf32>
      %27 = arith.mulf %10, %26 : vector<8x256xf32>
      %cst_14 = arith.constant dense<0.000000e+00> : vector<256xf32>
      %28 = vector.multi_reduction <add>, %27, %cst_14 [0] : vector<8x256xf32> to vector<256xf32>
      %29 = vector.shape_cast %28 : vector<256xf32> to vector<1x256xf32>
      %cst_15 = arith.constant 2.500000e-01 : f32
      %30 = vector.broadcast %cst_15 : f32 to vector<1x256xf32>
      %31 = arith.mulf %29, %30 : vector<1x256xf32>
      %32 = vector.broadcast %31 : vector<1x256xf32> to vector<8x256xf32>
      %33 = arith.subf %10, %32 : vector<8x256xf32>
      %34 = vector.broadcast %25 : vector<8x1xf32> to vector<8x256xf32>
      %35 = arith.mulf %33, %34 : vector<8x256xf32>
      %36 = arith.mulf %35, %35 : vector<8x256xf32>
      %cst_16 = arith.constant dense<0.000000e+00> : vector<256xf32>
      %37 = vector.multi_reduction <add>, %36, %cst_16 [0] : vector<8x256xf32> to vector<256xf32>
      %38 = vector.shape_cast %37 : vector<256xf32> to vector<1x256xf32>
      %c0_17 = arith.constant 0 : index
      %c0_18 = arith.constant 0 : index
      %39 = vector.load %arg8[%c0_17, %c0_18] : memref<1x256xf32, #tpu.memory_space<vmem>>, vector<1x256xf32>
      %40 = arith.subf %31, %39 : vector<1x256xf32>
      %c0_19 = arith.constant 0 : index
      %c0_20 = arith.constant 0 : index
      %41 = vector.load %arg8[%c0_19, %c0_20] : memref<1x256xf32, #tpu.memory_space<vmem>>, vector<1x256xf32>
      %cst_21 = arith.constant 2.000000e-01 : f32
      %42 = vector.broadcast %cst_21 : f32 to vector<1x256xf32>
      %43 = arith.mulf %40, %42 : vector<1x256xf32>
      %44 = arith.addf %41, %43 : vector<1x256xf32>
      %c0_22 = arith.constant 0 : index
      %c0_23 = arith.constant 0 : index
      %45 = vector.load %arg8[%c0_22, %c0_23] : memref<1x256xf32, #tpu.memory_space<vmem>>, vector<1x256xf32>
      tpu.vector_store %arg8[%c0_22, %c0_23], %44 {strides = array<i32>} : memref<1x256xf32, #tpu.memory_space<vmem>>, vector<1x256xf32>,
      %c0_24 = arith.constant 0 : index
      %c0_25 = arith.constant 0 : index
      %46 = vector.load %arg9[%c0_24, %c0_25] : memref<1x256xf32, #tpu.memory_space<vmem>>, vector<1x256xf32>
      %47 = arith.addf %46, %38 : vector<1x256xf32>
      %48 = arith.mulf %40, %40 : vector<1x256xf32>
      %cst_26 = arith.constant 3.200000e+00 : f32
      %49 = vector.broadcast %cst_26 : f32 to vector<1x256xf32>
      %50 = arith.mulf %48, %49 : vector<1x256xf32>
      %51 = arith.addf %47, %50 : vector<1x256xf32>
      %c0_27 = arith.constant 0 : index
      %c0_28 = arith.constant 0 : index
      %52 = vector.load %arg9[%c0_27, %c0_28] : memref<1x256xf32, #tpu.memory_space<vmem>>, vector<1x256xf32>
      tpu.vector_store %arg9[%c0_27, %c0_28], %51 {strides = array<i32>} : memref<1x256xf32, #tpu.memory_space<vmem>>, vector<1x256xf32>,
    } else {
    }
    %c2_i32_12 = arith.constant 2 : i32
    %18 = arith.cmpi eq, %arg1, %c2_i32_12 : i32
    %19 = arith.extui %18 : i1 to i32
    %c0_i32_13 = arith.constant 0 : i32
    %20 = arith.cmpi ne, %19, %c0_i32_13 : i32
    scf.if %20 {
      %c0_14 = arith.constant 0 : index
      %c0_15 = arith.constant 0 : index
      %21 = vector.load %arg8[%c0_14, %c0_15] : memref<1x256xf32, #tpu.memory_space<vmem>>, vector<1x256xf32>
      %c0_16 = arith.constant 0 : index
      %c0_17 = arith.constant 0 : index
      %22 = vector.load %arg6[%c0_16, %c0_17] : memref<1x256xf32, #tpu.memory_space<vmem>>, vector<1x256xf32>
      tpu.vector_store %arg6[%c0_16, %c0_17], %21 {strides = array<i32>} : memref<1x256xf32, #tpu.memory_space<vmem>>, vector<1x256xf32>,
      %c0_18 = arith.constant 0 : index
      %c0_19 = arith.constant 0 : index
      %23 = vector.load %arg9[%c0_18, %c0_19] : memref<1x256xf32, #tpu.memory_space<vmem>>, vector<1x256xf32>
      %cst_20 = arith.constant 5.000000e-02 : f32
      %24 = vector.broadcast %cst_20 : f32 to vector<1x256xf32>
      %25 = arith.mulf %23, %24 : vector<1x256xf32>
      %c0_21 = arith.constant 0 : index
      %c0_22 = arith.constant 0 : index
      %26 = vector.load %arg7[%c0_21, %c0_22] : memref<1x256xf32, #tpu.memory_space<vmem>>, vector<1x256xf32>
      tpu.vector_store %arg7[%c0_21, %c0_22], %25 {strides = array<i32>} : memref<1x256xf32, #tpu.memory_space<vmem>>, vector<1x256xf32>,
    } else {
    }
    return
  }
  func.func @transform_0(%arg0: i32, %arg1: i32) -> (i32, i32) {
    %c0_i32 = arith.constant 0 : i32
    %c0_i32_0 = arith.constant 0 : i32
    return %arg1, %c0_i32 : i32, i32
  }
  func.func @transform_1(%arg0: i32, %arg1: i32) -> (i32, i32) {
    %c0_i32 = arith.constant 0 : i32
    %c0_i32_0 = arith.constant 0 : i32
    return %c0_i32, %arg0 : i32, i32
  }
  func.func @transform_2(%arg0: i32, %arg1: i32) -> (i32, i32) {
    %c0_i32 = arith.constant 0 : i32
    %c0_i32_0 = arith.constant 0 : i32
    return %c0_i32, %arg0 : i32, i32
  }
  func.func @transform_3(%arg0: i32, %arg1: i32) -> (i32, i32) {
    %c0_i32 = arith.constant 0 : i32
    return %arg1, %arg0 : i32, i32
  }
  func.func @transform_4(%arg0: i32, %arg1: i32) -> (i32, i32) {
    %c0_i32 = arith.constant 0 : i32
    %c0_i32_0 = arith.constant 0 : i32
    return %c0_i32, %arg0 : i32, i32
  }
  func.func @transform_5(%arg0: i32, %arg1: i32) -> (i32, i32) {
    %c0_i32 = arith.constant 0 : i32
    %c0_i32_0 = arith.constant 0 : i32
    return %c0_i32, %arg0 : i32, i32
  }
}

module attributes {stable_mosaic.version = 11 : i64} {
  func.func @_linear_stats_kernel(%arg0: i32, %arg1: i32, %arg2: memref<8x512xf32, #tpu.memory_space<vmem>>, %arg3: memref<512x128xf32, #tpu.memory_space<vmem>>, %arg4: memref<1x128xf32, #tpu.memory_space<vmem>>, %arg5: memref<8x128xf32, #tpu.memory_space<vmem>>, %arg6: memref<1x128xf32, #tpu.memory_space<vmem>>, %arg7: memref<1x128xf32, #tpu.memory_space<vmem>>, %arg8: memref<1x128xf32, #tpu.memory_space<vmem>>, %arg9: memref<1x128xf32, #tpu.memory_space<vmem>>) attributes {dimension_semantics = [#tpu.dimension_semantics<parallel>, #tpu.dimension_semantics<arbitrary>], iteration_bounds = array<i64: 2, 3>, scalar_prefetch = 0 : i64, scratch_operands = 2 : i64, tpu.core_type = #tpu.core_type<tc>, window_params = [{transform_indices = @transform_0, window_bounds = array<i64: 8, 512>}, {transform_indices = @transform_1, window_bounds = array<i64: 512, 128>}, {transform_indices = @transform_2, window_bounds = array<i64: 1, 128>}, {transform_indices = @transform_3, window_bounds = array<i64: 8, 128>}, {transform_indices = @transform_4, window_bounds = array<i64: 1, 128>}, {transform_indices = @transform_5, window_bounds = array<i64: 1, 128>}]} {
    %c0_i32 = arith.constant 0 : i32
    %0 = arith.cmpi eq, %arg1, %c0_i32 : i32
    %1 = arith.extui %0 : i1 to i32
    %c0_i32_0 = arith.constant 0 : i32
    %2 = arith.cmpi ne, %1, %c0_i32_0 : i32
    scf.if %2 {
      %cst_13 = arith.constant 0.000000e+00 : f32
      %19 = vector.broadcast %cst_13 : f32 to vector<1x128xf32>
      %c0_14 = arith.constant 0 : index
      %c0_15 = arith.constant 0 : index
      %20 = vector.load %arg8[%c0_14, %c0_15] : memref<1x128xf32, #tpu.memory_space<vmem>>, vector<1x128xf32>
      tpu.vector_store %arg8[%c0_14, %c0_15], %19 {strides = array<i32>} : memref<1x128xf32, #tpu.memory_space<vmem>>, vector<1x128xf32>,
      %cst_16 = arith.constant 0.000000e+00 : f32
      %21 = vector.broadcast %cst_16 : f32 to vector<1x128xf32>
      %c0_17 = arith.constant 0 : index
      %c0_18 = arith.constant 0 : index
      %22 = vector.load %arg9[%c0_17, %c0_18] : memref<1x128xf32, #tpu.memory_space<vmem>>, vector<1x128xf32>
      tpu.vector_store %arg9[%c0_17, %c0_18], %21 {strides = array<i32>} : memref<1x128xf32, #tpu.memory_space<vmem>>, vector<1x128xf32>,
    } else {
    }
    %c0 = arith.constant 0 : index
    %c0_1 = arith.constant 0 : index
    %3 = vector.load %arg2[%c0, %c0_1] : memref<8x512xf32, #tpu.memory_space<vmem>>, vector<8x512xf32>
    %c0_2 = arith.constant 0 : index
    %c0_3 = arith.constant 0 : index
    %4 = vector.load %arg3[%c0_2, %c0_3] : memref<512x128xf32, #tpu.memory_space<vmem>>, vector<512x128xf32>
    %cst = arith.constant dense<0.000000e+00> : vector<8x128xf32>
    %5 = tpu.matmul %3, %4, %cst {dimension_numbers = #tpu.dot_dimension_numbers<[1], [0], [0], [1], [0, 0, 1, 1], [], []>} : vector<8x512xf32>, vector<512x128xf32>, vector<8x128xf32> -> vector<8x128xf32>
    %c0_4 = arith.constant 0 : index
    %c0_5 = arith.constant 0 : index
    %6 = vector.load %arg4[%c0_4, %c0_5] : memref<1x128xf32, #tpu.memory_space<vmem>>, vector<1x128xf32>
    %7 = vector.broadcast %6 : vector<1x128xf32> to vector<8x128xf32>
    %8 = arith.addf %5, %7 : vector<8x128xf32>
    %c0_6 = arith.constant 0 : index
    %c0_7 = arith.constant 0 : index
    %9 = vector.load %arg5[%c0_6, %c0_7] : memref<8x128xf32, #tpu.memory_space<vmem>>, vector<8x128xf32>
    tpu.vector_store %arg5[%c0_6, %c0_7], %8 {strides = array<i32>} : memref<8x128xf32, #tpu.memory_space<vmem>>, vector<8x128xf32>,
    %c2_i32 = arith.constant 2 : i32
    %10 = arith.cmpi slt, %arg1, %c2_i32 : i32
    %11 = arith.extui %10 : i1 to i32
    %c0_i32_8 = arith.constant 0 : i32
    %12 = arith.cmpi ne, %11, %c0_i32_8 : i32
    scf.if %12 {
      %cst_13 = arith.constant dense<0.000000e+00> : vector<128xf32>
      %19 = vector.multi_reduction <add>, %8, %cst_13 [0] : vector<8x128xf32> to vector<128xf32>
      %20 = vector.shape_cast %19 : vector<128xf32> to vector<1x128xf32>
      %cst_14 = arith.constant 1.250000e-01 : f32
      %21 = vector.broadcast %cst_14 : f32 to vector<1x128xf32>
      %22 = arith.mulf %20, %21 : vector<1x128xf32>
      %23 = vector.broadcast %22 : vector<1x128xf32> to vector<8x128xf32>
      %24 = arith.subf %8, %23 : vector<8x128xf32>
      %25 = arith.mulf %24, %24 : vector<8x128xf32>
      %cst_15 = arith.constant dense<0.000000e+00> : vector<128xf32>
      %26 = vector.multi_reduction <add>, %25, %cst_15 [0] : vector<8x128xf32> to vector<128xf32>
      %27 = vector.shape_cast %26 : vector<128xf32> to vector<1x128xf32>
      %c8_i32 = arith.constant 8 : i32
      %28 = arith.muli %arg1, %c8_i32 : i32
      %29 = arith.sitofp %28 : i32 to f32
      %c0_16 = arith.constant 0 : index
      %c0_17 = arith.constant 0 : index
      %30 = vector.load %arg8[%c0_16, %c0_17] : memref<1x128xf32, #tpu.memory_space<vmem>>, vector<1x128xf32>
      %31 = arith.subf %22, %30 : vector<1x128xf32>
      %cst_18 = arith.constant 8.000000e+00 : f32
      %32 = arith.addf %29, %cst_18 : f32
      %c0_19 = arith.constant 0 : index
      %c0_20 = arith.constant 0 : index
      %33 = vector.load %arg8[%c0_19, %c0_20] : memref<1x128xf32, #tpu.memory_space<vmem>>, vector<1x128xf32>
      %cst_21 = arith.constant 8.000000e+00 : f32
      %34 = arith.divf %cst_21, %32 : f32
      %35 = vector.broadcast %34 : f32 to vector<1x128xf32>
      %36 = arith.mulf %31, %35 : vector<1x128xf32>
      %37 = arith.addf %33, %36 : vector<1x128xf32>
      %c0_22 = arith.constant 0 : index
      %c0_23 = arith.constant 0 : index
      %38 = vector.load %arg8[%c0_22, %c0_23] : memref<1x128xf32, #tpu.memory_space<vmem>>, vector<1x128xf32>
      tpu.vector_store %arg8[%c0_22, %c0_23], %37 {strides = array<i32>} : memref<1x128xf32, #tpu.memory_space<vmem>>, vector<1x128xf32>,
      %c0_24 = arith.constant 0 : index
      %c0_25 = arith.constant 0 : index
      %39 = vector.load %arg9[%c0_24, %c0_25] : memref<1x128xf32, #tpu.memory_space<vmem>>, vector<1x128xf32>
      %40 = arith.addf %39, %27 : vector<1x128xf32>
      %41 = arith.mulf %31, %31 : vector<1x128xf32>
      %cst_26 = arith.constant 8.000000e+00 : f32
      %42 = arith.mulf %29, %cst_26 : f32
      %43 = arith.divf %42, %32 : f32
      %44 = vector.broadcast %43 : f32 to vector<1x128xf32>
      %45 = arith.mulf %41, %44 : vector<1x128xf32>
      %46 = arith.addf %40, %45 : vector<1x128xf32>
      %c0_27 = arith.constant 0 : index
      %c0_28 = arith.constant 0 : index
      %47 = vector.load %arg9[%c0_27, %c0_28] : memref<1x128xf32, #tpu.memory_space<vmem>>, vector<1x128xf32>
      tpu.vector_store %arg9[%c0_27, %c0_28], %46 {strides = array<i32>} : memref<1x128xf32, #tpu.memory_space<vmem>>, vector<1x128xf32>,
    } else {
    }
    %c2_i32_9 = arith.constant 2 : i32
    %13 = arith.cmpi eq, %arg1, %c2_i32_9 : i32
    %14 = arith.extui %13 : i1 to i32
    %c0_i32_10 = arith.constant 0 : i32
    %15 = arith.cmpi ne, %14, %c0_i32_10 : i32
    scf.if %15 {
      %19 = tpu.iota {dimensions = array<i32: 0>} : vector<8x1xi32>
      %c4_i32 = arith.constant 4 : i32
      %20 = vector.broadcast %c4_i32 : i32 to vector<8x1xi32>
      %21 = arith.cmpi slt, %19, %20 : vector<8x1xi32>
      %22 = arith.extui %21 : vector<8x1xi1> to vector<8x1xi32>
      %23 = arith.sitofp %22 : vector<8x1xi32> to vector<8x1xf32>
      %24 = vector.broadcast %23 : vector<8x1xf32> to vector<8x128xf32>
      %25 = arith.mulf %8, %24 : vector<8x128xf32>
      %cst_13 = arith.constant dense<0.000000e+00> : vector<128xf32>
      %26 = vector.multi_reduction <add>, %25, %cst_13 [0] : vector<8x128xf32> to vector<128xf32>
      %27 = vector.shape_cast %26 : vector<128xf32> to vector<1x128xf32>
      %cst_14 = arith.constant 2.500000e-01 : f32
      %28 = vector.broadcast %cst_14 : f32 to vector<1x128xf32>
      %29 = arith.mulf %27, %28 : vector<1x128xf32>
      %30 = vector.broadcast %29 : vector<1x128xf32> to vector<8x128xf32>
      %31 = arith.subf %8, %30 : vector<8x128xf32>
      %32 = vector.broadcast %23 : vector<8x1xf32> to vector<8x128xf32>
      %33 = arith.mulf %31, %32 : vector<8x128xf32>
      %34 = arith.mulf %33, %33 : vector<8x128xf32>
      %cst_15 = arith.constant dense<0.000000e+00> : vector<128xf32>
      %35 = vector.multi_reduction <add>, %34, %cst_15 [0] : vector<8x128xf32> to vector<128xf32>
      %36 = vector.shape_cast %35 : vector<128xf32> to vector<1x128xf32>
      %c0_16 = arith.constant 0 : index
      %c0_17 = arith.constant 0 : index
      %37 = vector.load %arg8[%c0_16, %c0_17] : memref<1x128xf32, #tpu.memory_space<vmem>>, vector<1x128xf32>
      %38 = arith.subf %29, %37 : vector<1x128xf32>
      %c0_18 = arith.constant 0 : index
      %c0_19 = arith.constant 0 : index
      %39 = vector.load %arg8[%c0_18, %c0_19] : memref<1x128xf32, #tpu.memory_space<vmem>>, vector<1x128xf32>
      %cst_20 = arith.constant 2.000000e-01 : f32
      %40 = vector.broadcast %cst_20 : f32 to vector<1x128xf32>
      %41 = arith.mulf %38, %40 : vector<1x128xf32>
      %42 = arith.addf %39, %41 : vector<1x128xf32>
      %c0_21 = arith.constant 0 : index
      %c0_22 = arith.constant 0 : index
      %43 = vector.load %arg8[%c0_21, %c0_22] : memref<1x128xf32, #tpu.memory_space<vmem>>, vector<1x128xf32>
      tpu.vector_store %arg8[%c0_21, %c0_22], %42 {strides = array<i32>} : memref<1x128xf32, #tpu.memory_space<vmem>>, vector<1x128xf32>,
      %c0_23 = arith.constant 0 : index
      %c0_24 = arith.constant 0 : index
      %44 = vector.load %arg9[%c0_23, %c0_24] : memref<1x128xf32, #tpu.memory_space<vmem>>, vector<1x128xf32>
      %45 = arith.addf %44, %36 : vector<1x128xf32>
      %46 = arith.mulf %38, %38 : vector<1x128xf32>
      %cst_25 = arith.constant 3.200000e+00 : f32
      %47 = vector.broadcast %cst_25 : f32 to vector<1x128xf32>
      %48 = arith.mulf %46, %47 : vector<1x128xf32>
      %49 = arith.addf %45, %48 : vector<1x128xf32>
      %c0_26 = arith.constant 0 : index
      %c0_27 = arith.constant 0 : index
      %50 = vector.load %arg9[%c0_26, %c0_27] : memref<1x128xf32, #tpu.memory_space<vmem>>, vector<1x128xf32>
      tpu.vector_store %arg9[%c0_26, %c0_27], %49 {strides = array<i32>} : memref<1x128xf32, #tpu.memory_space<vmem>>, vector<1x128xf32>,
    } else {
    }
    %c2_i32_11 = arith.constant 2 : i32
    %16 = arith.cmpi eq, %arg1, %c2_i32_11 : i32
    %17 = arith.extui %16 : i1 to i32
    %c0_i32_12 = arith.constant 0 : i32
    %18 = arith.cmpi ne, %17, %c0_i32_12 : i32
    scf.if %18 {
      %c0_13 = arith.constant 0 : index
      %c0_14 = arith.constant 0 : index
      %19 = vector.load %arg8[%c0_13, %c0_14] : memref<1x128xf32, #tpu.memory_space<vmem>>, vector<1x128xf32>
      %c0_15 = arith.constant 0 : index
      %c0_16 = arith.constant 0 : index
      %20 = vector.load %arg6[%c0_15, %c0_16] : memref<1x128xf32, #tpu.memory_space<vmem>>, vector<1x128xf32>
      tpu.vector_store %arg6[%c0_15, %c0_16], %19 {strides = array<i32>} : memref<1x128xf32, #tpu.memory_space<vmem>>, vector<1x128xf32>,
      %c0_17 = arith.constant 0 : index
      %c0_18 = arith.constant 0 : index
      %21 = vector.load %arg9[%c0_17, %c0_18] : memref<1x128xf32, #tpu.memory_space<vmem>>, vector<1x128xf32>
      %cst_19 = arith.constant 5.000000e-02 : f32
      %22 = vector.broadcast %cst_19 : f32 to vector<1x128xf32>
      %23 = arith.mulf %21, %22 : vector<1x128xf32>
      %c0_20 = arith.constant 0 : index
      %c0_21 = arith.constant 0 : index
      %24 = vector.load %arg7[%c0_20, %c0_21] : memref<1x128xf32, #tpu.memory_space<vmem>>, vector<1x128xf32>
      tpu.vector_store %arg7[%c0_20, %c0_21], %23 {strides = array<i32>} : memref<1x128xf32, #tpu.memory_space<vmem>>, vector<1x128xf32>,
    } else {
    }
    return
  }
  func.func @transform_0(%arg0: i32, %arg1: i32) -> (i32, i32) {
    %c0_i32 = arith.constant 0 : i32
    %c0_i32_0 = arith.constant 0 : i32
    return %arg1, %c0_i32 : i32, i32
  }
  func.func @transform_1(%arg0: i32, %arg1: i32) -> (i32, i32) {
    %c0_i32 = arith.constant 0 : i32
    %c0_i32_0 = arith.constant 0 : i32
    return %c0_i32, %arg0 : i32, i32
  }
  func.func @transform_2(%arg0: i32, %arg1: i32) -> (i32, i32) {
    %c0_i32 = arith.constant 0 : i32
    %c0_i32_0 = arith.constant 0 : i32
    return %c0_i32, %arg0 : i32, i32
  }
  func.func @transform_3(%arg0: i32, %arg1: i32) -> (i32, i32) {
    %c0_i32 = arith.constant 0 : i32
    return %arg1, %arg0 : i32, i32
  }
  func.func @transform_4(%arg0: i32, %arg1: i32) -> (i32, i32) {
    %c0_i32 = arith.constant 0 : i32
    %c0_i32_0 = arith.constant 0 : i32
    return %c0_i32, %arg0 : i32, i32
  }
  func.func @transform_5(%arg0: i32, %arg1: i32) -> (i32, i32) {
    %c0_i32 = arith.constant 0 : i32
    %c0_i32_0 = arith.constant 0 : i32
    return %c0_i32, %arg0 : i32, i32
  }
}

module attributes {stable_mosaic.version = 11 : i64} {
  func.func @_affine_kernel(%arg0: i32, %arg1: memref<8x256xf32, #tpu.memory_space<vmem>>, %arg2: memref<1x256xf32, #tpu.memory_space<vmem>>, %arg3: memref<1x256xf32, #tpu.memory_space<vmem>>, %arg4: memref<8x256xf32, #tpu.memory_space<vmem>>) attributes {dimension_semantics = [#tpu.dimension_semantics<parallel>], iteration_bounds = array<i64: 3>, scalar_prefetch = 0 : i64, scratch_operands = 0 : i64, tpu.core_type = #tpu.core_type<tc>, window_params = [{transform_indices = @transform_0, window_bounds = array<i64: 8, 256>}, {pipeline_mode = #tpu.pipeline_mode<synchronous>, transform_indices = @transform_1, window_bounds = array<i64: 1, 256>}, {pipeline_mode = #tpu.pipeline_mode<synchronous>, transform_indices = @transform_2, window_bounds = array<i64: 1, 256>}, {transform_indices = @transform_3, window_bounds = array<i64: 8, 256>}]} {
    %c0 = arith.constant 0 : index
    %c0_0 = arith.constant 0 : index
    %0 = vector.load %arg1[%c0, %c0_0] : memref<8x256xf32, #tpu.memory_space<vmem>>, vector<8x256xf32>
    %c0_1 = arith.constant 0 : index
    %c0_2 = arith.constant 0 : index
    %1 = vector.load %arg2[%c0_1, %c0_2] : memref<1x256xf32, #tpu.memory_space<vmem>>, vector<1x256xf32>
    %2 = vector.broadcast %1 : vector<1x256xf32> to vector<8x256xf32>
    %3 = arith.mulf %0, %2 : vector<8x256xf32>
    %c0_3 = arith.constant 0 : index
    %c0_4 = arith.constant 0 : index
    %4 = vector.load %arg3[%c0_3, %c0_4] : memref<1x256xf32, #tpu.memory_space<vmem>>, vector<1x256xf32>
    %5 = vector.broadcast %4 : vector<1x256xf32> to vector<8x256xf32>
    %6 = arith.addf %3, %5 : vector<8x256xf32>
    %c0_5 = arith.constant 0 : index
    %c0_6 = arith.constant 0 : index
    %7 = vector.load %arg4[%c0_5, %c0_6] : memref<8x256xf32, #tpu.memory_space<vmem>>, vector<8x256xf32>
    tpu.vector_store %arg4[%c0_5, %c0_6], %6 {strides = array<i32>} : memref<8x256xf32, #tpu.memory_space<vmem>>, vector<8x256xf32>,
    return
  }
  func.func @transform_0(%arg0: i32) -> (i32, i32) {
    %c0_i32 = arith.constant 0 : i32
    %c0_i32_0 = arith.constant 0 : i32
    return %arg0, %c0_i32 : i32, i32
  }
  func.func @transform_1(%arg0: i32) -> (i32, i32) {
    %c0_i32 = arith.constant 0 : i32
    %c0_i32_0 = arith.constant 0 : i32
    %c0_i32_1 = arith.constant 0 : i32
    return %c0_i32, %c0_i32_0 : i32, i32
  }
  func.func @transform_2(%arg0: i32) -> (i32, i32) {
    %c0_i32 = arith.constant 0 : i32
    %c0_i32_0 = arith.constant 0 : i32
    %c0_i32_1 = arith.constant 0 : i32
    return %c0_i32, %c0_i32_0 : i32, i32
  }
  func.func @transform_3(%arg0: i32) -> (i32, i32) {
    %c0_i32 = arith.constant 0 : i32
    %c0_i32_0 = arith.constant 0 : i32
    return %arg0, %c0_i32 : i32, i32
  }
}

</mosaic_0001>

<bundles_post_ra>
// kernel: protein_multilabel_forward.4
= control target key start
LH: loop header
LB: loop body
LE: loop exit
PB: predicated region body
PF: predicated region fallthrough
CT: control target
= control target key end

     0   :  { %s1297_s0 = inlined_call_operand.vmem [shape: f32[24,128], index: 0, kind: input, shape index: {}]   ;;  %s1298_s1 = inlined_call_operand.vmem [shape: f32[128,512], index: 1, kind: input, shape index: {}]   ;;  %s1299_s2 = inlined_call_operand.vmem [shape: f32[1,512], index: 2, kind: input, shape index: {}]   ;;  %s1300_s3 = inlined_call_operand.vmem [shape: f32[24,512], index: 3, kind: output, shape index: {0}]   ;;  %s1301_s4 = inlined_call_operand.vmem [shape: f32[1,512], index: 4, kind: output, shape index: {1}]   ;;  %s1302_s5 = inlined_call_operand.vmem [shape: f32[1,512], index: 5, kind: output, shape index: {2}]  }
   0x1   :  { %1304 = sst [smem:[#allocation7_spill]] %s1298_s1 }
   0x2   :  { %s1026_s18 = smov 0   ;;  %s1028_s19 = smov 0  }
   0x3   :  { %s1030_s20 = smov 0   ;;  %s1032_s21 = smov 0  }
   0x4   :  { %s1034_s22 = smov 0   ;;  %s1036_s23 = smov 0  }
   0x5   :  { %s1038_s24 = smov 0  }
   0x6 LB: > { %s25_s25 = sadd.s32 1, %s984_s22  ;;  %s28_s26 = sadd.s32 1, %s988_s23  ;;  %s992_s24 = sphi %s1038_s24, %s16_s24   ;;  %s988_s23 = sphi %s1036_s23, %s1317_s23   ;;  %s984_s22 = sphi %s1034_s22, %s1316_s22   ;;  %s980_s21 = sphi %s1032_s21, %s1315_s21   ;;  %s976_s20 = sphi %s1030_s20, %s1314_s20   ;;  %s972_s19 = sphi %s1028_s19, %s1313_s19   ;;  %s968_s18 = sphi %s1026_s18, %s1312_s18  }
   0x7   : > { %p26_p0 = scmp.ge.s32.totalorder %s25_s25, 3  ;;  %p68_p1 = scmp.ne.s32.totalorder %s972_s19, %s968_s18 }
   0x8   : > { %p69_p2 = scmp.eq.s32.totalorder %s992_s24, 0  ;;  %s61_s28 = sadd.s32 1, %s972_s19 }
   0x9   : > { %s1319_s25 = smov (%p26_p0, %s25_s25), 0  ;;  %s1321_s26 = smov (!%p26_p0, %s28_s26), %s988_s23 }
   0xa   : > { %1305 = sst [smem:[#allocation5_spill]] %s1319_s25  ;;  %p70_p3 = por %p69_p2, %p68_p1 }
   0xb   : > { %p30_p4 = scmp.ge.s32.totalorder %s1321_s26, 2  ;;  %p855_p6 = scmp.ge.s32.totalorder %s992_s24, 6 }
   0xd   : > { %s1323_s26 = smov (%p30_p4, %s1321_s26), 0  ;;  %200 = sbr.rel (%p855_p6) target bundleno = 60 (0x3c), region = 16 }
   0xe   : > { %1306 = sst [smem:[#allocation6_spill]] %s1323_s26  ;;  %s58_s27 = ssub.s32 %s988_s23, %s1323_s26 }
   0xf   : > { %p59_p5 = scmp.eq.s32.totalorder %s58_s27, 0 }
  0x11   : > { %s1075_s29 = scalar_select %p59_p5, %s972_s19, %s61_s28  }
  0x12   : > { %210 = sbr.rel (!%p70_p3) target bundleno = 60 (0x3c), region = 24  ;;  %s212_s30 = sand.u32 (%p70_p3), 1, %s972_s19  }
  0x13   : > { %s875_s6 = sshll.u32 (%p70_p3), %s988_s23, 4  ;;  %s856_s7 = sshll.u32 (%p70_p3), %s212_s30, 8 }
  0x14   : > { %s1307_s1 = sld [smem:[#allocation7_spill]] (%p70_p3)  ;;  %s1088_s11 = scalar_lea.vmem (%p70_p3), [#allocation4], %s856_s7 }
  0x1a   : > { %s1083_s10 = scalar_lea.vmem %s1307_s1, %s875_s6 }
  0x1b   : > { %v230_v0 = vld [vmem:[%s1083_s10] sm:$0xff]  ;;  %v232_v1 = vld [vmem:[%s1083_s10 + $0x8] sm:$0xff] }
  0x1c   : > { %v234_v2 = vld [vmem:[%s1083_s10 + $0x20] sm:$0xff]  ;;  %231 = vst [vmem:[%s1088_s11] sm:$0xff] %v230_v0  ;;  %v236_v3 = vld [vmem:[%s1083_s10 + $0x28] sm:$0xff] }
  0x1d   : > { %233 = vst [vmem:[%s1088_s11 + $0x8] sm:$0xff] %v232_v1  ;;  %v238_v4 = vld [vmem:[%s1083_s10 + $0x40] sm:$0xff]  ;;  %v240_v5 = vld [vmem:[%s1083_s10 + $0x48] sm:$0xff] }
  0x1e   : > { %235 = vst [vmem:[%s1088_s11 + $0x10] sm:$0xff] %v234_v2  ;;  %v242_v6 = vld [vmem:[%s1083_s10 + $0x60] sm:$0xff]  ;;  %v244_v7 = vld [vmem:[%s1083_s10 + $0x68] sm:$0xff] }
  0x1f   : > { %237 = vst [vmem:[%s1088_s11 + $0x18] sm:$0xff] %v236_v3  ;;  %v246_v8 = vld [vmem:[%s1083_s10 + $0x80] sm:$0xff]  ;;  %v248_v9 = vld [vmem:[%s1083_s10 + $0x88] sm:$0xff] }
  0x20   : > { %239 = vst [vmem:[%s1088_s11 + $0x20] sm:$0xff] %v238_v4  ;;  %v250_v10 = vld [vmem:[%s1083_s10 + $0xa0] sm:$0xff]  ;;  %v252_v11 = vld [vmem:[%s1083_s10 + $0xa8] sm:$0xff] }
  0x21   : > { %241 = vst [vmem:[%s1088_s11 + $0x28] sm:$0xff] %v240_v5  ;;  %v254_v12 = vld [vmem:[%s1083_s10 + $0xc0] sm:$0xff]  ;;  %v256_v13 = vld [vmem:[%s1083_s10 + $0xc8] sm:$0xff] }
  0x22   : > { %243 = vst [vmem:[%s1088_s11 + $0x30] sm:$0xff] %v242_v6  ;;  %v258_v14 = vld [vmem:[%s1083_s10 + $0xe0] sm:$0xff]  ;;  %v260_v15 = vld [vmem:[%s1083_s10 + $0xe8] sm:$0xff] }
  0x23   : > { %245 = vst [vmem:[%s1088_s11 + $0x38] sm:$0xff] %v244_v7  ;;  %v262_v16 = vld [vmem:[%s1083_s10 + $0x100] sm:$0xff]  ;;  %v264_v17 = vld [vmem:[%s1083_s10 + $0x108] sm:$0xff] }
  0x24   : > { %247 = vst [vmem:[%s1088_s11 + $0x40] sm:$0xff] %v246_v8  ;;  %v266_v18 = vld [vmem:[%s1083_s10 + $0x120] sm:$0xff]  ;;  %v268_v19 = vld [vmem:[%s1083_s10 + $0x128] sm:$0xff] }
  0x25   : > { %249 = vst [vmem:[%s1088_s11 + $0x48] sm:$0xff] %v248_v9  ;;  %v270_v20 = vld [vmem:[%s1083_s10 + $0x140] sm:$0xff]  ;;  %v272_v21 = vld [vmem:[%s1083_s10 + $0x148] sm:$0xff] }
  0x26   : > { %251 = vst [vmem:[%s1088_s11 + $0x50] sm:$0xff] %v250_v10  ;;  %v274_v22 = vld [vmem:[%s1083_s10 + $0x160] sm:$0xff]  ;;  %v276_v23 = vld [vmem:[%s1083_s10 + $0x168] sm:$0xff] }
  0x27   : > { %253 = vst [vmem:[%s1088_s11 + $0x58] sm:$0xff] %v252_v11  ;;  %v278_v24 = vld [vmem:[%s1083_s10 + $0x180] sm:$0xff]  ;;  %v280_v25 = vld [vmem:[%s1083_s10 + $0x188] sm:$0xff] }
  0x28   : > { %255 = vst [vmem:[%s1088_s11 + $0x60] sm:$0xff] %v254_v12  ;;  %v282_v26 = vld [vmem:[%s1083_s10 + $0x1a0] sm:$0xff]  ;;  %v284_v27 = vld [vmem:[%s1083_s10 + $0x1a8] sm:$0xff] }
  0x29   : > { %257 = vst [vmem:[%s1088_s11 + $0x68] sm:$0xff] %v256_v13  ;;  %v286_v28 = vld [vmem:[%s1083_s10 + $0x1c0] sm:$0xff]  ;;  %v288_v29 = vld [vmem:[%s1083_s10 + $0x1c8] sm:$0xff] }
  0x2a   : > { %259 = vst [vmem:[%s1088_s11 + $0x70] sm:$0xff] %v258_v14  ;;  %v290_v30 = vld [vmem:[%s1083_s10 + $0x1e0] sm:$0xff]  ;;  %v292_v31 = vld [vmem:[%s1083_s10 + $0x1e8] sm:$0xff] }
  0x2b   : > { %261 = vst [vmem:[%s1088_s11 + $0x78] sm:$0xff] %v260_v15 }
  0x2c   : > { %263 = vst [vmem:[%s1088_s11 + $0x80] sm:$0xff] %v262_v16 }
  0x2d   : > { %265 = vst [vmem:[%s1088_s11 + $0x88] sm:$0xff] %v264_v17 }
  0x2e   : > { %267 = vst [vmem:[%s1088_s11 + $0x90] sm:$0xff] %v266_v18 }
  0x2f   : > { %269 = vst [vmem:[%s1088_s11 + $0x98] sm:$0xff] %v268_v19 }
  0x30   : > { %271 = vst [vmem:[%s1088_s11 + $0xa0] sm:$0xff] %v270_v20 }
  0x31   : > { %273 = vst [vmem:[%s1088_s11 + $0xa8] sm:$0xff] %v272_v21 }
  0x32   : > { %275 = vst [vmem:[%s1088_s11 + $0xb0] sm:$0xff] %v274_v22 }
  0x33   : > { %277 = vst [vmem:[%s1088_s11 + $0xb8] sm:$0xff] %v276_v23 }
  0x34   : > { %279 = vst [vmem:[%s1088_s11 + $0xc0] sm:$0xff] %v278_v24 }
  0x35   : > { %281 = vst [vmem:[%s1088_s11 + $0xc8] sm:$0xff] %v280_v25 }
  0x36   : > { %283 = vst [vmem:[%s1088_s11 + $0xd0] sm:$0xff] %v282_v26 }
  0x37   : > { %285 = vst [vmem:[%s1088_s11 + $0xd8] sm:$0xff] %v284_v27 }
  0x38   : > { %287 = vst [vmem:[%s1088_s11 + $0xe0] sm:$0xff] %v286_v28 }
  0x39   : > { %289 = vst [vmem:[%s1088_s11 + $0xe8] sm:$0xff] %v288_v29 }
  0x3a   : > { %291 = vst [vmem:[%s1088_s11 + $0xf0] sm:$0xff] %v290_v30 }
  0x3b   : > { %293 = vst [vmem:[%s1088_s11 + $0xf8] sm:$0xff] %v292_v31 }
  0x3c PF: > { %p859_p7 = scmp.ge.s32.totalorder %s992_s24, 1  ;;  %p306_p8 = scmp.lt.s32.totalorder %s992_s24, 7 }
  0x3e   : > { %p307_p9 = pnand %p859_p7, %p306_p8 }
  0x3f   : > { %s313_s12 = sand.u32 (!%p307_p9), 1, %s968_s18   ;;  %p360_p10 = scmp.lt.s32.totalorder (!%p307_p9), %s976_s20, 2 }
  0x40   : > { %310 = sbr.rel (%p307_p9) target bundleno = 395 (0x18b), region = 51  ;;  %s860_s13 = sshll.u32 (!%p307_p9), %s313_s12, 8 }
  0x41   : > { %s862_s14 = sshll.u32 (!%p307_p9), %s980_s21, 1  ;;  %p868_p12 = scmp.ne.s32.totalorder (!%p307_p9), %s976_s20, 0 }
  0x42   : > { %p366_p11 = scmp.lt.s32.totalorder (!%p307_p9), %s862_s14, 3 }
  0x45   : > { %s361_s15 = scalar_select %p360_p10, %s976_s20, 2 }
  0x46   : > { %s1325_s14 = smov (!%p366_p11, %s862_s14), 3 }
  0x47   : > { %s861_s16 = sshll.u32 %s361_s15, 3  ;;  %s864_s17 = sshll.u32 %s361_s15, 2 }
  0x48   : > { %s1162_s30 = scalar_lea.vmem %s1297_s0, %s861_s16  ;;  %s368_s7 = scalar_lea.vmem %s1299_s2, %s1325_s14 }
  0x49   : > { %s376_s21 = sadd.s32 %s864_s17, %s1325_s14  ;;  %s383_s10 = scalar_lea.vmem %s1301_s4, %s1325_s14 }
  0x4a   : > { %s865_s11 = sshll.u32 %s376_s21, 3  ;;  %s388_s26 = scalar_lea.vmem %s1302_s5, %s1325_s14 }
  0x4b   : > { %s1180_s27 = scalar_lea.vmem %s1300_s3, %s865_s11  ;;  %s1182_s16 = scalar_lea.vmem [#allocation4], %s860_s13 }
  0x4c   : > { %393 = sbr.rel (%p868_p12) target bundleno = 86 (0x56), region = 59 }
  0x51   : > { %v394_v32 = vlaneseq  ;;  %v994_v33 = vmov 0.0  }
  0x53   : > { %vm396_vm0 = vcmp.lt.s32.totalorder %v394_v32, 256 }
  0x54   : > { %398 = vst.msk [vmem:[#allocation2] sm:$0x3] %vm396_vm0, %v994_v33 }
  0x55   : > { %399 = vst.msk [vmem:[#allocation3] sm:$0x3] %vm396_vm0, %v994_v33 }
  0x56 PF: > { %v431_v34 = vld [vmem:[%s1182_s16 + $0xf0] sm:$0xff]  ;;  %v432_v35 = vld [vmem:[%s1182_s16 + $0xf8] sm:$0xff]  ;;  %v429_v36 = vld [vmem:[%s1182_s16 + $0xe0] sm:$0xff]  ;;  %p869_p13 = scmp.ge.s32.totalorder %s976_s20, 2 }
  0x57   : > { %439 = vmatpush.msra.mxu0 %v431_v34  ;;  %459 = vmatpush.msra.mxu1 %v432_v35  ;;  %v430_v37 = vld [vmem:[%s1182_s16 + $0xe8] sm:$0xff]  ;;  %v427_v38 = vld [vmem:[%s1182_s16 + $0xd0] sm:$0xff]  ;;  %v428_v39 = vld [vmem:[%s1182_s16 + $0xd8] sm:$0xff]  ;;  %s870_s13 = sshll.u32 (!%p869_p13), %s976_s20, 3 }
  0x58   : > { %v425_v40 = vld [vmem:[%s1182_s16 + $0xc0] sm:$0xff]  ;;  %v426_v41 = vld [vmem:[%s1182_s16 + $0xc8] sm:$0xff]  ;;  %v423_v42 = vld [vmem:[%s1182_s16 + $0xb0] sm:$0xff]  ;;  %s1233_s17 = scvt.s32.f32 (!%p869_p13), %s870_s13 }
  0x59   : > { %440 = vmatpush.msra.mxu0 %v429_v36  ;;  %460 = vmatpush.msra.mxu1 %v430_v37  ;;  %v424_v43 = vld [vmem:[%s1182_s16 + $0xb8] sm:$0xff]  ;;  %v421_v44 = vld [vmem:[%s1182_s16 + $0xa0] sm:$0xff]  ;;  %v422_v45 = vld [vmem:[%s1182_s16 + $0xa8] sm:$0xff] }
  0x5a   : > { %v419_v46 = vld [vmem:[%s1182_s16 + $0x90] sm:$0xff]  ;;  %v420_v47 = vld [vmem:[%s1182_s16 + $0x98] sm:$0xff]  ;;  %v417_v48 = vld [vmem:[%s1182_s16 + $0x80] sm:$0xff]  ;;  %s527_s28 = sadd.f32 (!%p869_p13), 8.0, %s1233_s17 }
  0x5b   : > { %441 = vmatpush.msra.mxu0 %v427_v38  ;;  %461 = vmatpush.msra.mxu1 %v428_v39  ;;  %v418_v49 = vld [vmem:[%s1182_s16 + $0x88] sm:$0xff]  ;;  %v415_v50 = vld [vmem:[%s1182_s16 + $0x70] sm:$0xff]  ;;  %v416_v51 = vld [vmem:[%s1182_s16 + $0x78] sm:$0xff] }
  0x5c   : > { %v413_v52 = vld [vmem:[%s1182_s16 + $0x60] sm:$0xff]  ;;  %v414_v53 = vld [vmem:[%s1182_s16 + $0x68] sm:$0xff]  ;;  %v411_v54 = vld [vmem:[%s1182_s16 + $0x50] sm:$0xff] }
  0x5d   : > { %442 = vmatpush.msra.mxu0 %v425_v40  ;;  %462 = vmatpush.msra.mxu1 %v426_v41  ;;  %v412_v55 = vld [vmem:[%s1182_s16 + $0x58] sm:$0xff]  ;;  %v409_v56 = vld [vmem:[%s1182_s16 + $0x40] sm:$0xff]  ;;  %v410_v57 = vld [vmem:[%s1182_s16 + $0x48] sm:$0xff] }
  0x5e   : > { %v407_v58 = vld [vmem:[%s1182_s16 + $0x30] sm:$0xff]  ;;  %v408_v59 = vld [vmem:[%s1182_s16 + $0x38] sm:$0xff]  ;;  %v405_v60 = vld [vmem:[%s1182_s16 + $0x20] sm:$0xff] }
  0x5f   : > { %443 = vmatpush.msra.mxu0 %v423_v42  ;;  %463 = vmatpush.msra.mxu1 %v424_v43  ;;  %v406_v61 = vld [vmem:[%s1182_s16 + $0x28] sm:$0xff]  ;;  %v403_v62 = vld [vmem:[%s1182_s16 + $0x10] sm:$0xff]  ;;  %v404_v63 = vld [vmem:[%s1182_s16 + $0x18] sm:$0xff] }
  0x60   : > { %v401_v0 = vld [vmem:[%s1182_s16] sm:$0xff]  ;;  %v402_v1 = vld [vmem:[%s1182_s16 + $0x8] sm:$0xff]  ;;  %v433_v3 = vld [vmem:[%s368_s7] sm:$0x3] }
  0x61   : > { %444 = vmatpush.msra.mxu0 %v421_v44  ;;  %464 = vmatpush.msra.mxu1 %v422_v45  ;;  %v400_v2 = vld [vmem:[%s1162_s30] sm:$0xff]  ;;  %v435_v4 = vperm.slane %v433_v3, 0  ;;  %v436_v5 = vperm.slane %v433_v3, 1  ;;  %s569_s30 = smul.f32 (!%p869_p13), 8.0, %s1233_s17 }
  0x63   : > { %445 = vmatpush.msra.mxu0 %v419_v46  ;;  %465 = vmatpush.msra.mxu1 %v420_v47 }
  0x65   : > { %446 = vmatpush.msra.mxu0 %v417_v48  ;;  %466 = vmatpush.msra.mxu1 %v418_v49 }
  0x67   : > { %447 = vmatpush.msra.mxu0 %v415_v50  ;;  %467 = vmatpush.msra.mxu1 %v416_v51 }
  0x69   : > { %448 = vmatpush.msra.mxu0 %v413_v52  ;;  %468 = vmatpush.msra.mxu1 %v414_v53 }
  0x6b   : > { %449 = vmatpush.msra.mxu0 %v411_v54  ;;  %469 = vmatpush.msra.mxu1 %v412_v55 }
  0x6d   : > { %450 = vmatpush.msra.mxu0 %v409_v56  ;;  %470 = vmatpush.msra.mxu1 %v410_v57 }
  0x6f   : > { %451 = vmatpush.msra.mxu0 %v407_v58  ;;  %471 = vmatpush.msra.mxu1 %v408_v59 }
  0x71   : > { %452 = vmatpush.msra.mxu0 %v405_v60  ;;  %472 = vmatpush.msra.mxu1 %v406_v61 }
  0x73   : > { %453 = vmatpush.msra.mxu0 %v403_v62  ;;  %473 = vmatpush.msra.mxu1 %v404_v63 }
  0x75   : > { %454 = vmatpush.msra.mxu0 %v401_v0  ;;  %474 = vmatpush.msra.mxu1 %v402_v1 }
  0x76   : > { %455 = vmatmul.f32.vlgmr.msra.gmra.mxu0 %v400_v2  ;;  %475 = vmatmul.f32.vlgmr.msra.gmra.mxu1 %v400_v2 }
  0xf3   : > { %v456_v6 = vpop.f32.mrf.mxu0  ;;  %v476_v7 = vpop.f32.mrf.mxu1 }
  0xf4   : > { %v457_v8 = vadd.f32 %v456_v6, %v435_v4  ;;  %v477_v9 = vadd.f32 %v476_v7, %v436_v5 }
  0xf5   : > { %486 = sbr.rel (%p869_p13) target bundleno = 330 (0x14a), region = 63 }
  0xf6   : > { %v1223_v10 = vmax.f32 %v457_v8, 0.0  ;;  %v1225_v11 = vmax.f32 %v477_v9, 0.0 }
  0xf8   : > { %481 = vst [vmem:[%s1180_s27] sm:$0xff] %v1223_v10 }
  0xf9   : > { %482 = vst [vmem:[%s1180_s27 + $0x8] sm:$0xff] %v1225_v11 }
  0xfa   : > { %v528_v12 = vstv %s527_s28  ;;  %v493_v13 = vrot.slane %v1225_v11, 4  ;;  %v487_v17 = vrot.slane %v1223_v10, 4  ;;  %v519_v48 = vld [vmem:[#allocation2] sm:$0x3]  ;;  %vm551_vm5 = vcmask 1040384  }
  0xfb   : > { %936 = vrcp.f32 %v528_v12  ;;  %v540_v16 = vand.u32 2147483648, %v528_v12  ;;  %vm534_vm1 = vweird.f32 %v528_v12  ;;  %v538_v20 = vand.u32 2147483647, %v528_v12  ;;  %v560_v61 = vld [vmem:[#allocation3] sm:$0x3] }
  0xfc   : > { %v494_v18 = vadd.f32 %v493_v13, %v1225_v11  ;;  %v488_v24 = vadd.f32 %v487_v17, %v1223_v10  ;;  %v522_v51 = vperm.slane %v519_v48, 1  ;;  %v521_v54 = vperm.slane %v519_v48, 0 }
  0xfd   : > { %v541_v22 = vor.u32 1.1754944e-38, %v540_v16  ;;  %vm539_vm4 = vcmp.eq.f32.partialorder %v538_v20, 8.507059e+37  ;;  %v555_v1 = vlaneseq }
  0xfe   : > { %v495_v25 = vrot.slane %v494_v18, 2  ;;  %v489_v28 = vrot.slane %v488_v24, 2 }
  0xff   : > { %vm557_vm6 = vcmp.lt.s32.totalorder %v555_v1, 256 }
 0x100   : > { %v496_v29 = vadd.f32 %v495_v25, %v494_v18  ;;  %v490_v30 = vadd.f32 %v489_v28, %v488_v24 }
 0x101   : > { %v937_v14 = vpop.eup %936 }
 0x102   : > { %v530_v15 = vmul.f32 %v937_v14, %v528_v12  ;;  %vm535_vm2 = vweird.f32 %v937_v14  ;;  %v497_v31 = vrot.slane %v496_v29, 1  ;;  %v491_v32 = vrot.slane %v490_v30, 1 }
 0x103   : > { %vm536_vm3 = vmor %vm534_vm1, %vm535_vm2 }
 0x104   : > { %v531_v19 = vsub.f32 1.0, %v530_v15  ;;  %v498_v33 = vadd.f32 %v497_v31, %v496_v29  ;;  %v492_v34 = vadd.f32 %v491_v32, %v490_v30 }
 0x106   : > { %v532_v21 = vmul.f32 %v937_v14, %v531_v19  ;;  %v500_v35 = vmul.f32 0.125, %v498_v33  ;;  %v499_v36 = vmul.f32 0.125, %v492_v34 }
 0x108   : > { %v533_v23 = vadd.f32 %v937_v14, %v532_v21  ;;  %v502_v37 = vsub.f32 %v1225_v11, %v500_v35  ;;  %v501_v38 = vsub.f32 %v1223_v10, %v499_v36  ;;  %v526_v55 = vsub.f32 %v500_v35, %v522_v51 }
 0x109   : > { %v525_v57 = vsub.f32 %v499_v36, %v521_v54 }
 0x10a   : > { %v537_v26 = vsel %vm536_vm3, %v937_v14, %v533_v23  ;;  %v504_v39 = vmul.f32 %v502_v37, %v502_v37  ;;  %v503_v40 = vmul.f32 %v501_v38, %v501_v38  ;;  %v568_v59 = vmul.f32 %v526_v55, %v526_v55 }
 0x10b   : > { %v542_v27 = vsel %vm539_vm4, %v541_v22, %v537_v26  ;;  %v567_v63 = vmul.f32 %v525_v57, %v525_v57 }
 0x10c   : > { %876 = vpush %v542_v27  ;;  %v511_v41 = vrot.slane %v504_v39, 4  ;;  %v505_v42 = vrot.slane %v503_v40, 4 }
 0x10e   : > { %v512_v43 = vadd.f32 %v511_v41, %v504_v39  ;;  %v506_v44 = vadd.f32 %v505_v42, %v503_v40 }
 0x110   : > { %v513_v45 = vrot.slane %v512_v43, 2  ;;  %v507_v46 = vrot.slane %v506_v44, 2 }
 0x112   : > { %v514_v47 = vadd.f32 %v513_v45, %v512_v43  ;;  %v508_v49 = vadd.f32 %v507_v46, %v506_v44 }
 0x114   : > { %v515_v50 = vrot.slane %v514_v47, 1  ;;  %v509_v52 = vrot.slane %v508_v49, 1 }
 0x116   : > { %v516_v53 = vadd.f32 %v515_v50, %v514_v47  ;;  %v510_v56 = vadd.f32 %v509_v52, %v508_v49 }
 0x118   : > { %v563_v58 = vrot.slane %v516_v53, 7 }
 0x11a   : > { %v564_v62 = vsel %vm551_vm5, %v510_v56, %v563_v58 }
 0x11b   : > { %v566_v6 = vadd.f32 %v564_v62, %v560_v61 }
 0x13d   : > { %s877_s6 = spop %876 }
 0x13e   : > { %s544_s18 = smul.f32 8.0, %s877_s6 }
 0x13f   : > { %s586_s7 = smul.f32 %s877_s6, %s569_s30 }
 0x140   : > { %v545_v60 = vstv %s544_s18 }
 0x141   : > { %v547_v0 = vmul.f32 %v545_v60, %v526_v55  ;;  %v587_v2 = vstv %s586_s7  ;;  %v546_v4 = vmul.f32 %v545_v60, %v525_v57 }
 0x142   : > { %v589_v3 = vmul.f32 %v587_v2, %v568_v59  ;;  %v588_v7 = vmul.f32 %v587_v2, %v567_v63 }
 0x143   : > { %v550_v5 = vrot.slane %v547_v0, 7 }
 0x144   : > { %v592_v8 = vrot.slane %v589_v3, 7 }
 0x145   : > { %v552_v9 = vsel %vm551_vm5, %v546_v4, %v550_v5 }
 0x146   : > { %v554_v12 = vadd.f32 %v552_v9, %v519_v48  ;;  %v593_v13 = vsel %vm551_vm5, %v588_v7, %v592_v8 }
 0x147   : > { %v595_v14 = vadd.f32 %v593_v13, %v566_v6 }
 0x148   : > { %559 = vst.msk [vmem:[#allocation2] sm:$0x3] %vm557_vm6, %v554_v12 }
 0x149   : > { %596 = vst.msk [vmem:[#allocation3] sm:$0x3] %vm557_vm6, %v595_v14 }
 0x14a PF: > { %p871_p0 = scmp.ne.s32.totalorder %s976_s20, 2 }
 0x14c   : > { %600 = sbr.rel (%p871_p0) target bundleno = 395 (0x18b), region = 67 }
 0x151   : > { %v601_v15 = vlaneseq  ;;  %v995_v17 = vmov 0.0   ;;  %v640_v31 = vld [vmem:[#allocation2] sm:$0x3]  ;;  %vm653_vm8 = vcmask 1040384   ;;  %v662_v4 = vld [vmem:[#allocation3] sm:$0x3] }
 0x152   : > { %v642_v34 = vperm.slane %v640_v31, 0  ;;  %v643_v35 = vperm.slane %v640_v31, 1 }
 0x153   : > { %v602_v16 = vshrl.u32 %v601_v15, 7  ;;  %vm1252_vm9 = vcmp.lt.s32.totalorder %v601_v15, 256 }
 0x155   : > { %vm603_vm7 = vcmp.lt.s32.totalorder %v602_v16, 4 }
 0x156   : > { %v872_v18 = vsel %vm603_vm7, 1.0, %v995_v17 }
 0x157   : > { %v606_v19 = vmul.f32 %v872_v18, %v1223_v10  ;;  %v607_v20 = vmul.f32 %v872_v18, %v1225_v11 }
 0x159   : > { %v608_v21 = vrot.slane %v606_v19, 4  ;;  %v614_v22 = vrot.slane %v607_v20, 4 }
 0x15b   : > { %v609_v23 = vadd.f32 %v608_v21, %v606_v19  ;;  %v615_v24 = vadd.f32 %v614_v22, %v607_v20 }
 0x15d   : > { %v610_v25 = vrot.slane %v609_v23, 2  ;;  %v616_v26 = vrot.slane %v615_v24, 2 }
 0x15f   : > { %v611_v27 = vadd.f32 %v610_v25, %v609_v23  ;;  %v617_v28 = vadd.f32 %v616_v26, %v615_v24 }
 0x161   : > { %v612_v29 = vrot.slane %v611_v27, 1  ;;  %v618_v30 = vrot.slane %v617_v28, 1 }
 0x163   : > { %v613_v32 = vadd.f32 %v612_v29, %v611_v27  ;;  %v619_v33 = vadd.f32 %v618_v30, %v617_v28 }
 0x165   : > { %v620_v36 = vmul.f32 0.25, %v613_v32  ;;  %v621_v37 = vmul.f32 0.25, %v619_v33 }
 0x167   : > { %v622_v38 = vsub.f32 %v1223_v10, %v620_v36  ;;  %v623_v39 = vsub.f32 %v1225_v11, %v621_v37  ;;  %v646_v40 = vsub.f32 %v620_v36, %v642_v34  ;;  %v647_v41 = vsub.f32 %v621_v37, %v643_v35 }
 0x169   : > { %v624_v42 = vmul.f32 %v872_v18, %v622_v38  ;;  %v625_v43 = vmul.f32 %v872_v18, %v623_v39  ;;  %v648_v44 = vmul.f32 0.2, %v646_v40  ;;  %v649_v45 = vmul.f32 0.2, %v647_v41 }
 0x16a   : > { %v670_v54 = vmul.f32 %v647_v41, %v647_v41  ;;  %v669_v59 = vmul.f32 %v646_v40, %v646_v40 }
 0x16b   : > { %v626_v46 = vmul.f32 %v624_v42, %v624_v42  ;;  %v627_v47 = vmul.f32 %v625_v43, %v625_v43  ;;  %v652_v48 = vrot.slane %v649_v45, 7 }
 0x16c   : > { %v672_v60 = vmul.f32 3.2, %v670_v54  ;;  %v671_v1 = vmul.f32 3.2, %v669_v59 }
 0x16d   : > { %v628_v49 = vrot.slane %v626_v46, 4  ;;  %v634_v50 = vrot.slane %v627_v47, 4  ;;  %v654_v51 = vsel %vm653_vm8, %v648_v44, %v652_v48 }
 0x16e   : > { %v656_v10 = vadd.f32 %v654_v51, %v640_v31  ;;  %v675_v2 = vrot.slane %v672_v60, 7 }
 0x16f   : > { %v629_v52 = vadd.f32 %v628_v49, %v626_v46  ;;  %v635_v53 = vadd.f32 %v634_v50, %v627_v47 }
 0x170   : > { %661 = vst.msk [vmem:[#allocation2] sm:$0x3] %vm1252_vm9, %v656_v10  ;;  %v676_v7 = vsel %vm653_vm8, %v671_v1, %v675_v2 }
 0x171   : > { %v630_v55 = vrot.slane %v629_v52, 2  ;;  %v636_v56 = vrot.slane %v635_v53, 2 }
 0x173   : > { %v631_v57 = vadd.f32 %v630_v55, %v629_v52  ;;  %v637_v58 = vadd.f32 %v636_v56, %v635_v53 }
 0x175   : > { %v632_v61 = vrot.slane %v631_v57, 1  ;;  %v638_v62 = vrot.slane %v637_v58, 1 }
 0x177   : > { %v633_v63 = vadd.f32 %v632_v61, %v631_v57  ;;  %v639_v0 = vadd.f32 %v638_v62, %v637_v58  ;;  %v680_v3 = vld [vmem:[#allocation2] sm:$0x3] }
 0x178   : > { %681 = vst.msk [vmem:[%s383_s10] sm:$0x3] %vm1252_vm9, %v680_v3 }
 0x179   : > { %v665_v5 = vrot.slane %v639_v0, 7 }
 0x17b   : > { %v666_v6 = vsel %vm653_vm8, %v633_v63, %v665_v5 }
 0x17c   : > { %v668_v8 = vadd.f32 %v666_v6, %v662_v4 }
 0x17e   : > { %v678_v9 = vadd.f32 %v676_v7, %v668_v8 }
 0x180   : > { %679 = vst.msk [vmem:[#allocation3] sm:$0x3] %vm1252_vm9, %v678_v9 }
 0x187   : > { %v682_v12 = vld [vmem:[#allocation3] sm:$0x3] }
 0x188   : > { %v683_v13 = vmul.f32 0.05, %v682_v12 }
 0x18a   : > { %684 = vst.msk [vmem:[%s388_s26] sm:$0x3] %vm1252_vm9, %v683_v13 }
 0x18b PF: > { %s16_s24 = sadd.s32 1, %s992_s24   ;;  %s1310_s10 = sld [smem:[#allocation5_spill]] }
 0x18c   : > { %p13_p1 = scmp.ge.s32.totalorder %s16_s24, 8   ;;  %s1311_s11 = sld [smem:[#allocation6_spill]] }
 0x18d   : > { %s1312_s18 = smov %s972_s19  ;;  %s1313_s19 = smov %s1075_s29 }
 0x18e   : > { %s1314_s20 = smov %s984_s22  ;;  %s1315_s21 = smov %s988_s23 }
 0x18f   :  { %15 = sbr.rel (!%p13_p1) target bundleno = 6 (0x6), region = 132 }
 0x191   : > { %s1316_s22 = smov %s1310_s10 }
 0x192   : > { %s1317_s23 = smov %s1311_s11 }

// kernel: protein_multilabel_forward.5
= control target key start
LH: loop header
LB: loop body
LE: loop exit
PB: predicated region body
PF: predicated region fallthrough
CT: control target
= control target key end

     0   :  { %s2004_s0 = inlined_call_operand.vmem [shape: f32[24,512], index: 0, kind: input, shape index: {}]   ;;  %s2005_s1 = inlined_call_operand.vmem [shape: f32[512,512], index: 1, kind: input, shape index: {}]   ;;  %s2006_s2 = inlined_call_operand.vmem [shape: f32[1,512], index: 2, kind: input, shape index: {}]   ;;  %s2007_s3 = inlined_call_operand.vmem [shape: f32[24,512], index: 3, kind: output, shape index: {0}]   ;;  %s2008_s4 = inlined_call_operand.vmem [shape: f32[1,512], index: 4, kind: output, shape index: {1}]   ;;  %s2009_s5 = inlined_call_operand.vmem [shape: f32[1,512], index: 5, kind: output, shape index: {2}]  }
   0x1   :  { %2011 = sst [smem:[#allocation7_spill]] %s2005_s1 }
   0x2   :  { %s1442_s18 = smov 0   ;;  %s1444_s19 = smov 0  }
   0x3   :  { %s1446_s20 = smov 0   ;;  %s1448_s21 = smov 0  }
   0x4   :  { %s1450_s22 = smov 0   ;;  %s1452_s23 = smov 0  }
   0x5   :  { %s1454_s24 = smov 0  }
   0x6 LB: > { %s25_s25 = sadd.s32 1, %s1400_s22  ;;  %s28_s26 = sadd.s32 1, %s1404_s23  ;;  %s1408_s24 = sphi %s1454_s24, %s16_s24   ;;  %s1404_s23 = sphi %s1452_s23, %s2024_s23   ;;  %s1400_s22 = sphi %s1450_s22, %s2023_s22   ;;  %s1396_s21 = sphi %s1448_s21, %s2022_s21   ;;  %s1392_s20 = sphi %s1446_s20, %s2021_s20   ;;  %s1388_s19 = sphi %s1444_s19, %s2020_s19   ;;  %s1384_s18 = sphi %s1442_s18, %s2019_s18  }
   0x7   : > { %p26_p0 = scmp.ge.s32.totalorder %s25_s25, 3  ;;  %p68_p1 = scmp.ne.s32.totalorder %s1388_s19, %s1384_s18 }
   0x8   : > { %p69_p2 = scmp.eq.s32.totalorder %s1408_s24, 0  ;;  %s61_s28 = sadd.s32 1, %s1388_s19 }
   0x9   : > { %s2026_s25 = smov (%p26_p0, %s25_s25), 0  ;;  %s2028_s26 = smov (!%p26_p0, %s28_s26), %s1404_s23 }
   0xa   : > { %2012 = sst [smem:[#allocation5_spill]] %s2026_s25  ;;  %p70_p3 = por %p69_p2, %p68_p1 }
   0xb   : > { %p30_p4 = scmp.ge.s32.totalorder %s2028_s26, 2  ;;  %p1269_p6 = scmp.ge.s32.totalorder %s1408_s24, 6 }
   0xd   : > { %s2030_s26 = smov (%p30_p4, %s2028_s26), 0  ;;  %200 = sbr.rel (%p1269_p6) target bundleno = 156 (0x9c), region = 16 }
   0xe   : > { %2013 = sst [smem:[#allocation6_spill]] %s2030_s26  ;;  %s58_s27 = ssub.s32 %s1404_s23, %s2030_s26 }
   0xf   : > { %p59_p5 = scmp.eq.s32.totalorder %s58_s27, 0 }
  0x11   : > { %s1491_s29 = scalar_select %p59_p5, %s1388_s19, %s61_s28  }
  0x12   : > { %211 = sbr.rel (!%p70_p3) target bundleno = 156 (0x9c), region = 24  ;;  %s213_s30 = sand.u32 (%p70_p3), 1, %s1388_s19  }
  0x13   : > { %s1290_s6 = sshll.u32 (%p70_p3), %s1404_s23, 4  ;;  %s1270_s7 = sshll.u32 (%p70_p3), %s213_s30, 10 }
  0x14   : > { %s2014_s1 = sld [smem:[#allocation7_spill]] (%p70_p3)  ;;  %s1504_s11 = scalar_lea.vmem (%p70_p3), [#allocation4], %s1270_s7 }
  0x1a   : > { %s1499_s10 = scalar_lea.vmem %s2014_s1, %s1290_s6 }
  0x1b   : > { %v231_v0 = vld [vmem:[%s1499_s10] sm:$0xff]  ;;  %v233_v1 = vld [vmem:[%s1499_s10 + $0x8] sm:$0xff] }
  0x1c   : > { %v235_v2 = vld [vmem:[%s1499_s10 + $0x20] sm:$0xff]  ;;  %232 = vst [vmem:[%s1504_s11] sm:$0xff] %v231_v0  ;;  %v237_v3 = vld [vmem:[%s1499_s10 + $0x28] sm:$0xff] }
  0x1d   : > { %234 = vst [vmem:[%s1504_s11 + $0x8] sm:$0xff] %v233_v1  ;;  %v239_v4 = vld [vmem:[%s1499_s10 + $0x40] sm:$0xff]  ;;  %v241_v5 = vld [vmem:[%s1499_s10 + $0x48] sm:$0xff] }
  0x1e   : > { %236 = vst [vmem:[%s1504_s11 + $0x10] sm:$0xff] %v235_v2  ;;  %v243_v6 = vld [vmem:[%s1499_s10 + $0x60] sm:$0xff]  ;;  %v245_v7 = vld [vmem:[%s1499_s10 + $0x68] sm:$0xff] }
  0x1f   : > { %238 = vst [vmem:[%s1504_s11 + $0x18] sm:$0xff] %v237_v3  ;;  %v247_v8 = vld [vmem:[%s1499_s10 + $0x80] sm:$0xff]  ;;  %v249_v9 = vld [vmem:[%s1499_s10 + $0x88] sm:$0xff] }
  0x20   : > { %240 = vst [vmem:[%s1504_s11 + $0x20] sm:$0xff] %v239_v4  ;;  %v251_v10 = vld [vmem:[%s1499_s10 + $0xa0] sm:$0xff]  ;;  %v253_v11 = vld [vmem:[%s1499_s10 + $0xa8] sm:$0xff] }
  0x21   : > { %242 = vst [vmem:[%s1504_s11 + $0x28] sm:$0xff] %v241_v5  ;;  %v255_v12 = vld [vmem:[%s1499_s10 + $0xc0] sm:$0xff]  ;;  %v257_v13 = vld [vmem:[%s1499_s10 + $0xc8] sm:$0xff] }
  0x22   : > { %244 = vst [vmem:[%s1504_s11 + $0x30] sm:$0xff] %v243_v6  ;;  %v259_v14 = vld [vmem:[%s1499_s10 + $0xe0] sm:$0xff]  ;;  %v261_v15 = vld [vmem:[%s1499_s10 + $0xe8] sm:$0xff] }
  0x23   : > { %246 = vst [vmem:[%s1504_s11 + $0x38] sm:$0xff] %v245_v7  ;;  %v263_v16 = vld [vmem:[%s1499_s10 + $0x100] sm:$0xff]  ;;  %v265_v17 = vld [vmem:[%s1499_s10 + $0x108] sm:$0xff] }
  0x24   : > { %248 = vst [vmem:[%s1504_s11 + $0x40] sm:$0xff] %v247_v8  ;;  %v267_v18 = vld [vmem:[%s1499_s10 + $0x120] sm:$0xff]  ;;  %v269_v19 = vld [vmem:[%s1499_s10 + $0x128] sm:$0xff] }
  0x25   : > { %250 = vst [vmem:[%s1504_s11 + $0x48] sm:$0xff] %v249_v9  ;;  %v271_v20 = vld [vmem:[%s1499_s10 + $0x140] sm:$0xff]  ;;  %v273_v21 = vld [vmem:[%s1499_s10 + $0x148] sm:$0xff] }
  0x26   : > { %252 = vst [vmem:[%s1504_s11 + $0x50] sm:$0xff] %v251_v10  ;;  %v275_v22 = vld [vmem:[%s1499_s10 + $0x160] sm:$0xff]  ;;  %v277_v23 = vld [vmem:[%s1499_s10 + $0x168] sm:$0xff] }
  0x27   : > { %254 = vst [vmem:[%s1504_s11 + $0x58] sm:$0xff] %v253_v11  ;;  %v279_v24 = vld [vmem:[%s1499_s10 + $0x180] sm:$0xff]  ;;  %v281_v25 = vld [vmem:[%s1499_s10 + $0x188] sm:$0xff] }
  0x28   : > { %256 = vst [vmem:[%s1504_s11 + $0x60] sm:$0xff] %v255_v12  ;;  %v283_v26 = vld [vmem:[%s1499_s10 + $0x1a0] sm:$0xff]  ;;  %v285_v27 = vld [vmem:[%s1499_s10 + $0x1a8] sm:$0xff] }
  0x29   : > { %258 = vst [vmem:[%s1504_s11 + $0x68] sm:$0xff] %v257_v13  ;;  %v287_v28 = vld [vmem:[%s1499_s10 + $0x1c0] sm:$0xff]  ;;  %v289_v29 = vld [vmem:[%s1499_s10 + $0x1c8] sm:$0xff] }
  0x2a   : > { %260 = vst [vmem:[%s1504_s11 + $0x70] sm:$0xff] %v259_v14  ;;  %v291_v30 = vld [vmem:[%s1499_s10 + $0x1e0] sm:$0xff]  ;;  %v293_v31 = vld [vmem:[%s1499_s10 + $0x1e8] sm:$0xff] }
  0x2b   : > { %262 = vst [vmem:[%s1504_s11 + $0x78] sm:$0xff] %v261_v15  ;;  %v295_v32 = vld [vmem:[%s1499_s10 + $0x200] sm:$0xff]  ;;  %v297_v33 = vld [vmem:[%s1499_s10 + $0x208] sm:$0xff] }
  0x2c   : > { %264 = vst [vmem:[%s1504_s11 + $0x80] sm:$0xff] %v263_v16  ;;  %v299_v34 = vld [vmem:[%s1499_s10 + $0x220] sm:$0xff]  ;;  %v301_v35 = vld [vmem:[%s1499_s10 + $0x228] sm:$0xff] }
  0x2d   : > { %266 = vst [vmem:[%s1504_s11 + $0x88] sm:$0xff] %v265_v17  ;;  %v303_v36 = vld [vmem:[%s1499_s10 + $0x240] sm:$0xff]  ;;  %v305_v37 = vld [vmem:[%s1499_s10 + $0x248] sm:$0xff] }
  0x2e   : > { %268 = vst [vmem:[%s1504_s11 + $0x90] sm:$0xff] %v267_v18  ;;  %v307_v38 = vld [vmem:[%s1499_s10 + $0x260] sm:$0xff]  ;;  %v309_v39 = vld [vmem:[%s1499_s10 + $0x268] sm:$0xff] }
  0x2f   : > { %270 = vst [vmem:[%s1504_s11 + $0x98] sm:$0xff] %v269_v19  ;;  %v311_v40 = vld [vmem:[%s1499_s10 + $0x280] sm:$0xff]  ;;  %v313_v41 = vld [vmem:[%s1499_s10 + $0x288] sm:$0xff] }
  0x30   : > { %272 = vst [vmem:[%s1504_s11 + $0xa0] sm:$0xff] %v271_v20  ;;  %v315_v42 = vld [vmem:[%s1499_s10 + $0x2a0] sm:$0xff]  ;;  %v317_v43 = vld [vmem:[%s1499_s10 + $0x2a8] sm:$0xff] }
  0x31   : > { %274 = vst [vmem:[%s1504_s11 + $0xa8] sm:$0xff] %v273_v21  ;;  %v319_v44 = vld [vmem:[%s1499_s10 + $0x2c0] sm:$0xff]  ;;  %v321_v45 = vld [vmem:[%s1499_s10 + $0x2c8] sm:$0xff] }
  0x32   : > { %276 = vst [vmem:[%s1504_s11 + $0xb0] sm:$0xff] %v275_v22  ;;  %v323_v46 = vld [vmem:[%s1499_s10 + $0x2e0] sm:$0xff]  ;;  %v325_v47 = vld [vmem:[%s1499_s10 + $0x2e8] sm:$0xff] }
  0x33   : > { %278 = vst [vmem:[%s1504_s11 + $0xb8] sm:$0xff] %v277_v23  ;;  %v327_v48 = vld [vmem:[%s1499_s10 + $0x300] sm:$0xff]  ;;  %v329_v49 = vld [vmem:[%s1499_s10 + $0x308] sm:$0xff] }
  0x34   : > { %280 = vst [vmem:[%s1504_s11 + $0xc0] sm:$0xff] %v279_v24  ;;  %v331_v50 = vld [vmem:[%s1499_s10 + $0x320] sm:$0xff]  ;;  %v333_v51 = vld [vmem:[%s1499_s10 + $0x328] sm:$0xff] }
  0x35   : > { %282 = vst [vmem:[%s1504_s11 + $0xc8] sm:$0xff] %v281_v25  ;;  %v335_v52 = vld [vmem:[%s1499_s10 + $0x340] sm:$0xff]  ;;  %v337_v53 = vld [vmem:[%s1499_s10 + $0x348] sm:$0xff] }
  0x36   : > { %284 = vst [vmem:[%s1504_s11 + $0xd0] sm:$0xff] %v283_v26  ;;  %v339_v54 = vld [vmem:[%s1499_s10 + $0x360] sm:$0xff]  ;;  %v341_v55 = vld [vmem:[%s1499_s10 + $0x368] sm:$0xff] }
  0x37   : > { %286 = vst [vmem:[%s1504_s11 + $0xd8] sm:$0xff] %v285_v27  ;;  %v343_v56 = vld [vmem:[%s1499_s10 + $0x380] sm:$0xff]  ;;  %v345_v57 = vld [vmem:[%s1499_s10 + $0x388] sm:$0xff] }
  0x38   : > { %288 = vst [vmem:[%s1504_s11 + $0xe0] sm:$0xff] %v287_v28  ;;  %v347_v58 = vld [vmem:[%s1499_s10 + $0x3a0] sm:$0xff]  ;;  %v349_v59 = vld [vmem:[%s1499_s10 + $0x3a8] sm:$0xff] }
  0x39   : > { %290 = vst [vmem:[%s1504_s11 + $0xe8] sm:$0xff] %v289_v29  ;;  %v351_v60 = vld [vmem:[%s1499_s10 + $0x3c0] sm:$0xff]  ;;  %v353_v61 = vld [vmem:[%s1499_s10 + $0x3c8] sm:$0xff] }
  0x3a   : > { %292 = vst [vmem:[%s1504_s11 + $0xf0] sm:$0xff] %v291_v30  ;;  %v355_v62 = vld [vmem:[%s1499_s10 + $0x3e0] sm:$0xff]  ;;  %v357_v63 = vld [vmem:[%s1499_s10 + $0x3e8] sm:$0xff] }
  0x3b   : > { %294 = vst [vmem:[%s1504_s11 + $0xf8] sm:$0xff] %v293_v31  ;;  %v359_v0 = vld [vmem:[%s1499_s10 + $0x400] sm:$0xff]  ;;  %v361_v1 = vld [vmem:[%s1499_s10 + $0x408] sm:$0xff] }
  0x3c   : > { %296 = vst [vmem:[%s1504_s11 + $0x100] sm:$0xff] %v295_v32  ;;  %v363_v2 = vld [vmem:[%s1499_s10 + $0x420] sm:$0xff]  ;;  %v365_v3 = vld [vmem:[%s1499_s10 + $0x428] sm:$0xff] }
  0x3d   : > { %298 = vst [vmem:[%s1504_s11 + $0x108] sm:$0xff] %v297_v33  ;;  %v367_v4 = vld [vmem:[%s1499_s10 + $0x440] sm:$0xff]  ;;  %v369_v5 = vld [vmem:[%s1499_s10 + $0x448] sm:$0xff] }
  0x3e   : > { %300 = vst [vmem:[%s1504_s11 + $0x110] sm:$0xff] %v299_v34  ;;  %v371_v6 = vld [vmem:[%s1499_s10 + $0x460] sm:$0xff]  ;;  %v373_v7 = vld [vmem:[%s1499_s10 + $0x468] sm:$0xff] }
  0x3f   : > { %302 = vst [vmem:[%s1504_s11 + $0x118] sm:$0xff] %v301_v35  ;;  %v375_v8 = vld [vmem:[%s1499_s10 + $0x480] sm:$0xff]  ;;  %v377_v9 = vld [vmem:[%s1499_s10 + $0x488] sm:$0xff] }
  0x40   : > { %304 = vst [vmem:[%s1504_s11 + $0x120] sm:$0xff] %v303_v36  ;;  %v379_v10 = vld [vmem:[%s1499_s10 + $0x4a0] sm:$0xff]  ;;  %v381_v11 = vld [vmem:[%s1499_s10 + $0x4a8] sm:$0xff] }
  0x41   : > { %306 = vst [vmem:[%s1504_s11 + $0x128] sm:$0xff] %v305_v37  ;;  %v383_v12 = vld [vmem:[%s1499_s10 + $0x4c0] sm:$0xff]  ;;  %v385_v13 = vld [vmem:[%s1499_s10 + $0x4c8] sm:$0xff] }
  0x42   : > { %308 = vst [vmem:[%s1504_s11 + $0x130] sm:$0xff] %v307_v38  ;;  %v387_v14 = vld [vmem:[%s1499_s10 + $0x4e0] sm:$0xff]  ;;  %v389_v15 = vld [vmem:[%s1499_s10 + $0x4e8] sm:$0xff] }
  0x43   : > { %310 = vst [vmem:[%s1504_s11 + $0x138] sm:$0xff] %v309_v39  ;;  %v391_v16 = vld [vmem:[%s1499_s10 + $0x500] sm:$0xff]  ;;  %v393_v17 = vld [vmem:[%s1499_s10 + $0x508] sm:$0xff] }
  0x44   : > { %312 = vst [vmem:[%s1504_s11 + $0x140] sm:$0xff] %v311_v40  ;;  %v395_v18 = vld [vmem:[%s1499_s10 + $0x520] sm:$0xff]  ;;  %v397_v19 = vld [vmem:[%s1499_s10 + $0x528] sm:$0xff] }
  0x45   : > { %314 = vst [vmem:[%s1504_s11 + $0x148] sm:$0xff] %v313_v41  ;;  %v399_v20 = vld [vmem:[%s1499_s10 + $0x540] sm:$0xff]  ;;  %v401_v21 = vld [vmem:[%s1499_s10 + $0x548] sm:$0xff] }
  0x46   : > { %316 = vst [vmem:[%s1504_s11 + $0x150] sm:$0xff] %v315_v42  ;;  %v403_v22 = vld [vmem:[%s1499_s10 + $0x560] sm:$0xff]  ;;  %v405_v23 = vld [vmem:[%s1499_s10 + $0x568] sm:$0xff] }
  0x47   : > { %318 = vst [vmem:[%s1504_s11 + $0x158] sm:$0xff] %v317_v43  ;;  %v407_v24 = vld [vmem:[%s1499_s10 + $0x580] sm:$0xff]  ;;  %v409_v25 = vld [vmem:[%s1499_s10 + $0x588] sm:$0xff] }
  0x48   : > { %320 = vst [vmem:[%s1504_s11 + $0x160] sm:$0xff] %v319_v44  ;;  %v411_v26 = vld [vmem:[%s1499_s10 + $0x5a0] sm:$0xff]  ;;  %v413_v27 = vld [vmem:[%s1499_s10 + $0x5a8] sm:$0xff] }
  0x49   : > { %322 = vst [vmem:[%s1504_s11 + $0x168] sm:$0xff] %v321_v45  ;;  %v415_v28 = vld [vmem:[%s1499_s10 + $0x5c0] sm:$0xff]  ;;  %v417_v29 = vld [vmem:[%s1499_s10 + $0x5c8] sm:$0xff] }
  0x4a   : > { %324 = vst [vmem:[%s1504_s11 + $0x170] sm:$0xff] %v323_v46  ;;  %v419_v30 = vld [vmem:[%s1499_s10 + $0x5e0] sm:$0xff]  ;;  %v421_v31 = vld [vmem:[%s1499_s10 + $0x5e8] sm:$0xff] }
  0x4b   : > { %326 = vst [vmem:[%s1504_s11 + $0x178] sm:$0xff] %v325_v47  ;;  %v423_v32 = vld [vmem:[%s1499_s10 + $0x600] sm:$0xff]  ;;  %v425_v33 = vld [vmem:[%s1499_s10 + $0x608] sm:$0xff] }
  0x4c   : > { %328 = vst [vmem:[%s1504_s11 + $0x180] sm:$0xff] %v327_v48  ;;  %v427_v34 = vld [vmem:[%s1499_s10 + $0x620] sm:$0xff]  ;;  %v429_v35 = vld [vmem:[%s1499_s10 + $0x628] sm:$0xff] }
  0x4d   : > { %330 = vst [vmem:[%s1504_s11 + $0x188] sm:$0xff] %v329_v49  ;;  %v431_v36 = vld [vmem:[%s1499_s10 + $0x640] sm:$0xff]  ;;  %v433_v37 = vld [vmem:[%s1499_s10 + $0x648] sm:$0xff] }
  0x4e   : > { %332 = vst [vmem:[%s1504_s11 + $0x190] sm:$0xff] %v331_v50  ;;  %v435_v38 = vld [vmem:[%s1499_s10 + $0x660] sm:$0xff]  ;;  %v437_v39 = vld [vmem:[%s1499_s10 + $0x668] sm:$0xff] }
  0x4f   : > { %334 = vst [vmem:[%s1504_s11 + $0x198] sm:$0xff] %v333_v51  ;;  %v439_v40 = vld [vmem:[%s1499_s10 + $0x680] sm:$0xff]  ;;  %v441_v41 = vld [vmem:[%s1499_s10 + $0x688] sm:$0xff] }
  0x50   : > { %336 = vst [vmem:[%s1504_s11 + $0x1a0] sm:$0xff] %v335_v52  ;;  %v443_v42 = vld [vmem:[%s1499_s10 + $0x6a0] sm:$0xff]  ;;  %v445_v43 = vld [vmem:[%s1499_s10 + $0x6a8] sm:$0xff] }
  0x51   : > { %338 = vst [vmem:[%s1504_s11 + $0x1a8] sm:$0xff] %v337_v53  ;;  %v447_v44 = vld [vmem:[%s1499_s10 + $0x6c0] sm:$0xff]  ;;  %v449_v45 = vld [vmem:[%s1499_s10 + $0x6c8] sm:$0xff] }
  0x52   : > { %340 = vst [vmem:[%s1504_s11 + $0x1b0] sm:$0xff] %v339_v54  ;;  %v451_v46 = vld [vmem:[%s1499_s10 + $0x6e0] sm:$0xff]  ;;  %v453_v47 = vld [vmem:[%s1499_s10 + $0x6e8] sm:$0xff] }
  0x53   : > { %342 = vst [vmem:[%s1504_s11 + $0x1b8] sm:$0xff] %v341_v55  ;;  %v455_v48 = vld [vmem:[%s1499_s10 + $0x700] sm:$0xff]  ;;  %v457_v49 = vld [vmem:[%s1499_s10 + $0x708] sm:$0xff] }
  0x54   : > { %344 = vst [vmem:[%s1504_s11 + $0x1c0] sm:$0xff] %v343_v56  ;;  %v459_v50 = vld [vmem:[%s1499_s10 + $0x720] sm:$0xff]  ;;  %v461_v51 = vld [vmem:[%s1499_s10 + $0x728] sm:$0xff] }
  0x55   : > { %346 = vst [vmem:[%s1504_s11 + $0x1c8] sm:$0xff] %v345_v57  ;;  %v463_v52 = vld [vmem:[%s1499_s10 + $0x740] sm:$0xff]  ;;  %v465_v53 = vld [vmem:[%s1499_s10 + $0x748] sm:$0xff] }
  0x56   : > { %348 = vst [vmem:[%s1504_s11 + $0x1d0] sm:$0xff] %v347_v58  ;;  %v467_v54 = vld [vmem:[%s1499_s10 + $0x760] sm:$0xff]  ;;  %v469_v55 = vld [vmem:[%s1499_s10 + $0x768] sm:$0xff] }
  0x57   : > { %350 = vst [vmem:[%s1504_s11 + $0x1d8] sm:$0xff] %v349_v59  ;;  %v471_v56 = vld [vmem:[%s1499_s10 + $0x780] sm:$0xff]  ;;  %v473_v57 = vld [vmem:[%s1499_s10 + $0x788] sm:$0xff] }
  0x58   : > { %352 = vst [vmem:[%s1504_s11 + $0x1e0] sm:$0xff] %v351_v60  ;;  %v475_v58 = vld [vmem:[%s1499_s10 + $0x7a0] sm:$0xff]  ;;  %v477_v59 = vld [vmem:[%s1499_s10 + $0x7a8] sm:$0xff] }
  0x59   : > { %354 = vst [vmem:[%s1504_s11 + $0x1e8] sm:$0xff] %v353_v61  ;;  %v479_v60 = vld [vmem:[%s1499_s10 + $0x7c0] sm:$0xff]  ;;  %v481_v61 = vld [vmem:[%s1499_s10 + $0x7c8] sm:$0xff] }
  0x5a   : > { %356 = vst [vmem:[%s1504_s11 + $0x1f0] sm:$0xff] %v355_v62  ;;  %v483_v62 = vld [vmem:[%s1499_s10 + $0x7e0] sm:$0xff] }
  0x5b   : > { %358 = vst [vmem:[%s1504_s11 + $0x1f8] sm:$0xff] %v357_v63  ;;  %v485_v63 = vld [vmem:[%s1499_s10 + $0x7e8] sm:$0xff] }
  0x5c   : > { %360 = vst [vmem:[%s1504_s11 + $0x200] sm:$0xff] %v359_v0 }
  0x5d   : > { %362 = vst [vmem:[%s1504_s11 + $0x208] sm:$0xff] %v361_v1 }
  0x5e   : > { %364 = vst [vmem:[%s1504_s11 + $0x210] sm:$0xff] %v363_v2 }
  0x5f   : > { %366 = vst [vmem:[%s1504_s11 + $0x218] sm:$0xff] %v365_v3 }
  0x60   : > { %368 = vst [vmem:[%s1504_s11 + $0x220] sm:$0xff] %v367_v4 }
  0x61   : > { %370 = vst [vmem:[%s1504_s11 + $0x228] sm:$0xff] %v369_v5 }
  0x62   : > { %372 = vst [vmem:[%s1504_s11 + $0x230] sm:$0xff] %v371_v6 }
  0x63   : > { %374 = vst [vmem:[%s1504_s11 + $0x238] sm:$0xff] %v373_v7 }
  0x64   : > { %376 = vst [vmem:[%s1504_s11 + $0x240] sm:$0xff] %v375_v8 }
  0x65   : > { %378 = vst [vmem:[%s1504_s11 + $0x248] sm:$0xff] %v377_v9 }
  0x66   : > { %380 = vst [vmem:[%s1504_s11 + $0x250] sm:$0xff] %v379_v10 }
  0x67   : > { %382 = vst [vmem:[%s1504_s11 + $0x258] sm:$0xff] %v381_v11 }
  0x68   : > { %384 = vst [vmem:[%s1504_s11 + $0x260] sm:$0xff] %v383_v12 }
  0x69   : > { %386 = vst [vmem:[%s1504_s11 + $0x268] sm:$0xff] %v385_v13 }
  0x6a   : > { %388 = vst [vmem:[%s1504_s11 + $0x270] sm:$0xff] %v387_v14 }
  0x6b   : > { %390 = vst [vmem:[%s1504_s11 + $0x278] sm:$0xff] %v389_v15 }
  0x6c   : > { %392 = vst [vmem:[%s1504_s11 + $0x280] sm:$0xff] %v391_v16 }
  0x6d   : > { %394 = vst [vmem:[%s1504_s11 + $0x288] sm:$0xff] %v393_v17 }
  0x6e   : > { %396 = vst [vmem:[%s1504_s11 + $0x290] sm:$0xff] %v395_v18 }
  0x6f   : > { %398 = vst [vmem:[%s1504_s11 + $0x298] sm:$0xff] %v397_v19 }
  0x70   : > { %400 = vst [vmem:[%s1504_s11 + $0x2a0] sm:$0xff] %v399_v20 }
  0x71   : > { %402 = vst [vmem:[%s1504_s11 + $0x2a8] sm:$0xff] %v401_v21 }
  0x72   : > { %404 = vst [vmem:[%s1504_s11 + $0x2b0] sm:$0xff] %v403_v22 }
  0x73   : > { %406 = vst [vmem:[%s1504_s11 + $0x2b8] sm:$0xff] %v405_v23 }
  0x74   : > { %408 = vst [vmem:[%s1504_s11 + $0x2c0] sm:$0xff] %v407_v24 }
  0x75   : > { %410 = vst [vmem:[%s1504_s11 + $0x2c8] sm:$0xff] %v409_v25 }
  0x76   : > { %412 = vst [vmem:[%s1504_s11 + $0x2d0] sm:$0xff] %v411_v26 }
  0x77   : > { %414 = vst [vmem:[%s1504_s11 + $0x2d8] sm:$0xff] %v413_v27 }
  0x78   : > { %416 = vst [vmem:[%s1504_s11 + $0x2e0] sm:$0xff] %v415_v28 }
  0x79   : > { %418 = vst [vmem:[%s1504_s11 + $0x2e8] sm:$0xff] %v417_v29 }
  0x7a   : > { %420 = vst [vmem:[%s1504_s11 + $0x2f0] sm:$0xff] %v419_v30 }
  0x7b   : > { %422 = vst [vmem:[%s1504_s11 + $0x2f8] sm:$0xff] %v421_v31 }
  0x7c   : > { %424 = vst [vmem:[%s1504_s11 + $0x300] sm:$0xff] %v423_v32 }
  0x7d   : > { %426 = vst [vmem:[%s1504_s11 + $0x308] sm:$0xff] %v425_v33 }
  0x7e   : > { %428 = vst [vmem:[%s1504_s11 + $0x310] sm:$0xff] %v427_v34 }
  0x7f   : > { %430 = vst [vmem:[%s1504_s11 + $0x318] sm:$0xff] %v429_v35 }
  0x80   : > { %432 = vst [vmem:[%s1504_s11 + $0x320] sm:$0xff] %v431_v36 }
  0x81   : > { %434 = vst [vmem:[%s1504_s11 + $0x328] sm:$0xff] %v433_v37 }
  0x82   : > { %436 = vst [vmem:[%s1504_s11 + $0x330] sm:$0xff] %v435_v38 }
  0x83   : > { %438 = vst [vmem:[%s1504_s11 + $0x338] sm:$0xff] %v437_v39 }
  0x84   : > { %440 = vst [vmem:[%s1504_s11 + $0x340] sm:$0xff] %v439_v40 }
  0x85   : > { %442 = vst [vmem:[%s1504_s11 + $0x348] sm:$0xff] %v441_v41 }
  0x86   : > { %444 = vst [vmem:[%s1504_s11 + $0x350] sm:$0xff] %v443_v42 }
  0x87   : > { %446 = vst [vmem:[%s1504_s11 + $0x358] sm:$0xff] %v445_v43 }
  0x88   : > { %448 = vst [vmem:[%s1504_s11 + $0x360] sm:$0xff] %v447_v44 }
  0x89   : > { %450 = vst [vmem:[%s1504_s11 + $0x368] sm:$0xff] %v449_v45 }
  0x8a   : > { %452 = vst [vmem:[%s1504_s11 + $0x370] sm:$0xff] %v451_v46 }
  0x8b   : > { %454 = vst [vmem:[%s1504_s11 + $0x378] sm:$0xff] %v453_v47 }
  0x8c   : > { %456 = vst [vmem:[%s1504_s11 + $0x380] sm:$0xff] %v455_v48 }
  0x8d   : > { %458 = vst [vmem:[%s1504_s11 + $0x388] sm:$0xff] %v457_v49 }
  0x8e   : > { %460 = vst [vmem:[%s1504_s11 + $0x390] sm:$0xff] %v459_v50 }
  0x8f   : > { %462 = vst [vmem:[%s1504_s11 + $0x398] sm:$0xff] %v461_v51 }
  0x90   : > { %464 = vst [vmem:[%s1504_s11 + $0x3a0] sm:$0xff] %v463_v52 }
  0x91   : > { %466 = vst [vmem:[%s1504_s11 + $0x3a8] sm:$0xff] %v465_v53 }
  0x92   : > { %468 = vst [vmem:[%s1504_s11 + $0x3b0] sm:$0xff] %v467_v54 }
  0x93   : > { %470 = vst [vmem:[%s1504_s11 + $0x3b8] sm:$0xff] %v469_v55 }
  0x94   : > { %472 = vst [vmem:[%s1504_s11 + $0x3c0] sm:$0xff] %v471_v56 }
  0x95   : > { %474 = vst [vmem:[%s1504_s11 + $0x3c8] sm:$0xff] %v473_v57 }
  0x96   : > { %476 = vst [vmem:[%s1504_s11 + $0x3d0] sm:$0xff] %v475_v58 }
  0x97   : > { %478 = vst [vmem:[%s1504_s11 + $0x3d8] sm:$0xff] %v477_v59 }
  0x98   : > { %480 = vst [vmem:[%s1504_s11 + $0x3e0] sm:$0xff] %v479_v60 }
  0x99   : > { %482 = vst [vmem:[%s1504_s11 + $0x3e8] sm:$0xff] %v481_v61 }
  0x9a   : > { %484 = vst [vmem:[%s1504_s11 + $0x3f0] sm:$0xff] %v483_v62 }
  0x9b   : > { %486 = vst [vmem:[%s1504_s11 + $0x3f8] sm:$0xff] %v485_v63 }
  0x9c PF: > { %p1273_p7 = scmp.ge.s32.totalorder %s1408_s24, 1  ;;  %p499_p8 = scmp.lt.s32.totalorder %s1408_s24, 7 }
  0x9e   : > { %p500_p9 = pnand %p1273_p7, %p499_p8 }
  0x9f   : > { %s506_s12 = sand.u32 (!%p500_p9), 1, %s1384_s18   ;;  %p554_p10 = scmp.lt.s32.totalorder (!%p500_p9), %s1392_s20, 2 }
  0xa0   : > { %503 = sbr.rel (%p500_p9) target bundleno = 532 (0x214), region = 51  ;;  %s1274_s13 = sshll.u32 (!%p500_p9), %s506_s12, 10 }
  0xa1   : > { %s1277_s14 = sshll.u32 (!%p500_p9), %s1396_s21, 1  ;;  %p1283_p12 = scmp.ne.s32.totalorder (!%p500_p9), %s1392_s20, 0 }
  0xa2   : > { %p561_p11 = scmp.lt.s32.totalorder (!%p500_p9), %s1277_s14, 3 }
  0xa5   : > { %s555_s15 = scalar_select %p554_p10, %s1392_s20, 2 }
  0xa6   : > { %s2032_s14 = smov (!%p561_p11, %s1277_s14), 3 }
  0xa7   : > { %s1291_s16 = sshll.u32 %s555_s15, 5  ;;  %s1279_s17 = sshll.u32 %s555_s15, 2 }
  0xa8   : > { %s1770_s30 = scalar_lea.vmem %s2004_s0, %s1291_s16  ;;  %s563_s7 = scalar_lea.vmem %s2006_s2, %s2032_s14 }
  0xa9   : > { %s571_s21 = sadd.s32 %s1279_s17, %s2032_s14  ;;  %s578_s10 = scalar_lea.vmem %s2008_s4, %s2032_s14 }
  0xaa   : > { %s1280_s11 = sshll.u32 %s571_s21, 3  ;;  %s583_s26 = scalar_lea.vmem %s2009_s5, %s2032_s14 }
  0xab   : > { %s1788_s27 = scalar_lea.vmem %s2007_s3, %s1280_s11  ;;  %s1790_s16 = scalar_lea.vmem [#allocation4], %s1274_s13 }
  0xac   : > { %588 = sbr.rel (%p1283_p12) target bundleno = 182 (0xb6), region = 59 }
  0xb1   : > { %v589_v0 = vlaneseq  ;;  %v1410_v1 = vmov 0.0  }
  0xb3   : > { %vm591_vm0 = vcmp.lt.s32.totalorder %v589_v0, 256 }
  0xb4   : > { %593 = vst.msk [vmem:[#allocation2] sm:$0x3] %vm591_vm0, %v1410_v1 }
  0xb5   : > { %594 = vst.msk [vmem:[#allocation3] sm:$0x3] %vm591_vm0, %v1410_v1 }
  0xb6 PF: > { %v693_v2 = vld [vmem:[%s1790_s16 + $0x2f0] sm:$0xff]  ;;  %v691_v4 = vld [vmem:[%s1790_s16 + $0x2e0] sm:$0xff]  ;;  %v694_v0 = vld [vmem:[%s1790_s16 + $0x2f8] sm:$0xff]  ;;  %p1284_p13 = scmp.ge.s32.totalorder %s1392_s20, 2 }
  0xb7   : > { %v629_v3 = vld [vmem:[%s1790_s16 + $0xf0] sm:$0xff]  ;;  %773 = vmatpush.msra.mxu2 %v693_v2  ;;  %v627_v6 = vld [vmem:[%s1790_s16 + $0xe0] sm:$0xff]  ;;  %v630_v2 = vld [vmem:[%s1790_s16 + $0xf8] sm:$0xff]  ;;  %s1285_s13 = sshll.u32 (!%p1284_p13), %s1392_s20, 3 }
  0xb8   : > { %733 = vmatpush.msra.mxu0 %v629_v3  ;;  %v725_v5 = vld [vmem:[%s1790_s16 + $0x3f0] sm:$0xff]  ;;  %v723_v9 = vld [vmem:[%s1790_s16 + $0x3e0] sm:$0xff]  ;;  %v726_v3 = vld [vmem:[%s1790_s16 + $0x3f8] sm:$0xff]  ;;  %s1940_s17 = scvt.s32.f32 (!%p1284_p13), %s1285_s13 }
  0xb9   : > { %v661_v7 = vld [vmem:[%s1790_s16 + $0x1f0] sm:$0xff]  ;;  %793 = vmatpush.msra.mxu3 %v725_v5  ;;  %774 = vmatpush.msra.mxu2 %v691_v4  ;;  %v659_v11 = vld [vmem:[%s1790_s16 + $0x1e0] sm:$0xff]  ;;  %v692_v4 = vld [vmem:[%s1790_s16 + $0x2e8] sm:$0xff] }
  0xba   : > { %753 = vmatpush.msra.mxu1 %v661_v7  ;;  %v689_v8 = vld [vmem:[%s1790_s16 + $0x2d0] sm:$0xff]  ;;  %734 = vmatpush.msra.mxu0 %v627_v6  ;;  %v687_v13 = vld [vmem:[%s1790_s16 + $0x2c0] sm:$0xff]  ;;  %v628_v6 = vld [vmem:[%s1790_s16 + $0xe8] sm:$0xff]  ;;  %s941_s28 = sadd.f32 (!%p1284_p13), 8.0, %s1940_s17 }
  0xbb   : > { %v625_v10 = vld [vmem:[%s1790_s16 + $0xd0] sm:$0xff]  ;;  %794 = vmatpush.msra.mxu3 %v723_v9  ;;  %v623_v14 = vld [vmem:[%s1790_s16 + $0xc0] sm:$0xff]  ;;  %775 = vmatpush.msra.mxu2 %v689_v8  ;;  %v662_v7 = vld [vmem:[%s1790_s16 + $0x1f8] sm:$0xff] }
  0xbc   : > { %v721_v12 = vld [vmem:[%s1790_s16 + $0x3d0] sm:$0xff]  ;;  %754 = vmatpush.msra.mxu1 %v659_v11  ;;  %735 = vmatpush.msra.mxu0 %v625_v10  ;;  %v719_v16 = vld [vmem:[%s1790_s16 + $0x3c0] sm:$0xff]  ;;  %v690_v8 = vld [vmem:[%s1790_s16 + $0x2d8] sm:$0xff] }
  0xbd   : > { %v657_v15 = vld [vmem:[%s1790_s16 + $0x1d0] sm:$0xff]  ;;  %v655_v17 = vld [vmem:[%s1790_s16 + $0x1c0] sm:$0xff]  ;;  %795 = vmatpush.msra.mxu3 %v721_v12  ;;  %776 = vmatpush.msra.mxu2 %v687_v13  ;;  %v724_v9 = vld [vmem:[%s1790_s16 + $0x3e8] sm:$0xff] }
  0xbe   : > { %755 = vmatpush.msra.mxu1 %v657_v15  ;;  %v685_v18 = vld [vmem:[%s1790_s16 + $0x2b0] sm:$0xff]  ;;  %736 = vmatpush.msra.mxu0 %v623_v14  ;;  %v683_v22 = vld [vmem:[%s1790_s16 + $0x2a0] sm:$0xff]  ;;  %v626_v10 = vld [vmem:[%s1790_s16 + $0xd8] sm:$0xff] }
  0xbf   : > { %v621_v19 = vld [vmem:[%s1790_s16 + $0xb0] sm:$0xff]  ;;  %796 = vmatpush.msra.mxu3 %v719_v16  ;;  %v619_v23 = vld [vmem:[%s1790_s16 + $0xa0] sm:$0xff]  ;;  %777 = vmatpush.msra.mxu2 %v685_v18  ;;  %v660_v11 = vld [vmem:[%s1790_s16 + $0x1e8] sm:$0xff] }
  0xc0   : > { %v717_v20 = vld [vmem:[%s1790_s16 + $0x3b0] sm:$0xff]  ;;  %756 = vmatpush.msra.mxu1 %v655_v17  ;;  %737 = vmatpush.msra.mxu0 %v621_v19  ;;  %v715_v24 = vld [vmem:[%s1790_s16 + $0x3a0] sm:$0xff]  ;;  %v688_v12 = vld [vmem:[%s1790_s16 + $0x2c8] sm:$0xff] }
  0xc1   : > { %v653_v21 = vld [vmem:[%s1790_s16 + $0x1b0] sm:$0xff]  ;;  %v651_v25 = vld [vmem:[%s1790_s16 + $0x1a0] sm:$0xff]  ;;  %797 = vmatpush.msra.mxu3 %v717_v20  ;;  %778 = vmatpush.msra.mxu2 %v683_v22  ;;  %v722_v13 = vld [vmem:[%s1790_s16 + $0x3d8] sm:$0xff] }
  0xc2   : > { %757 = vmatpush.msra.mxu1 %v653_v21  ;;  %v681_v26 = vld [vmem:[%s1790_s16 + $0x290] sm:$0xff]  ;;  %738 = vmatpush.msra.mxu0 %v619_v23  ;;  %v679_v30 = vld [vmem:[%s1790_s16 + $0x280] sm:$0xff]  ;;  %v624_v14 = vld [vmem:[%s1790_s16 + $0xc8] sm:$0xff] }
  0xc3   : > { %v617_v27 = vld [vmem:[%s1790_s16 + $0x90] sm:$0xff]  ;;  %798 = vmatpush.msra.mxu3 %v715_v24  ;;  %v615_v31 = vld [vmem:[%s1790_s16 + $0x80] sm:$0xff]  ;;  %779 = vmatpush.msra.mxu2 %v681_v26  ;;  %v658_v15 = vld [vmem:[%s1790_s16 + $0x1d8] sm:$0xff] }
  0xc4   : > { %v713_v28 = vld [vmem:[%s1790_s16 + $0x390] sm:$0xff]  ;;  %758 = vmatpush.msra.mxu1 %v651_v25  ;;  %739 = vmatpush.msra.mxu0 %v617_v27  ;;  %v711_v32 = vld [vmem:[%s1790_s16 + $0x380] sm:$0xff]  ;;  %v686_v16 = vld [vmem:[%s1790_s16 + $0x2b8] sm:$0xff] }
  0xc5   : > { %v649_v29 = vld [vmem:[%s1790_s16 + $0x190] sm:$0xff]  ;;  %v647_v33 = vld [vmem:[%s1790_s16 + $0x180] sm:$0xff]  ;;  %799 = vmatpush.msra.mxu3 %v713_v28  ;;  %780 = vmatpush.msra.mxu2 %v679_v30  ;;  %v720_v17 = vld [vmem:[%s1790_s16 + $0x3c8] sm:$0xff] }
  0xc6   : > { %759 = vmatpush.msra.mxu1 %v649_v29  ;;  %v677_v34 = vld [vmem:[%s1790_s16 + $0x270] sm:$0xff]  ;;  %740 = vmatpush.msra.mxu0 %v615_v31  ;;  %v675_v38 = vld [vmem:[%s1790_s16 + $0x260] sm:$0xff]  ;;  %v622_v18 = vld [vmem:[%s1790_s16 + $0xb8] sm:$0xff] }
  0xc7   : > { %v613_v35 = vld [vmem:[%s1790_s16 + $0x70] sm:$0xff]  ;;  %800 = vmatpush.msra.mxu3 %v711_v32  ;;  %v611_v39 = vld [vmem:[%s1790_s16 + $0x60] sm:$0xff]  ;;  %781 = vmatpush.msra.mxu2 %v677_v34  ;;  %v656_v19 = vld [vmem:[%s1790_s16 + $0x1c8] sm:$0xff] }
  0xc8   : > { %v709_v36 = vld [vmem:[%s1790_s16 + $0x370] sm:$0xff]  ;;  %760 = vmatpush.msra.mxu1 %v647_v33  ;;  %741 = vmatpush.msra.mxu0 %v613_v35  ;;  %v707_v40 = vld [vmem:[%s1790_s16 + $0x360] sm:$0xff]  ;;  %v684_v20 = vld [vmem:[%s1790_s16 + $0x2a8] sm:$0xff] }
  0xc9   : > { %v645_v37 = vld [vmem:[%s1790_s16 + $0x170] sm:$0xff]  ;;  %v643_v41 = vld [vmem:[%s1790_s16 + $0x160] sm:$0xff]  ;;  %801 = vmatpush.msra.mxu3 %v709_v36  ;;  %782 = vmatpush.msra.mxu2 %v675_v38  ;;  %v718_v21 = vld [vmem:[%s1790_s16 + $0x3b8] sm:$0xff] }
  0xca   : > { %761 = vmatpush.msra.mxu1 %v645_v37  ;;  %v673_v42 = vld [vmem:[%s1790_s16 + $0x250] sm:$0xff]  ;;  %742 = vmatpush.msra.mxu0 %v611_v39  ;;  %v671_v46 = vld [vmem:[%s1790_s16 + $0x240] sm:$0xff]  ;;  %v620_v22 = vld [vmem:[%s1790_s16 + $0xa8] sm:$0xff] }
  0xcb   : > { %v609_v43 = vld [vmem:[%s1790_s16 + $0x50] sm:$0xff]  ;;  %802 = vmatpush.msra.mxu3 %v707_v40  ;;  %v607_v47 = vld [vmem:[%s1790_s16 + $0x40] sm:$0xff]  ;;  %783 = vmatpush.msra.mxu2 %v673_v42  ;;  %v654_v23 = vld [vmem:[%s1790_s16 + $0x1b8] sm:$0xff] }
  0xcc   : > { %v705_v44 = vld [vmem:[%s1790_s16 + $0x350] sm:$0xff]  ;;  %762 = vmatpush.msra.mxu1 %v643_v41  ;;  %743 = vmatpush.msra.mxu0 %v609_v43  ;;  %v703_v48 = vld [vmem:[%s1790_s16 + $0x340] sm:$0xff]  ;;  %v682_v24 = vld [vmem:[%s1790_s16 + $0x298] sm:$0xff] }
  0xcd   : > { %v641_v45 = vld [vmem:[%s1790_s16 + $0x150] sm:$0xff]  ;;  %v639_v49 = vld [vmem:[%s1790_s16 + $0x140] sm:$0xff]  ;;  %803 = vmatpush.msra.mxu3 %v705_v44  ;;  %784 = vmatpush.msra.mxu2 %v671_v46  ;;  %v716_v25 = vld [vmem:[%s1790_s16 + $0x3a8] sm:$0xff] }
  0xce   : > { %763 = vmatpush.msra.mxu1 %v641_v45  ;;  %v669_v50 = vld [vmem:[%s1790_s16 + $0x230] sm:$0xff]  ;;  %744 = vmatpush.msra.mxu0 %v607_v47  ;;  %v667_v54 = vld [vmem:[%s1790_s16 + $0x220] sm:$0xff]  ;;  %v618_v26 = vld [vmem:[%s1790_s16 + $0x98] sm:$0xff] }
  0xcf   : > { %v605_v51 = vld [vmem:[%s1790_s16 + $0x30] sm:$0xff]  ;;  %804 = vmatpush.msra.mxu3 %v703_v48  ;;  %v603_v55 = vld [vmem:[%s1790_s16 + $0x20] sm:$0xff]  ;;  %785 = vmatpush.msra.mxu2 %v669_v50  ;;  %v652_v27 = vld [vmem:[%s1790_s16 + $0x1a8] sm:$0xff] }
  0xd0   : > { %v701_v52 = vld [vmem:[%s1790_s16 + $0x330] sm:$0xff]  ;;  %764 = vmatpush.msra.mxu1 %v639_v49  ;;  %745 = vmatpush.msra.mxu0 %v605_v51  ;;  %v699_v56 = vld [vmem:[%s1790_s16 + $0x320] sm:$0xff]  ;;  %v680_v28 = vld [vmem:[%s1790_s16 + $0x288] sm:$0xff] }
  0xd1   : > { %v637_v53 = vld [vmem:[%s1790_s16 + $0x130] sm:$0xff]  ;;  %v635_v57 = vld [vmem:[%s1790_s16 + $0x120] sm:$0xff]  ;;  %805 = vmatpush.msra.mxu3 %v701_v52  ;;  %786 = vmatpush.msra.mxu2 %v667_v54  ;;  %v714_v29 = vld [vmem:[%s1790_s16 + $0x398] sm:$0xff] }
  0xd2   : > { %765 = vmatpush.msra.mxu1 %v637_v53  ;;  %v665_v58 = vld [vmem:[%s1790_s16 + $0x210] sm:$0xff]  ;;  %746 = vmatpush.msra.mxu0 %v603_v55  ;;  %v663_v62 = vld [vmem:[%s1790_s16 + $0x200] sm:$0xff]  ;;  %v616_v30 = vld [vmem:[%s1790_s16 + $0x88] sm:$0xff] }
  0xd3   : > { %v601_v59 = vld [vmem:[%s1790_s16 + $0x10] sm:$0xff]  ;;  %806 = vmatpush.msra.mxu3 %v699_v56  ;;  %v599_v63 = vld [vmem:[%s1790_s16] sm:$0xff]  ;;  %787 = vmatpush.msra.mxu2 %v665_v58  ;;  %v650_v31 = vld [vmem:[%s1790_s16 + $0x198] sm:$0xff] }
  0xd4   : > { %v697_v60 = vld [vmem:[%s1790_s16 + $0x310] sm:$0xff]  ;;  %766 = vmatpush.msra.mxu1 %v635_v57  ;;  %747 = vmatpush.msra.mxu0 %v601_v59  ;;  %v695_v1 = vld [vmem:[%s1790_s16 + $0x300] sm:$0xff]  ;;  %v678_v32 = vld [vmem:[%s1790_s16 + $0x278] sm:$0xff] }
  0xd5   : > { %v633_v61 = vld [vmem:[%s1790_s16 + $0x110] sm:$0xff]  ;;  %807 = vmatpush.msra.mxu3 %v697_v60  ;;  %788 = vmatpush.msra.mxu2 %v663_v62  ;;  %v631_v5 = vld [vmem:[%s1790_s16 + $0x100] sm:$0xff]  ;;  %v712_v33 = vld [vmem:[%s1790_s16 + $0x388] sm:$0xff] }
  0xd6   : > { %767 = vmatpush.msra.mxu1 %v633_v61  ;;  %748 = vmatpush.msra.mxu0 %v599_v63  ;;  %v614_v34 = vld [vmem:[%s1790_s16 + $0x78] sm:$0xff]  ;;  %v648_v35 = vld [vmem:[%s1790_s16 + $0x188] sm:$0xff] }
  0xd7   : > { %853 = vmatpush.msrb.mxu2 %v694_v0  ;;  %808 = vmatpush.msra.mxu3 %v695_v1  ;;  %v676_v36 = vld [vmem:[%s1790_s16 + $0x268] sm:$0xff]  ;;  %v710_v37 = vld [vmem:[%s1790_s16 + $0x378] sm:$0xff] }
  0xd8   : > { %813 = vmatpush.msrb.mxu0 %v630_v2  ;;  %768 = vmatpush.msra.mxu1 %v631_v5  ;;  %v612_v38 = vld [vmem:[%s1790_s16 + $0x68] sm:$0xff]  ;;  %v646_v39 = vld [vmem:[%s1790_s16 + $0x178] sm:$0xff] }
  0xd9   : > { %873 = vmatpush.msrb.mxu3 %v726_v3  ;;  %854 = vmatpush.msrb.mxu2 %v692_v4  ;;  %v674_v40 = vld [vmem:[%s1790_s16 + $0x258] sm:$0xff]  ;;  %v708_v41 = vld [vmem:[%s1790_s16 + $0x368] sm:$0xff] }
  0xda   : > { %814 = vmatpush.msrb.mxu0 %v628_v6  ;;  %833 = vmatpush.msrb.mxu1 %v662_v7  ;;  %v610_v42 = vld [vmem:[%s1790_s16 + $0x58] sm:$0xff]  ;;  %v644_v43 = vld [vmem:[%s1790_s16 + $0x168] sm:$0xff] }
  0xdb   : > { %855 = vmatpush.msrb.mxu2 %v690_v8  ;;  %874 = vmatpush.msrb.mxu3 %v724_v9  ;;  %v672_v44 = vld [vmem:[%s1790_s16 + $0x248] sm:$0xff]  ;;  %v706_v45 = vld [vmem:[%s1790_s16 + $0x358] sm:$0xff] }
  0xdc   : > { %815 = vmatpush.msrb.mxu0 %v626_v10  ;;  %834 = vmatpush.msrb.mxu1 %v660_v11  ;;  %v597_v46 = vld [vmem:[%s1770_s30 + $0x10] sm:$0xff]  ;;  %v642_v48 = vld [vmem:[%s1790_s16 + $0x158] sm:$0xff]  ;;  %v596_v57 = vld [vmem:[%s1770_s30 + $0x8] sm:$0xff] }
  0xdd   : > { %856 = vmatpush.msrb.mxu2 %v688_v12  ;;  %875 = vmatpush.msrb.mxu3 %v722_v13  ;;  %v608_v47 = vld [vmem:[%s1790_s16 + $0x48] sm:$0xff]  ;;  %v670_v49 = vld [vmem:[%s1790_s16 + $0x238] sm:$0xff] }
  0xde   : > { %816 = vmatpush.msrb.mxu0 %v624_v14  ;;  %835 = vmatpush.msrb.mxu1 %v658_v15  ;;  %v704_v50 = vld [vmem:[%s1790_s16 + $0x348] sm:$0xff]  ;;  %v595_v51 = vld [vmem:[%s1770_s30] sm:$0xff]  ;;  %v598_v52 = vld [vmem:[%s1770_s30 + $0x18] sm:$0xff]  ;;  %s983_s30 = smul.f32 (!%p1284_p13), 8.0, %s1940_s17 }
  0xdf   : > { %857 = vmatpush.msrb.mxu2 %v686_v16  ;;  %876 = vmatpush.msrb.mxu3 %v720_v17  ;;  %v606_v53 = vld [vmem:[%s1790_s16 + $0x38] sm:$0xff]  ;;  %v640_v54 = vld [vmem:[%s1790_s16 + $0x148] sm:$0xff] }
  0xe0   : > { %817 = vmatpush.msrb.mxu0 %v622_v18  ;;  %836 = vmatpush.msrb.mxu1 %v656_v19  ;;  %v668_v55 = vld [vmem:[%s1790_s16 + $0x228] sm:$0xff]  ;;  %v702_v56 = vld [vmem:[%s1790_s16 + $0x338] sm:$0xff] }
  0xe1   : > { %858 = vmatpush.msrb.mxu2 %v684_v20  ;;  %877 = vmatpush.msrb.mxu3 %v718_v21  ;;  %v604_v58 = vld [vmem:[%s1790_s16 + $0x28] sm:$0xff]  ;;  %v638_v59 = vld [vmem:[%s1790_s16 + $0x138] sm:$0xff] }
  0xe2   : > { %818 = vmatpush.msrb.mxu0 %v620_v22  ;;  %837 = vmatpush.msrb.mxu1 %v654_v23  ;;  %v666_v60 = vld [vmem:[%s1790_s16 + $0x218] sm:$0xff]  ;;  %v700_v61 = vld [vmem:[%s1790_s16 + $0x328] sm:$0xff] }
  0xe3   : > { %859 = vmatpush.msrb.mxu2 %v682_v24  ;;  %878 = vmatpush.msrb.mxu3 %v716_v25  ;;  %v602_v62 = vld [vmem:[%s1790_s16 + $0x18] sm:$0xff]  ;;  %v636_v63 = vld [vmem:[%s1790_s16 + $0x128] sm:$0xff] }
  0xe4   : > { %819 = vmatpush.msrb.mxu0 %v618_v26  ;;  %838 = vmatpush.msrb.mxu1 %v652_v27  ;;  %v664_v0 = vld [vmem:[%s1790_s16 + $0x208] sm:$0xff]  ;;  %v698_v1 = vld [vmem:[%s1790_s16 + $0x318] sm:$0xff] }
  0xe5   : > { %860 = vmatpush.msrb.mxu2 %v680_v28  ;;  %879 = vmatpush.msrb.mxu3 %v714_v29  ;;  %v600_v2 = vld [vmem:[%s1790_s16 + $0x8] sm:$0xff]  ;;  %v634_v3 = vld [vmem:[%s1790_s16 + $0x118] sm:$0xff] }
  0xe6   : > { %820 = vmatpush.msrb.mxu0 %v616_v30  ;;  %839 = vmatpush.msrb.mxu1 %v650_v31  ;;  %v696_v4 = vld [vmem:[%s1790_s16 + $0x308] sm:$0xff]  ;;  %v727_v6 = vld [vmem:[%s563_s7] sm:$0x3] }
  0xe7   : > { %861 = vmatpush.msrb.mxu2 %v678_v32  ;;  %880 = vmatpush.msrb.mxu3 %v712_v33  ;;  %v632_v5 = vld [vmem:[%s1790_s16 + $0x108] sm:$0xff]  ;;  %v729_v7 = vperm.slane %v727_v6, 0  ;;  %v730_v15 = vperm.slane %v727_v6, 1 }
  0xe8   : > { %821 = vmatpush.msrb.mxu0 %v614_v34  ;;  %840 = vmatpush.msrb.mxu1 %v648_v35 }
  0xe9   : > { %862 = vmatpush.msrb.mxu2 %v676_v36  ;;  %881 = vmatpush.msrb.mxu3 %v710_v37 }
  0xea   : > { %822 = vmatpush.msrb.mxu0 %v612_v38  ;;  %841 = vmatpush.msrb.mxu1 %v646_v39 }
  0xeb   : > { %863 = vmatpush.msrb.mxu2 %v674_v40  ;;  %882 = vmatpush.msrb.mxu3 %v708_v41 }
  0xec   : > { %823 = vmatpush.msrb.mxu0 %v610_v42  ;;  %842 = vmatpush.msrb.mxu1 %v644_v43 }
  0xed   : > { %864 = vmatpush.msrb.mxu2 %v672_v44  ;;  %883 = vmatpush.msrb.mxu3 %v706_v45 }
  0xee   : > { %789 = vmatmul.f32.vlgmr.msra.gmra.mxu2 %v597_v46  ;;  %824 = vmatpush.msrb.mxu0 %v608_v47 }
  0xef   : > { %843 = vmatpush.msrb.mxu1 %v642_v48  ;;  %865 = vmatpush.msrb.mxu2 %v670_v49 }
  0xf0   : > { %884 = vmatpush.msrb.mxu3 %v704_v50  ;;  %749 = vmatmul.f32.vlgmr.msra.gmra.mxu0 %v595_v51 }
  0xf1   : > { %809 = vmatmul.f32.vlgmr.msra.gmra.mxu3 %v598_v52  ;;  %825 = vmatpush.msrb.mxu0 %v606_v53 }
  0xf2   : > { %844 = vmatpush.msrb.mxu1 %v640_v54  ;;  %866 = vmatpush.msrb.mxu2 %v668_v55 }
  0xf3   : > { %885 = vmatpush.msrb.mxu3 %v702_v56  ;;  %769 = vmatmul.f32.vlgmr.msra.gmra.mxu1 %v596_v57 }
  0xf4   : > { %826 = vmatpush.msrb.mxu0 %v604_v58  ;;  %845 = vmatpush.msrb.mxu1 %v638_v59 }
  0xf5   : > { %867 = vmatpush.msrb.mxu2 %v666_v60  ;;  %886 = vmatpush.msrb.mxu3 %v700_v61 }
  0xf6   : > { %827 = vmatpush.msrb.mxu0 %v602_v62  ;;  %846 = vmatpush.msrb.mxu1 %v636_v63 }
  0xf7   : > { %868 = vmatpush.msrb.mxu2 %v664_v0  ;;  %887 = vmatpush.msrb.mxu3 %v698_v1 }
  0xf8   : > { %869 = vmatmul.f32.vlgmr.msrb.gmra.mxu2 %v597_v46  ;;  %828 = vmatpush.msrb.mxu0 %v600_v2 }
  0xf9   : > { %847 = vmatpush.msrb.mxu1 %v634_v3  ;;  %888 = vmatpush.msrb.mxu3 %v696_v4 }
  0xfa   : > { %829 = vmatmul.f32.vlgmr.msrb.gmra.mxu0 %v595_v51  ;;  %889 = vmatmul.f32.vlgmr.msrb.gmra.mxu3 %v598_v52 }
  0xfb   : > { %848 = vmatpush.msrb.mxu1 %v632_v5 }
  0xfc   : > { %849 = vmatmul.f32.vlgmr.msrb.gmra.mxu1 %v596_v57 }
 0x16d   : > { %v750_v8 = vpop.f32.mrf.mxu0 }
 0x16e   : > { %v751_v9 = vadd.f32 %v750_v8, %v729_v7 }
 0x170   : > { %v770_v10 = vpop.f32.mrf.mxu1 }
 0x171   : > { %v771_v11 = vadd.f32 %v770_v10, %v751_v9  ;;  %v790_v12 = vpop.f32.mrf.mxu2 }
 0x173   : > { %v791_v13 = vadd.f32 %v790_v12, %v771_v11 }
 0x174   : > { %v810_v14 = vpop.f32.mrf.mxu3 }
 0x175   : > { %v811_v16 = vadd.f32 %v810_v14, %v791_v13 }
 0x177   : > { %v1930_v17 = vmax.f32 %v811_v16, 0.0  ;;  %v830_v18 = vpop.f32.mrf.mxu0 }
 0x178   : > { %v831_v19 = vadd.f32 %v830_v18, %v730_v15 }
 0x179   : > { %895 = vst [vmem:[%s1788_s27] sm:$0xff] %v1930_v17  ;;  %v850_v20 = vpop.f32.mrf.mxu1 }
 0x17a   : > { %v851_v21 = vadd.f32 %v850_v20, %v831_v19 }
 0x17b   : > { %v870_v22 = vpop.f32.mrf.mxu2 }
 0x17c   : > { %v871_v23 = vadd.f32 %v870_v22, %v851_v21 }
 0x17d   : > { %v890_v24 = vpop.f32.mrf.mxu3 }
 0x17e   : > { %v891_v25 = vadd.f32 %v890_v24, %v871_v23  ;;  %900 = sbr.rel (%p1284_p13) target bundleno = 467 (0x1d3), region = 63 }
 0x180   : > { %v1934_v26 = vmax.f32 %v891_v25, 0.0 }
 0x182   : > { %896 = vst [vmem:[%s1788_s27 + $0x8] sm:$0xff] %v1934_v26 }
 0x183   : > { %v942_v27 = vstv %s941_s28  ;;  %v907_v28 = vrot.slane %v1934_v26, 4  ;;  %v901_v32 = vrot.slane %v1930_v17, 4  ;;  %v933_v63 = vld [vmem:[#allocation2] sm:$0x3]  ;;  %vm965_vm5 = vcmask 1040384  }
 0x184   : > { %1352 = vrcp.f32 %v942_v27  ;;  %v954_v31 = vand.u32 2147483648, %v942_v27  ;;  %vm948_vm1 = vweird.f32 %v942_v27  ;;  %v952_v35 = vand.u32 2147483647, %v942_v27  ;;  %v974_v12 = vld [vmem:[#allocation3] sm:$0x3] }
 0x185   : > { %v908_v33 = vadd.f32 %v907_v28, %v1934_v26  ;;  %v902_v39 = vadd.f32 %v901_v32, %v1930_v17  ;;  %v936_v2 = vperm.slane %v933_v63, 1  ;;  %v935_v5 = vperm.slane %v933_v63, 0 }
 0x186   : > { %v955_v37 = vor.u32 1.1754944e-38, %v954_v31  ;;  %vm953_vm4 = vcmp.eq.f32.partialorder %v952_v35, 8.507059e+37  ;;  %v969_v16 = vlaneseq }
 0x187   : > { %v909_v40 = vrot.slane %v908_v33, 2  ;;  %v903_v43 = vrot.slane %v902_v39, 2 }
 0x188   : > { %vm971_vm6 = vcmp.lt.s32.totalorder %v969_v16, 256 }
 0x189   : > { %v910_v44 = vadd.f32 %v909_v40, %v908_v33  ;;  %v904_v45 = vadd.f32 %v903_v43, %v902_v39 }
 0x18a   : > { %v1353_v29 = vpop.eup %1352 }
 0x18b   : > { %v944_v30 = vmul.f32 %v1353_v29, %v942_v27  ;;  %vm949_vm2 = vweird.f32 %v1353_v29  ;;  %v911_v46 = vrot.slane %v910_v44, 1  ;;  %v905_v47 = vrot.slane %v904_v45, 1 }
 0x18c   : > { %vm950_vm3 = vmor %vm948_vm1, %vm949_vm2 }
 0x18d   : > { %v945_v34 = vsub.f32 1.0, %v944_v30  ;;  %v912_v48 = vadd.f32 %v911_v46, %v910_v44  ;;  %v906_v49 = vadd.f32 %v905_v47, %v904_v45 }
 0x18f   : > { %v946_v36 = vmul.f32 %v1353_v29, %v945_v34  ;;  %v914_v50 = vmul.f32 0.125, %v912_v48  ;;  %v913_v51 = vmul.f32 0.125, %v906_v49 }
 0x191   : > { %v947_v38 = vadd.f32 %v1353_v29, %v946_v36  ;;  %v916_v52 = vsub.f32 %v1934_v26, %v914_v50  ;;  %v915_v53 = vsub.f32 %v1930_v17, %v913_v51  ;;  %v940_v6 = vsub.f32 %v914_v50, %v936_v2 }
 0x192   : > { %v939_v8 = vsub.f32 %v913_v51, %v935_v5 }
 0x193   : > { %v951_v41 = vsel %vm950_vm3, %v1353_v29, %v947_v38  ;;  %v918_v54 = vmul.f32 %v916_v52, %v916_v52  ;;  %v917_v55 = vmul.f32 %v915_v53, %v915_v53  ;;  %v982_v10 = vmul.f32 %v940_v6, %v940_v6 }
 0x194   : > { %v956_v42 = vsel %vm953_vm4, %v955_v37, %v951_v41  ;;  %v981_v14 = vmul.f32 %v939_v8, %v939_v8 }
 0x195   : > { %1292 = vpush %v956_v42  ;;  %v925_v56 = vrot.slane %v918_v54, 4  ;;  %v919_v57 = vrot.slane %v917_v55, 4 }
 0x197   : > { %v926_v58 = vadd.f32 %v925_v56, %v918_v54  ;;  %v920_v59 = vadd.f32 %v919_v57, %v917_v55 }
 0x199   : > { %v927_v60 = vrot.slane %v926_v58, 2  ;;  %v921_v61 = vrot.slane %v920_v59, 2 }
 0x19b   : > { %v928_v62 = vadd.f32 %v927_v60, %v926_v58  ;;  %v922_v0 = vadd.f32 %v921_v61, %v920_v59 }
 0x19d   : > { %v929_v1 = vrot.slane %v928_v62, 1  ;;  %v923_v3 = vrot.slane %v922_v0, 1 }
 0x19f   : > { %v930_v4 = vadd.f32 %v929_v1, %v928_v62  ;;  %v924_v7 = vadd.f32 %v923_v3, %v922_v0 }
 0x1a1   : > { %v977_v9 = vrot.slane %v930_v4, 7 }
 0x1a3   : > { %v978_v13 = vsel %vm965_vm5, %v924_v7, %v977_v9 }
 0x1a4   : > { %v980_v22 = vadd.f32 %v978_v13, %v974_v12 }
 0x1c6   : > { %s1293_s6 = spop %1292 }
 0x1c7   : > { %s958_s18 = smul.f32 8.0, %s1293_s6 }
 0x1c8   : > { %s1000_s7 = smul.f32 %s1293_s6, %s983_s30 }
 0x1c9   : > { %v959_v11 = vstv %s958_s18 }
 0x1ca   : > { %v961_v15 = vmul.f32 %v959_v11, %v940_v6  ;;  %v1001_v18 = vstv %s1000_s7  ;;  %v960_v20 = vmul.f32 %v959_v11, %v939_v8 }
 0x1cb   : > { %v1003_v19 = vmul.f32 %v1001_v18, %v982_v10  ;;  %v1002_v23 = vmul.f32 %v1001_v18, %v981_v14 }
 0x1cc   : > { %v964_v21 = vrot.slane %v961_v15, 7 }
 0x1cd   : > { %v1006_v24 = vrot.slane %v1003_v19, 7 }
 0x1ce   : > { %v966_v25 = vsel %vm965_vm5, %v960_v20, %v964_v21 }
 0x1cf   : > { %v968_v27 = vadd.f32 %v966_v25, %v933_v63  ;;  %v1007_v28 = vsel %vm965_vm5, %v1002_v23, %v1006_v24 }
 0x1d0   : > { %v1009_v29 = vadd.f32 %v1007_v28, %v980_v22 }
 0x1d1   : > { %973 = vst.msk [vmem:[#allocation2] sm:$0x3] %vm971_vm6, %v968_v27 }
 0x1d2   : > { %1010 = vst.msk [vmem:[#allocation3] sm:$0x3] %vm971_vm6, %v1009_v29 }
 0x1d3 PF: > { %p1286_p0 = scmp.ne.s32.totalorder %s1392_s20, 2 }
 0x1d5   : > { %1014 = sbr.rel (%p1286_p0) target bundleno = 532 (0x214), region = 67 }
 0x1da   : > { %v1015_v30 = vlaneseq  ;;  %v1411_v32 = vmov 0.0   ;;  %v1054_v46 = vld [vmem:[#allocation2] sm:$0x3]  ;;  %vm1067_vm8 = vcmask 1040384   ;;  %v1076_v20 = vld [vmem:[#allocation3] sm:$0x3] }
 0x1db   : > { %v1056_v49 = vperm.slane %v1054_v46, 0  ;;  %v1057_v50 = vperm.slane %v1054_v46, 1 }
 0x1dc   : > { %v1016_v31 = vshrl.u32 %v1015_v30, 7  ;;  %vm1959_vm9 = vcmp.lt.s32.totalorder %v1015_v30, 256 }
 0x1de   : > { %vm1017_vm7 = vcmp.lt.s32.totalorder %v1016_v31, 4 }
 0x1df   : > { %v1287_v33 = vsel %vm1017_vm7, 1.0, %v1411_v32 }
 0x1e0   : > { %v1020_v34 = vmul.f32 %v1287_v33, %v1930_v17  ;;  %v1021_v35 = vmul.f32 %v1287_v33, %v1934_v26 }
 0x1e2   : > { %v1022_v36 = vrot.slane %v1020_v34, 4  ;;  %v1028_v37 = vrot.slane %v1021_v35, 4 }
 0x1e4   : > { %v1023_v38 = vadd.f32 %v1022_v36, %v1020_v34  ;;  %v1029_v39 = vadd.f32 %v1028_v37, %v1021_v35 }
 0x1e6   : > { %v1024_v40 = vrot.slane %v1023_v38, 2  ;;  %v1030_v41 = vrot.slane %v1029_v39, 2 }
 0x1e8   : > { %v1025_v42 = vadd.f32 %v1024_v40, %v1023_v38  ;;  %v1031_v43 = vadd.f32 %v1030_v41, %v1029_v39 }
 0x1ea   : > { %v1026_v44 = vrot.slane %v1025_v42, 1  ;;  %v1032_v45 = vrot.slane %v1031_v43, 1 }
 0x1ec   : > { %v1027_v47 = vadd.f32 %v1026_v44, %v1025_v42  ;;  %v1033_v48 = vadd.f32 %v1032_v45, %v1031_v43 }
 0x1ee   : > { %v1034_v51 = vmul.f32 0.25, %v1027_v47  ;;  %v1035_v52 = vmul.f32 0.25, %v1033_v48 }
 0x1f0   : > { %v1036_v53 = vsub.f32 %v1930_v17, %v1034_v51  ;;  %v1037_v54 = vsub.f32 %v1934_v26, %v1035_v52  ;;  %v1060_v55 = vsub.f32 %v1034_v51, %v1056_v49  ;;  %v1061_v56 = vsub.f32 %v1035_v52, %v1057_v50 }
 0x1f2   : > { %v1038_v57 = vmul.f32 %v1287_v33, %v1036_v53  ;;  %v1039_v58 = vmul.f32 %v1287_v33, %v1037_v54  ;;  %v1062_v59 = vmul.f32 0.2, %v1060_v55  ;;  %v1063_v60 = vmul.f32 0.2, %v1061_v56 }
 0x1f3   : > { %v1084_v5 = vmul.f32 %v1061_v56, %v1061_v56  ;;  %v1083_v10 = vmul.f32 %v1060_v55, %v1060_v55 }
 0x1f4   : > { %v1040_v61 = vmul.f32 %v1038_v57, %v1038_v57  ;;  %v1041_v62 = vmul.f32 %v1039_v58, %v1039_v58  ;;  %v1066_v63 = vrot.slane %v1063_v60, 7 }
 0x1f5   : > { %v1086_v11 = vmul.f32 3.2, %v1084_v5  ;;  %v1085_v16 = vmul.f32 3.2, %v1083_v10 }
 0x1f6   : > { %v1042_v0 = vrot.slane %v1040_v61, 4  ;;  %v1048_v1 = vrot.slane %v1041_v62, 4  ;;  %v1068_v2 = vsel %vm1067_vm8, %v1062_v59, %v1066_v63 }
 0x1f7   : > { %v1070_v17 = vadd.f32 %v1068_v2, %v1054_v46  ;;  %v1089_v18 = vrot.slane %v1086_v11, 7 }
 0x1f8   : > { %v1043_v3 = vadd.f32 %v1042_v0, %v1040_v61  ;;  %v1049_v4 = vadd.f32 %v1048_v1, %v1041_v62 }
 0x1f9   : > { %1075 = vst.msk [vmem:[#allocation2] sm:$0x3] %vm1959_vm9, %v1070_v17  ;;  %v1090_v23 = vsel %vm1067_vm8, %v1085_v16, %v1089_v18 }
 0x1fa   : > { %v1044_v6 = vrot.slane %v1043_v3, 2  ;;  %v1050_v7 = vrot.slane %v1049_v4, 2 }
 0x1fc   : > { %v1045_v8 = vadd.f32 %v1044_v6, %v1043_v3  ;;  %v1051_v9 = vadd.f32 %v1050_v7, %v1049_v4 }
 0x1fe   : > { %v1046_v12 = vrot.slane %v1045_v8, 1  ;;  %v1052_v13 = vrot.slane %v1051_v9, 1 }
 0x200   : > { %v1047_v14 = vadd.f32 %v1046_v12, %v1045_v8  ;;  %v1053_v15 = vadd.f32 %v1052_v13, %v1051_v9  ;;  %v1094_v19 = vld [vmem:[#allocation2] sm:$0x3] }
 0x201   : > { %1095 = vst.msk [vmem:[%s578_s10] sm:$0x3] %vm1959_vm9, %v1094_v19 }
 0x202   : > { %v1079_v21 = vrot.slane %v1053_v15, 7 }
 0x204   : > { %v1080_v22 = vsel %vm1067_vm8, %v1047_v14, %v1079_v21 }
 0x205   : > { %v1082_v24 = vadd.f32 %v1080_v22, %v1076_v20 }
 0x207   : > { %v1092_v25 = vadd.f32 %v1090_v23, %v1082_v24 }
 0x209   : > { %1093 = vst.msk [vmem:[#allocation3] sm:$0x3] %vm1959_vm9, %v1092_v25 }
 0x210   : > { %v1096_v27 = vld [vmem:[#allocation3] sm:$0x3] }
 0x211   : > { %v1097_v28 = vmul.f32 0.05, %v1096_v27 }
 0x213   : > { %1098 = vst.msk [vmem:[%s583_s26] sm:$0x3] %vm1959_vm9, %v1097_v28 }
 0x214 PF: > { %s16_s24 = sadd.s32 1, %s1408_s24   ;;  %s2017_s10 = sld [smem:[#allocation5_spill]] }
 0x215   : > { %p13_p1 = scmp.ge.s32.totalorder %s16_s24, 8   ;;  %s2018_s11 = sld [smem:[#allocation6_spill]] }
 0x216   : > { %s2019_s18 = smov %s1388_s19  ;;  %s2020_s19 = smov %s1491_s29 }
 0x217   : > { %s2021_s20 = smov %s1400_s22  ;;  %s2022_s21 = smov %s1404_s23 }
 0x218   :  { %15 = sbr.rel (!%p13_p1) target bundleno = 6 (0x6), region = 132 }
 0x21a   : > { %s2023_s22 = smov %s2017_s10 }
 0x21b   : > { %s2024_s23 = smov %s2018_s11 }

// kernel: protein_multilabel_forward.6
= control target key start
LH: loop header
LB: loop body
LE: loop exit
PB: predicated region body
PF: predicated region fallthrough
CT: control target
= control target key end

     0   :  { %s1526_s0 = inlined_call_operand.vmem [shape: f32[24,512], index: 0, kind: input, shape index: {}]   ;;  %s1527_s1 = inlined_call_operand.vmem [shape: f32[512,256], index: 1, kind: input, shape index: {}]   ;;  %s1528_s2 = inlined_call_operand.vmem [shape: f32[1,256], index: 2, kind: input, shape index: {}]   ;;  %s1529_s3 = inlined_call_operand.vmem [shape: f32[24,256], index: 3, kind: output, shape index: {0}]   ;;  %s1530_s4 = inlined_call_operand.vmem [shape: f32[1,256], index: 4, kind: output, shape index: {1}]   ;;  %s1531_s5 = inlined_call_operand.vmem [shape: f32[1,256], index: 5, kind: output, shape index: {2}]  }
   0x1   :  { %1533 = sst [smem:[#allocation7_spill]] %s1527_s1 }
   0x2   :  { %s1182_s18 = smov 0   ;;  %s1184_s19 = smov 0  }
   0x3   :  { %s1186_s20 = smov 0   ;;  %s1188_s21 = smov 0  }
   0x4   :  { %s1190_s22 = smov 0   ;;  %s1192_s23 = smov 0  }
   0x5   :  { %s1194_s24 = smov 0  }
   0x6 LB: > { %s25_s25 = sadd.s32 1, %s1140_s22  ;;  %s28_s26 = sadd.s32 1, %s1144_s23  ;;  %s1148_s24 = sphi %s1194_s24, %s16_s24   ;;  %s1144_s23 = sphi %s1192_s23, %s1544_s23   ;;  %s1140_s22 = sphi %s1190_s22, %s1543_s22   ;;  %s1136_s21 = sphi %s1188_s21, %s1542_s21   ;;  %s1132_s20 = sphi %s1186_s20, %s1541_s20   ;;  %s1128_s19 = sphi %s1184_s19, %s1540_s19   ;;  %s1124_s18 = sphi %s1182_s18, %s1539_s18  }
   0x7   : > { %p26_p0 = scmp.ge.s32.totalorder %s25_s25, 3  ;;  %p68_p1 = scmp.ne.s32.totalorder %s1128_s19, %s1124_s18 }
   0x8   : > { %p69_p2 = scmp.eq.s32.totalorder %s1148_s24, 0  ;;  %s61_s28 = sadd.s32 1, %s1128_s19 }
   0x9   : > { %s1546_s25 = smov (%p26_p0, %s25_s25), 0  ;;  %s1548_s26 = smov (!%p26_p0, %s28_s26), %s1144_s23 }
   0xa   : > { %1534 = sst [smem:[#allocation5_spill]] %s1546_s25  ;;  %p70_p3 = por %p69_p2, %p68_p1 }
   0xb   : > { %p30_p4 = scmp.ge.s32.totalorder %s1548_s26, 2  ;;  %p1014_p6 = scmp.ge.s32.totalorder %s1148_s24, 6 }
   0xd   : > { %s1550_s26 = smov (%p30_p4, %s1548_s26), 0  ;;  %200 = sbr.rel (%p1014_p6) target bundleno = 92 (0x5c), region = 16 }
   0xe   : > { %1535 = sst [smem:[#allocation6_spill]] %s1550_s26  ;;  %s58_s27 = ssub.s32 %s1144_s23, %s1550_s26 }
   0xf   : > { %p59_p5 = scmp.eq.s32.totalorder %s58_s27, 0 }
  0x11   : > { %s1231_s29 = scalar_select %p59_p5, %s1128_s19, %s61_s28  }
  0x12   : > { %211 = sbr.rel (!%p70_p3) target bundleno = 92 (0x5c), region = 24  ;;  %s213_s30 = sand.u32 (%p70_p3), 1, %s1128_s19  }
  0x13   : > { %s1016_s6 = sshll.u32 (%p70_p3), %s1144_s23, 3  ;;  %s1015_s7 = sshll.u32 (%p70_p3), %s213_s30, 9 }
  0x14   : > { %s1536_s1 = sld [smem:[#allocation7_spill]] (%p70_p3)  ;;  %s1244_s11 = scalar_lea.vmem (%p70_p3), [#allocation4], %s1015_s7 }
  0x1a   : > { %s1239_s10 = scalar_lea.vmem %s1536_s1, %s1016_s6 }
  0x1b   : > { %v372_v0 = vld [vmem:[%s1239_s10] sm:$0xff]  ;;  %v374_v1 = vld [vmem:[%s1239_s10 + $0x10] sm:$0xff] }
  0x1c   : > { %v376_v2 = vld [vmem:[%s1239_s10 + $0x20] sm:$0xff]  ;;  %373 = vst [vmem:[%s1244_s11] sm:$0xff] %v372_v0  ;;  %v378_v3 = vld [vmem:[%s1239_s10 + $0x30] sm:$0xff] }
  0x1d   : > { %375 = vst [vmem:[%s1244_s11 + $0x8] sm:$0xff] %v374_v1  ;;  %v380_v4 = vld [vmem:[%s1239_s10 + $0x40] sm:$0xff]  ;;  %v382_v5 = vld [vmem:[%s1239_s10 + $0x50] sm:$0xff] }
  0x1e   : > { %377 = vst [vmem:[%s1244_s11 + $0x10] sm:$0xff] %v376_v2  ;;  %v384_v6 = vld [vmem:[%s1239_s10 + $0x60] sm:$0xff]  ;;  %v386_v7 = vld [vmem:[%s1239_s10 + $0x70] sm:$0xff] }
  0x1f   : > { %379 = vst [vmem:[%s1244_s11 + $0x18] sm:$0xff] %v378_v3  ;;  %v388_v8 = vld [vmem:[%s1239_s10 + $0x80] sm:$0xff]  ;;  %v390_v9 = vld [vmem:[%s1239_s10 + $0x90] sm:$0xff] }
  0x20   : > { %381 = vst [vmem:[%s1244_s11 + $0x20] sm:$0xff] %v380_v4  ;;  %v392_v10 = vld [vmem:[%s1239_s10 + $0xa0] sm:$0xff]  ;;  %v394_v11 = vld [vmem:[%s1239_s10 + $0xb0] sm:$0xff] }
  0x21   : > { %383 = vst [vmem:[%s1244_s11 + $0x28] sm:$0xff] %v382_v5  ;;  %v396_v12 = vld [vmem:[%s1239_s10 + $0xc0] sm:$0xff]  ;;  %v398_v13 = vld [vmem:[%s1239_s10 + $0xd0] sm:$0xff] }
  0x22   : > { %385 = vst [vmem:[%s1244_s11 + $0x30] sm:$0xff] %v384_v6  ;;  %v400_v14 = vld [vmem:[%s1239_s10 + $0xe0] sm:$0xff]  ;;  %v402_v15 = vld [vmem:[%s1239_s10 + $0xf0] sm:$0xff] }
  0x23   : > { %387 = vst [vmem:[%s1244_s11 + $0x38] sm:$0xff] %v386_v7  ;;  %v404_v16 = vld [vmem:[%s1239_s10 + $0x100] sm:$0xff]  ;;  %v406_v17 = vld [vmem:[%s1239_s10 + $0x110] sm:$0xff] }
  0x24   : > { %389 = vst [vmem:[%s1244_s11 + $0x40] sm:$0xff] %v388_v8  ;;  %v408_v18 = vld [vmem:[%s1239_s10 + $0x120] sm:$0xff]  ;;  %v410_v19 = vld [vmem:[%s1239_s10 + $0x130] sm:$0xff] }
  0x25   : > { %391 = vst [vmem:[%s1244_s11 + $0x48] sm:$0xff] %v390_v9  ;;  %v412_v20 = vld [vmem:[%s1239_s10 + $0x140] sm:$0xff]  ;;  %v414_v21 = vld [vmem:[%s1239_s10 + $0x150] sm:$0xff] }
  0x26   : > { %393 = vst [vmem:[%s1244_s11 + $0x50] sm:$0xff] %v392_v10  ;;  %v416_v22 = vld [vmem:[%s1239_s10 + $0x160] sm:$0xff]  ;;  %v418_v23 = vld [vmem:[%s1239_s10 + $0x170] sm:$0xff] }
  0x27   : > { %395 = vst [vmem:[%s1244_s11 + $0x58] sm:$0xff] %v394_v11  ;;  %v420_v24 = vld [vmem:[%s1239_s10 + $0x180] sm:$0xff]  ;;  %v422_v25 = vld [vmem:[%s1239_s10 + $0x190] sm:$0xff] }
  0x28   : > { %397 = vst [vmem:[%s1244_s11 + $0x60] sm:$0xff] %v396_v12  ;;  %v424_v26 = vld [vmem:[%s1239_s10 + $0x1a0] sm:$0xff]  ;;  %v426_v27 = vld [vmem:[%s1239_s10 + $0x1b0] sm:$0xff] }
  0x29   : > { %399 = vst [vmem:[%s1244_s11 + $0x68] sm:$0xff] %v398_v13  ;;  %v428_v28 = vld [vmem:[%s1239_s10 + $0x1c0] sm:$0xff]  ;;  %v430_v29 = vld [vmem:[%s1239_s10 + $0x1d0] sm:$0xff] }
  0x2a   : > { %401 = vst [vmem:[%s1244_s11 + $0x70] sm:$0xff] %v400_v14  ;;  %v432_v30 = vld [vmem:[%s1239_s10 + $0x1e0] sm:$0xff]  ;;  %v434_v31 = vld [vmem:[%s1239_s10 + $0x1f0] sm:$0xff] }
  0x2b   : > { %403 = vst [vmem:[%s1244_s11 + $0x78] sm:$0xff] %v402_v15  ;;  %v436_v32 = vld [vmem:[%s1239_s10 + $0x200] sm:$0xff]  ;;  %v438_v33 = vld [vmem:[%s1239_s10 + $0x210] sm:$0xff] }
  0x2c   : > { %405 = vst [vmem:[%s1244_s11 + $0x80] sm:$0xff] %v404_v16  ;;  %v440_v34 = vld [vmem:[%s1239_s10 + $0x220] sm:$0xff]  ;;  %v442_v35 = vld [vmem:[%s1239_s10 + $0x230] sm:$0xff] }
  0x2d   : > { %407 = vst [vmem:[%s1244_s11 + $0x88] sm:$0xff] %v406_v17  ;;  %v444_v36 = vld [vmem:[%s1239_s10 + $0x240] sm:$0xff]  ;;  %v446_v37 = vld [vmem:[%s1239_s10 + $0x250] sm:$0xff] }
  0x2e   : > { %409 = vst [vmem:[%s1244_s11 + $0x90] sm:$0xff] %v408_v18  ;;  %v448_v38 = vld [vmem:[%s1239_s10 + $0x260] sm:$0xff]  ;;  %v450_v39 = vld [vmem:[%s1239_s10 + $0x270] sm:$0xff] }
  0x2f   : > { %411 = vst [vmem:[%s1244_s11 + $0x98] sm:$0xff] %v410_v19  ;;  %v452_v40 = vld [vmem:[%s1239_s10 + $0x280] sm:$0xff]  ;;  %v454_v41 = vld [vmem:[%s1239_s10 + $0x290] sm:$0xff] }
  0x30   : > { %413 = vst [vmem:[%s1244_s11 + $0xa0] sm:$0xff] %v412_v20  ;;  %v456_v42 = vld [vmem:[%s1239_s10 + $0x2a0] sm:$0xff]  ;;  %v458_v43 = vld [vmem:[%s1239_s10 + $0x2b0] sm:$0xff] }
  0x31   : > { %415 = vst [vmem:[%s1244_s11 + $0xa8] sm:$0xff] %v414_v21  ;;  %v460_v44 = vld [vmem:[%s1239_s10 + $0x2c0] sm:$0xff]  ;;  %v462_v45 = vld [vmem:[%s1239_s10 + $0x2d0] sm:$0xff] }
  0x32   : > { %417 = vst [vmem:[%s1244_s11 + $0xb0] sm:$0xff] %v416_v22  ;;  %v464_v46 = vld [vmem:[%s1239_s10 + $0x2e0] sm:$0xff]  ;;  %v466_v47 = vld [vmem:[%s1239_s10 + $0x2f0] sm:$0xff] }
  0x33   : > { %419 = vst [vmem:[%s1244_s11 + $0xb8] sm:$0xff] %v418_v23  ;;  %v468_v48 = vld [vmem:[%s1239_s10 + $0x300] sm:$0xff]  ;;  %v470_v49 = vld [vmem:[%s1239_s10 + $0x310] sm:$0xff] }
  0x34   : > { %421 = vst [vmem:[%s1244_s11 + $0xc0] sm:$0xff] %v420_v24  ;;  %v472_v50 = vld [vmem:[%s1239_s10 + $0x320] sm:$0xff]  ;;  %v474_v51 = vld [vmem:[%s1239_s10 + $0x330] sm:$0xff] }
  0x35   : > { %423 = vst [vmem:[%s1244_s11 + $0xc8] sm:$0xff] %v422_v25  ;;  %v476_v52 = vld [vmem:[%s1239_s10 + $0x340] sm:$0xff]  ;;  %v478_v53 = vld [vmem:[%s1239_s10 + $0x350] sm:$0xff] }
  0x36   : > { %425 = vst [vmem:[%s1244_s11 + $0xd0] sm:$0xff] %v424_v26  ;;  %v480_v54 = vld [vmem:[%s1239_s10 + $0x360] sm:$0xff]  ;;  %v482_v55 = vld [vmem:[%s1239_s10 + $0x370] sm:$0xff] }
  0x37   : > { %427 = vst [vmem:[%s1244_s11 + $0xd8] sm:$0xff] %v426_v27  ;;  %v484_v56 = vld [vmem:[%s1239_s10 + $0x380] sm:$0xff]  ;;  %v486_v57 = vld [vmem:[%s1239_s10 + $0x390] sm:$0xff] }
  0x38   : > { %429 = vst [vmem:[%s1244_s11 + $0xe0] sm:$0xff] %v428_v28  ;;  %v488_v58 = vld [vmem:[%s1239_s10 + $0x3a0] sm:$0xff]  ;;  %v490_v59 = vld [vmem:[%s1239_s10 + $0x3b0] sm:$0xff] }
  0x39   : > { %431 = vst [vmem:[%s1244_s11 + $0xe8] sm:$0xff] %v430_v29  ;;  %v492_v60 = vld [vmem:[%s1239_s10 + $0x3c0] sm:$0xff]  ;;  %v494_v61 = vld [vmem:[%s1239_s10 + $0x3d0] sm:$0xff] }
  0x3a   : > { %433 = vst [vmem:[%s1244_s11 + $0xf0] sm:$0xff] %v432_v30  ;;  %v496_v62 = vld [vmem:[%s1239_s10 + $0x3e0] sm:$0xff]  ;;  %v498_v63 = vld [vmem:[%s1239_s10 + $0x3f0] sm:$0xff] }
  0x3b   : > { %435 = vst [vmem:[%s1244_s11 + $0xf8] sm:$0xff] %v434_v31 }
  0x3c   : > { %437 = vst [vmem:[%s1244_s11 + $0x100] sm:$0xff] %v436_v32 }
  0x3d   : > { %439 = vst [vmem:[%s1244_s11 + $0x108] sm:$0xff] %v438_v33 }
  0x3e   : > { %441 = vst [vmem:[%s1244_s11 + $0x110] sm:$0xff] %v440_v34 }
  0x3f   : > { %443 = vst [vmem:[%s1244_s11 + $0x118] sm:$0xff] %v442_v35 }
  0x40   : > { %445 = vst [vmem:[%s1244_s11 + $0x120] sm:$0xff] %v444_v36 }
  0x41   : > { %447 = vst [vmem:[%s1244_s11 + $0x128] sm:$0xff] %v446_v37 }
  0x42   : > { %449 = vst [vmem:[%s1244_s11 + $0x130] sm:$0xff] %v448_v38 }
  0x43   : > { %451 = vst [vmem:[%s1244_s11 + $0x138] sm:$0xff] %v450_v39 }
  0x44   : > { %453 = vst [vmem:[%s1244_s11 + $0x140] sm:$0xff] %v452_v40 }
  0x45   : > { %455 = vst [vmem:[%s1244_s11 + $0x148] sm:$0xff] %v454_v41 }
  0x46   : > { %457 = vst [vmem:[%s1244_s11 + $0x150] sm:$0xff] %v456_v42 }
  0x47   : > { %459 = vst [vmem:[%s1244_s11 + $0x158] sm:$0xff] %v458_v43 }
  0x48   : > { %461 = vst [vmem:[%s1244_s11 + $0x160] sm:$0xff] %v460_v44 }
  0x49   : > { %463 = vst [vmem:[%s1244_s11 + $0x168] sm:$0xff] %v462_v45 }
  0x4a   : > { %465 = vst [vmem:[%s1244_s11 + $0x170] sm:$0xff] %v464_v46 }
  0x4b   : > { %467 = vst [vmem:[%s1244_s11 + $0x178] sm:$0xff] %v466_v47 }
  0x4c   : > { %469 = vst [vmem:[%s1244_s11 + $0x180] sm:$0xff] %v468_v48 }
  0x4d   : > { %471 = vst [vmem:[%s1244_s11 + $0x188] sm:$0xff] %v470_v49 }
  0x4e   : > { %473 = vst [vmem:[%s1244_s11 + $0x190] sm:$0xff] %v472_v50 }
  0x4f   : > { %475 = vst [vmem:[%s1244_s11 + $0x198] sm:$0xff] %v474_v51 }
  0x50   : > { %477 = vst [vmem:[%s1244_s11 + $0x1a0] sm:$0xff] %v476_v52 }
  0x51   : > { %479 = vst [vmem:[%s1244_s11 + $0x1a8] sm:$0xff] %v478_v53 }
  0x52   : > { %481 = vst [vmem:[%s1244_s11 + $0x1b0] sm:$0xff] %v480_v54 }
  0x53   : > { %483 = vst [vmem:[%s1244_s11 + $0x1b8] sm:$0xff] %v482_v55 }
  0x54   : > { %485 = vst [vmem:[%s1244_s11 + $0x1c0] sm:$0xff] %v484_v56 }
  0x55   : > { %487 = vst [vmem:[%s1244_s11 + $0x1c8] sm:$0xff] %v486_v57 }
  0x56   : > { %489 = vst [vmem:[%s1244_s11 + $0x1d0] sm:$0xff] %v488_v58 }
  0x57   : > { %491 = vst [vmem:[%s1244_s11 + $0x1d8] sm:$0xff] %v490_v59 }
  0x58   : > { %493 = vst [vmem:[%s1244_s11 + $0x1e0] sm:$0xff] %v492_v60 }
  0x59   : > { %495 = vst [vmem:[%s1244_s11 + $0x1e8] sm:$0xff] %v494_v61 }
  0x5a   : > { %497 = vst [vmem:[%s1244_s11 + $0x1f0] sm:$0xff] %v496_v62 }
  0x5b   : > { %499 = vst [vmem:[%s1244_s11 + $0x1f8] sm:$0xff] %v498_v63 }
  0x5c PF: > { %p1017_p7 = scmp.ge.s32.totalorder %s1148_s24, 1  ;;  %p510_p8 = scmp.lt.s32.totalorder %s1148_s24, 7 }
  0x5e   : > { %p511_p9 = pnand %p1017_p7, %p510_p8 }
  0x5f   : > { %s517_s12 = sand.u32 (!%p511_p9), 1, %s1124_s18   ;;  %p561_p10 = scmp.lt.s32.totalorder (!%p511_p9), %s1132_s20, 2 }
  0x60   : > { %514 = sbr.rel (%p511_p9) target bundleno = 425 (0x1a9), region = 66  ;;  %s1018_s13 = sshll.u32 (!%p511_p9), %s517_s12, 9 }
  0x61   : > { %p566_p11 = scmp.lt.s32.totalorder (!%p511_p9), %s1136_s21, 1  ;;  %p1023_p12 = scmp.ne.s32.totalorder (!%p511_p9), %s1132_s20, 0 }
  0x65   : > { %s562_s14 = scalar_select %p561_p10, %s1132_s20, 2 }
  0x66   : > { %s1552_s21 = smov (!%p566_p11, %s1136_s21), 1 }
  0x67   : > { %s1030_s15 = sshll.u32 %s562_s14, 5  ;;  %s1021_s16 = sshll.u32 %s562_s14, 1 }
  0x68   : > { %s1383_s28 = scalar_lea.vmem %s1526_s0, %s1030_s15  ;;  %s568_s18 = scalar_lea.vmem %s1528_s2, %s1552_s21 }
  0x69   : > { %s574_s7 = sadd.s32 %s1021_s16, %s1552_s21  ;;  %s579_s10 = scalar_lea.vmem %s1530_s4, %s1552_s21 }
  0x6a   : > { %s1022_s11 = sshll.u32 %s574_s7, 3  ;;  %s582_s26 = scalar_lea.vmem %s1531_s5, %s1552_s21 }
  0x6b   : > { %s1401_s17 = scalar_lea.vmem %s1529_s3, %s1022_s11  ;;  %s1403_s15 = scalar_lea.vmem [#allocation4], %s1018_s13 }
  0x6c   : > { %586 = sbr.rel (%p1023_p12) target bundleno = 116 (0x74), region = 74 }
  0x71   : > { %v1150_v0 = vmov 0.0  }
  0x72   : > { %587 = vst [vmem:[#allocation2] sm:$0x1] %v1150_v0 }
  0x73   : > { %588 = vst [vmem:[#allocation3] sm:$0x1] %v1150_v0 }
  0x74 PF: > { %v640_v1 = vld [vmem:[%s1403_s15 + $0x178] sm:$0xff]  ;;  %v639_v3 = vld [vmem:[%s1403_s15 + $0x170] sm:$0xff]  ;;  %v638_v7 = vld [vmem:[%s1403_s15 + $0x168] sm:$0xff]  ;;  %p1024_p13 = scmp.ge.s32.totalorder %s1132_s20, 2 }
  0x75   : > { %v608_v2 = vld [vmem:[%s1403_s15 + $0x78] sm:$0xff]  ;;  %701 = vmatpush.msra.mxu2 %v640_v1  ;;  %v607_v5 = vld [vmem:[%s1403_s15 + $0x70] sm:$0xff]  ;;  %v606_v9 = vld [vmem:[%s1403_s15 + $0x68] sm:$0xff]  ;;  %s1025_s13 = sshll.u32 (!%p1024_p13), %s1132_s20, 3 }
  0x76   : > { %661 = vmatpush.msra.mxu0 %v608_v2  ;;  %v656_v4 = vld [vmem:[%s1403_s15 + $0x1f8] sm:$0xff]  ;;  %v655_v8 = vld [vmem:[%s1403_s15 + $0x1f0] sm:$0xff]  ;;  %v654_v11 = vld [vmem:[%s1403_s15 + $0x1e8] sm:$0xff]  ;;  %s1485_s16 = scvt.s32.f32 (!%p1024_p13), %s1025_s13 }
  0x77   : > { %v624_v6 = vld [vmem:[%s1403_s15 + $0xf8] sm:$0xff]  ;;  %721 = vmatpush.msra.mxu3 %v656_v4  ;;  %702 = vmatpush.msra.mxu2 %v639_v3  ;;  %v623_v10 = vld [vmem:[%s1403_s15 + $0xf0] sm:$0xff]  ;;  %v637_v12 = vld [vmem:[%s1403_s15 + $0x160] sm:$0xff] }
  0x78   : > { %681 = vmatpush.msra.mxu1 %v624_v6  ;;  %662 = vmatpush.msra.mxu0 %v607_v5  ;;  %v605_v13 = vld [vmem:[%s1403_s15 + $0x60] sm:$0xff]  ;;  %v622_v14 = vld [vmem:[%s1403_s15 + $0xe8] sm:$0xff]  ;;  %v636_v17 = vld [vmem:[%s1403_s15 + $0x158] sm:$0xff]  ;;  %s765_s27 = sadd.f32 (!%p1024_p13), 8.0, %s1485_s16 }
  0x79   : > { %722 = vmatpush.msra.mxu3 %v655_v8  ;;  %703 = vmatpush.msra.mxu2 %v638_v7  ;;  %v653_v15 = vld [vmem:[%s1403_s15 + $0x1e0] sm:$0xff]  ;;  %v604_v18 = vld [vmem:[%s1403_s15 + $0x58] sm:$0xff]  ;;  %v635_v21 = vld [vmem:[%s1403_s15 + $0x150] sm:$0xff] }
  0x7a   : > { %682 = vmatpush.msra.mxu1 %v623_v10  ;;  %663 = vmatpush.msra.mxu0 %v606_v9  ;;  %v621_v16 = vld [vmem:[%s1403_s15 + $0xe0] sm:$0xff]  ;;  %v652_v19 = vld [vmem:[%s1403_s15 + $0x1d8] sm:$0xff]  ;;  %v603_v22 = vld [vmem:[%s1403_s15 + $0x50] sm:$0xff] }
  0x7b   : > { %723 = vmatpush.msra.mxu3 %v654_v11  ;;  %704 = vmatpush.msra.mxu2 %v637_v12  ;;  %v620_v20 = vld [vmem:[%s1403_s15 + $0xd8] sm:$0xff]  ;;  %v651_v23 = vld [vmem:[%s1403_s15 + $0x1d0] sm:$0xff]  ;;  %v634_v25 = vld [vmem:[%s1403_s15 + $0x148] sm:$0xff] }
  0x7c   : > { %683 = vmatpush.msra.mxu1 %v622_v14  ;;  %664 = vmatpush.msra.mxu0 %v605_v13  ;;  %v619_v24 = vld [vmem:[%s1403_s15 + $0xd0] sm:$0xff]  ;;  %v602_v26 = vld [vmem:[%s1403_s15 + $0x48] sm:$0xff]  ;;  %v633_v29 = vld [vmem:[%s1403_s15 + $0x140] sm:$0xff] }
  0x7d   : > { %724 = vmatpush.msra.mxu3 %v653_v15  ;;  %705 = vmatpush.msra.mxu2 %v636_v17  ;;  %v650_v27 = vld [vmem:[%s1403_s15 + $0x1c8] sm:$0xff]  ;;  %v601_v30 = vld [vmem:[%s1403_s15 + $0x40] sm:$0xff]  ;;  %v632_v33 = vld [vmem:[%s1403_s15 + $0x138] sm:$0xff] }
  0x7e   : > { %684 = vmatpush.msra.mxu1 %v621_v16  ;;  %665 = vmatpush.msra.mxu0 %v604_v18  ;;  %v618_v28 = vld [vmem:[%s1403_s15 + $0xc8] sm:$0xff]  ;;  %v649_v31 = vld [vmem:[%s1403_s15 + $0x1c0] sm:$0xff]  ;;  %v600_v34 = vld [vmem:[%s1403_s15 + $0x38] sm:$0xff] }
  0x7f   : > { %725 = vmatpush.msra.mxu3 %v652_v19  ;;  %706 = vmatpush.msra.mxu2 %v635_v21  ;;  %v617_v32 = vld [vmem:[%s1403_s15 + $0xc0] sm:$0xff]  ;;  %v648_v35 = vld [vmem:[%s1403_s15 + $0x1b8] sm:$0xff]  ;;  %v631_v37 = vld [vmem:[%s1403_s15 + $0x130] sm:$0xff] }
  0x80   : > { %685 = vmatpush.msra.mxu1 %v620_v20  ;;  %666 = vmatpush.msra.mxu0 %v603_v22  ;;  %v616_v36 = vld [vmem:[%s1403_s15 + $0xb8] sm:$0xff]  ;;  %v599_v38 = vld [vmem:[%s1403_s15 + $0x30] sm:$0xff]  ;;  %v630_v41 = vld [vmem:[%s1403_s15 + $0x128] sm:$0xff] }
  0x81   : > { %726 = vmatpush.msra.mxu3 %v651_v23  ;;  %707 = vmatpush.msra.mxu2 %v634_v25  ;;  %v647_v39 = vld [vmem:[%s1403_s15 + $0x1b0] sm:$0xff]  ;;  %v598_v42 = vld [vmem:[%s1403_s15 + $0x28] sm:$0xff]  ;;  %v629_v45 = vld [vmem:[%s1403_s15 + $0x120] sm:$0xff] }
  0x82   : > { %686 = vmatpush.msra.mxu1 %v619_v24  ;;  %667 = vmatpush.msra.mxu0 %v602_v26  ;;  %v615_v40 = vld [vmem:[%s1403_s15 + $0xb0] sm:$0xff]  ;;  %v646_v43 = vld [vmem:[%s1403_s15 + $0x1a8] sm:$0xff]  ;;  %v597_v46 = vld [vmem:[%s1403_s15 + $0x20] sm:$0xff] }
  0x83   : > { %727 = vmatpush.msra.mxu3 %v650_v27  ;;  %708 = vmatpush.msra.mxu2 %v633_v29  ;;  %v614_v44 = vld [vmem:[%s1403_s15 + $0xa8] sm:$0xff]  ;;  %v645_v47 = vld [vmem:[%s1403_s15 + $0x1a0] sm:$0xff]  ;;  %v628_v49 = vld [vmem:[%s1403_s15 + $0x118] sm:$0xff] }
  0x84   : > { %687 = vmatpush.msra.mxu1 %v618_v28  ;;  %668 = vmatpush.msra.mxu0 %v601_v30  ;;  %v613_v48 = vld [vmem:[%s1403_s15 + $0xa0] sm:$0xff]  ;;  %v596_v50 = vld [vmem:[%s1403_s15 + $0x18] sm:$0xff]  ;;  %v627_v53 = vld [vmem:[%s1403_s15 + $0x110] sm:$0xff] }
  0x85   : > { %728 = vmatpush.msra.mxu3 %v649_v31  ;;  %709 = vmatpush.msra.mxu2 %v632_v33  ;;  %v644_v51 = vld [vmem:[%s1403_s15 + $0x198] sm:$0xff]  ;;  %v595_v54 = vld [vmem:[%s1403_s15 + $0x10] sm:$0xff]  ;;  %v626_v57 = vld [vmem:[%s1403_s15 + $0x108] sm:$0xff] }
  0x86   : > { %688 = vmatpush.msra.mxu1 %v617_v32  ;;  %669 = vmatpush.msra.mxu0 %v600_v34  ;;  %v612_v52 = vld [vmem:[%s1403_s15 + $0x98] sm:$0xff]  ;;  %v643_v55 = vld [vmem:[%s1403_s15 + $0x190] sm:$0xff]  ;;  %v594_v58 = vld [vmem:[%s1403_s15 + $0x8] sm:$0xff] }
  0x87   : > { %729 = vmatpush.msra.mxu3 %v648_v35  ;;  %710 = vmatpush.msra.mxu2 %v631_v37  ;;  %v611_v56 = vld [vmem:[%s1403_s15 + $0x90] sm:$0xff]  ;;  %v642_v59 = vld [vmem:[%s1403_s15 + $0x188] sm:$0xff]  ;;  %v625_v61 = vld [vmem:[%s1403_s15 + $0x100] sm:$0xff] }
  0x88   : > { %689 = vmatpush.msra.mxu1 %v616_v36  ;;  %670 = vmatpush.msra.mxu0 %v599_v38  ;;  %v610_v60 = vld [vmem:[%s1403_s15 + $0x88] sm:$0xff]  ;;  %v593_v62 = vld [vmem:[%s1403_s15] sm:$0xff]  ;;  %v592_v2 = vld [vmem:[%s1383_s28 + $0x18] sm:$0xff] }
  0x89   : > { %730 = vmatpush.msra.mxu3 %v647_v39  ;;  %711 = vmatpush.msra.mxu2 %v630_v41  ;;  %v591_v63 = vld [vmem:[%s1383_s28 + $0x10] sm:$0xff]  ;;  %v641_v0 = vld [vmem:[%s1403_s15 + $0x180] sm:$0xff]  ;;  %v1091_v5 = vld [vmem:[%s568_s18] ss:$0 sm:$0xff] }
  0x8a   : > { %690 = vmatpush.msra.mxu1 %v615_v40  ;;  %671 = vmatpush.msra.mxu0 %v598_v42  ;;  %v589_v1 = vld [vmem:[%s1383_s28] sm:$0xff]  ;;  %v590_v4 = vld [vmem:[%s1383_s28 + $0x8] sm:$0xff]  ;;  %s790_s28 = smul.f32 (!%p1024_p13), 8.0, %s1485_s16 }
  0x8b   : > { %731 = vmatpush.msra.mxu3 %v646_v43  ;;  %712 = vmatpush.msra.mxu2 %v629_v45  ;;  %v609_v3 = vld [vmem:[%s1403_s15 + $0x80] sm:$0xff] }
  0x8c   : > { %691 = vmatpush.msra.mxu1 %v614_v44  ;;  %672 = vmatpush.msra.mxu0 %v597_v46 }
  0x8d   : > { %732 = vmatpush.msra.mxu3 %v645_v47  ;;  %713 = vmatpush.msra.mxu2 %v628_v49 }
  0x8e   : > { %692 = vmatpush.msra.mxu1 %v613_v48  ;;  %673 = vmatpush.msra.mxu0 %v596_v50 }
  0x8f   : > { %733 = vmatpush.msra.mxu3 %v644_v51  ;;  %714 = vmatpush.msra.mxu2 %v627_v53 }
  0x90   : > { %693 = vmatpush.msra.mxu1 %v612_v52  ;;  %674 = vmatpush.msra.mxu0 %v595_v54 }
  0x91   : > { %734 = vmatpush.msra.mxu3 %v643_v55  ;;  %715 = vmatpush.msra.mxu2 %v626_v57 }
  0x92   : > { %694 = vmatpush.msra.mxu1 %v611_v56  ;;  %675 = vmatpush.msra.mxu0 %v594_v58 }
  0x93   : > { %735 = vmatpush.msra.mxu3 %v642_v59  ;;  %716 = vmatpush.msra.mxu2 %v625_v61 }
  0x94   : > { %695 = vmatpush.msra.mxu1 %v610_v60  ;;  %676 = vmatpush.msra.mxu0 %v593_v62 }
  0x95   : > { %717 = vmatmul.f32.vlgmr.msra.gmra.mxu2 %v591_v63  ;;  %736 = vmatpush.msra.mxu3 %v641_v0 }
  0x96   : > { %677 = vmatmul.f32.vlgmr.msra.gmra.mxu0 %v589_v1  ;;  %737 = vmatmul.f32.vlgmr.msra.gmra.mxu3 %v592_v2 }
  0x97   : > { %696 = vmatpush.msra.mxu1 %v609_v3 }
  0x98   : > { %697 = vmatmul.f32.vlgmr.msra.gmra.mxu1 %v590_v4 }
 0x113   : > { %v678_v6 = vpop.f32.mrf.mxu0 }
 0x114   : > { %v679_v7 = vadd.f32 %v1091_v5, %v678_v6 }
 0x115   : > { %v698_v8 = vpop.f32.mrf.mxu1 }
 0x116   : > { %v699_v9 = vadd.f32 %v698_v8, %v679_v7 }
 0x118   : > { %v718_v10 = vpop.f32.mrf.mxu2 }
 0x119   : > { %v719_v11 = vadd.f32 %v718_v10, %v699_v9  ;;  %v738_v12 = vpop.f32.mrf.mxu3  ;;  %745 = sbr.rel (%p1024_p13) target bundleno = 363 (0x16b), region = 78 }
 0x11b   : > { %v1479_v13 = vadd.f32 %v738_v12, %v719_v11 }
 0x11d   : > { %741 = vst [vmem:[%s1401_s17] sm:$0xff] %v1479_v13 }
 0x11e   : > { %v766_v14 = vstv %s765_s27  ;;  %v746_v18 = vrot.slane %v1479_v13, 4  ;;  %v763_v38 = vld [vmem:[#allocation2] sm:$0x1]  ;;  %v787_v42 = vld [vmem:[#allocation3] sm:$0x1] }
 0x11f   : > { %1092 = vrcp.f32 %v766_v14  ;;  %v778_v17 = vand.u32 2147483648, %v766_v14  ;;  %vm772_vm0 = vweird.f32 %v766_v14  ;;  %v776_v20 = vand.u32 2147483647, %v766_v14 }
 0x120   : > { %v747_v24 = vadd.f32 %v746_v18, %v1479_v13 }
 0x121   : > { %v779_v22 = vor.u32 1.1754944e-38, %v778_v17  ;;  %vm777_vm3 = vcmp.eq.f32.partialorder %v776_v20, 8.507059e+37 }
 0x122   : > { %v748_v27 = vrot.slane %v747_v24, 2 }
 0x124   : > { %v749_v28 = vadd.f32 %v748_v27, %v747_v24 }
 0x125   : > { %v1093_v15 = vpop.eup %1092 }
 0x126   : > { %v768_v16 = vmul.f32 %v1093_v15, %v766_v14  ;;  %vm773_vm1 = vweird.f32 %v1093_v15  ;;  %v750_v29 = vrot.slane %v749_v28, 1 }
 0x127   : > { %vm774_vm2 = vmor %vm772_vm0, %vm773_vm1 }
 0x128   : > { %v769_v19 = vsub.f32 1.0, %v768_v16  ;;  %v751_v30 = vadd.f32 %v750_v29, %v749_v28 }
 0x12a   : > { %v770_v21 = vmul.f32 %v1093_v15, %v769_v19  ;;  %v752_v31 = vmul.f32 0.125, %v751_v30 }
 0x12c   : > { %v771_v23 = vadd.f32 %v1093_v15, %v770_v21  ;;  %v753_v32 = vsub.f32 %v1479_v13, %v752_v31  ;;  %v764_v40 = vsub.f32 %v752_v31, %v763_v38 }
 0x12e   : > { %v775_v25 = vsel %vm774_vm2, %v1093_v15, %v771_v23  ;;  %v754_v33 = vmul.f32 %v753_v32, %v753_v32  ;;  %v789_v43 = vmul.f32 %v764_v40, %v764_v40 }
 0x12f   : > { %v780_v26 = vsel %vm777_vm3, %v779_v22, %v775_v25 }
 0x130   : > { %1031 = vpush %v780_v26  ;;  %v755_v34 = vrot.slane %v754_v33, 4 }
 0x132   : > { %v756_v35 = vadd.f32 %v755_v34, %v754_v33 }
 0x134   : > { %v757_v36 = vrot.slane %v756_v35, 2 }
 0x136   : > { %v758_v37 = vadd.f32 %v757_v36, %v756_v35 }
 0x138   : > { %v759_v39 = vrot.slane %v758_v37, 1 }
 0x13a   : > { %v760_v41 = vadd.f32 %v759_v39, %v758_v37 }
 0x13c   : > { %v788_v45 = vadd.f32 %v787_v42, %v760_v41 }
 0x161   : > { %s1032_s30 = spop %1031 }
 0x162   : > { %s782_s6 = smul.f32 8.0, %s1032_s30 }
 0x163   : > { %s807_s18 = smul.f32 %s1032_s30, %s790_s28 }
 0x164   : > { %v783_v44 = vstv %s782_s6 }
 0x165   : > { %v784_v46 = vmul.f32 %v783_v44, %v764_v40  ;;  %v808_v47 = vstv %s807_s18 }
 0x166   : > { %v809_v48 = vmul.f32 %v808_v47, %v789_v43 }
 0x167   : > { %v785_v49 = vadd.f32 %v784_v46, %v763_v38 }
 0x168   : > { %v810_v50 = vadd.f32 %v809_v48, %v788_v45 }
 0x169   : > { %786 = vst [vmem:[#allocation2] sm:$0x1] %v785_v49 }
 0x16a   : > { %811 = vst [vmem:[#allocation3] sm:$0x1] %v810_v50 }
 0x16b PF: > { %p1026_p0 = scmp.ne.s32.totalorder %s1132_s20, 2 }
 0x16d   : > { %815 = sbr.rel (%p1026_p0) target bundleno = 425 (0x1a9), region = 82 }
 0x172   : > { %v816_v51 = vlaneseq  ;;  %v1151_v53 = vmov 0.0   ;;  %v838_v62 = vld [vmem:[#allocation2] sm:$0x1] }
 0x174   : > { %v817_v52 = vshrl.u32 %v816_v51, 7 }
 0x176   : > { %vm818_vm4 = vcmp.lt.s32.totalorder %v817_v52, 4 }
 0x177   : > { %v1027_v54 = vsel %vm818_vm4, 1.0, %v1151_v53 }
 0x178   : > { %v821_v55 = vmul.f32 %v1027_v54, %v1479_v13 }
 0x17a   : > { %v822_v56 = vrot.slane %v821_v55, 4 }
 0x17c   : > { %v823_v57 = vadd.f32 %v822_v56, %v821_v55 }
 0x17e   : > { %v824_v58 = vrot.slane %v823_v57, 2 }
 0x180   : > { %v825_v59 = vadd.f32 %v824_v58, %v823_v57 }
 0x182   : > { %v826_v60 = vrot.slane %v825_v59, 1 }
 0x184   : > { %v827_v61 = vadd.f32 %v826_v60, %v825_v59 }
 0x186   : > { %v828_v63 = vmul.f32 0.25, %v827_v61 }
 0x188   : > { %v829_v0 = vsub.f32 %v1479_v13, %v828_v63  ;;  %v839_v1 = vsub.f32 %v828_v63, %v838_v62  ;;  %v843_v13 = vld [vmem:[#allocation3] sm:$0x1] }
 0x18a   : > { %v830_v2 = vmul.f32 %v1027_v54, %v829_v0  ;;  %v840_v3 = vmul.f32 0.2, %v839_v1  ;;  %v845_v10 = vmul.f32 %v839_v1, %v839_v1 }
 0x18c   : > { %v831_v4 = vmul.f32 %v830_v2, %v830_v2  ;;  %v841_v5 = vadd.f32 %v840_v3, %v838_v62  ;;  %v846_v15 = vmul.f32 3.2, %v845_v10 }
 0x18e   : > { %v832_v6 = vrot.slane %v831_v4, 4  ;;  %842 = vst [vmem:[#allocation2] sm:$0x1] %v841_v5 }
 0x190   : > { %v833_v7 = vadd.f32 %v832_v6, %v831_v4 }
 0x192   : > { %v834_v8 = vrot.slane %v833_v7, 2 }
 0x194   : > { %v835_v9 = vadd.f32 %v834_v8, %v833_v7 }
 0x195   : > { %v849_v11 = vld [vmem:[#allocation2] sm:$0x1] }
 0x196   : > { %v836_v12 = vrot.slane %v835_v9, 1  ;;  %850 = vst [vmem:[%s579_s10] sm:$0x1] %v849_v11 }
 0x198   : > { %v837_v14 = vadd.f32 %v836_v12, %v835_v9 }
 0x19a   : > { %v844_v16 = vadd.f32 %v843_v13, %v837_v14 }
 0x19c   : > { %v847_v17 = vadd.f32 %v846_v15, %v844_v16 }
 0x19e   : > { %848 = vst [vmem:[#allocation3] sm:$0x1] %v847_v17 }
 0x1a5   : > { %v851_v18 = vld [vmem:[#allocation3] sm:$0x1] }
 0x1a6   : > { %v852_v19 = vmul.f32 0.05, %v851_v18 }
 0x1a8   : > { %853 = vst [vmem:[%s582_s26] sm:$0x1] %v852_v19 }
 0x1a9 PF: > { %s16_s24 = sadd.s32 1, %s1148_s24   ;;  %s1537_s10 = sld [smem:[#allocation5_spill]] }
 0x1aa   : > { %p13_p1 = scmp.ge.s32.totalorder %s16_s24, 8   ;;  %s1538_s11 = sld [smem:[#allocation6_spill]] }
 0x1ab   : > { %s1539_s18 = smov %s1128_s19  ;;  %s1540_s19 = smov %s1231_s29 }
 0x1ac   : > { %s1541_s20 = smov %s1140_s22  ;;  %s1542_s21 = smov %s1144_s23 }
 0x1ad   :  { %15 = sbr.rel (!%p13_p1) target bundleno = 6 (0x6), region = 147 }
 0x1af   : > { %s1543_s22 = smov %s1537_s10 }
 0x1b0   : > { %s1544_s23 = smov %s1538_s11 }

// kernel: protein_multilabel_forward.7
= control target key start
LH: loop header
LB: loop body
LE: loop exit
PB: predicated region body
PF: predicated region fallthrough
CT: control target
= control target key end

     0   :  { %8 = vsyncpa [#allocation3], 0  ;;  %s487_s0 = inlined_call_operand.vmem [shape: f32[24,256], index: 0, kind: input, shape index: {}]   ;;  %s488_s1 = inlined_call_operand.vmem [shape: f32[1,256], index: 1, kind: input, shape index: {}]   ;;  %s489_s2 = inlined_call_operand.vmem [shape: f32[1,256], index: 2, kind: input, shape index: {}]   ;;  %s490_s3 = inlined_call_operand.hbm [shape: f32[24,256], index: 3, kind: output, shape index: {}]  }
   0x1   :  { %10 = vsyncpa [#allocation3 + $0x1], 0  ;;  %s402_s12 = smov 0   ;;  %s404_s13 = smov 0  }
   0x2   :  { %s406_s14 = smov 0   ;;  %s408_s15 = smov 0  }
   0x3 LB: > { %s264_s16 = sadd.s32 4294967295, %s380_s15   ;;  %s265_s17 = sadd.s32 4294967294, %s380_s15   ;;  %s380_s15 = sphi %s408_s15, %s496_s15   ;;  %s376_s14 = sphi %s406_s14, %s495_s14   ;;  %s372_s13 = sphi %s404_s13, %s494_s13   ;;  %s368_s12 = sphi %s402_s12, %s493_s12  }
   0x4   : > { %s425_s18 = sadd.s32 1, %s380_s15   ;;  %s91_s19 = sadd.s32 1, %s376_s14 }
   0x5   : > { %s88_s20 = ssub.s32 %s380_s15, %s425_s18  ;;  %p101_p0 = scmp.ne.s32.totalorder %s376_s14, %s372_s13 }
   0x6   : > { %p89_p1 = scmp.eq.s32.totalorder %s88_s20, 0  ;;  %p102_p2 = scmp.eq.s32.totalorder %s264_s16, 2 }
   0x7   : > { %p107_p3 = scmp.ne.s32.totalorder %s372_s13, %s368_s12  ;;  %p108_p4 = scmp.eq.s32.totalorder %s265_s17, 2 }
   0x8   : > { %s435_s21 = scalar_select %p89_p1, %s376_s14, %s91_s19  }
   0x9   : > { %p437_p5 = por %p102_p2, %p101_p0  ;;  %p441_p6 = por %p108_p4, %p107_p3 }
   0xa   : > { %p268_p7 = scmp.ge.s32.totalorder %s380_s15, 1  ;;  %p140_p8 = scmp.lt.s32.totalorder %s380_s15, 4 }
   0xc   : > { %p141_p9 = pnand %p268_p7, %p140_p8 }
   0xd   : > { %s161_s24 = sand.u32 (!%p141_p9), 1, %s372_s13   ;;  %p164_p10 = scmp.lt.s32.totalorder (!%p141_p9), %s264_s16, 2 }
   0xe   : > { %144 = sbr.rel (%p141_p9) target bundleno = 31 (0x1f), region = 32  ;;  %s269_s25 = sshll.u32 (!%p141_p9), %s161_s24, 4 }
   0xf   : > { %s278_s28 = sshll.u32 (!%p141_p9), %s264_s16, 4  ;;  %s163_s11 = scalar_lea.vmem (!%p141_p9), [#allocation2], %s269_s25 }
  0x10   : > { %s201_s7 = scalar_lea.hbm (!%p141_p9), %s490_s3, %s278_s28  ;;  %s203_s17 = sshll.u32 (!%p141_p9), %s163_s11, 4  ;;  %s204_s17 = int_to_ptr.vmem [resolvable:$true] %s203_s17 }
  0x11   : > { %s205_s19 = sshll.u32 (!%p141_p9), %s201_s7, 4  ;;  %s338_s25 = scalar_lea.hbm (!%p141_p9), %s490_s3, 48  ;;  %s206_s19 = int_to_ptr.hbm [resolvable:$true] %s205_s19 }
  0x12   : > { %s332_s20 = sshra.s32 (!%p141_p9), %s206_s19, 4  ;;  %s333_s20 = int_to_ptr.hbm [resolvable:$true] %s332_s20 }
  0x13   : > { %v171_v0 = vld [vmem:[%s488_s1] sm:$0x3]  ;;  %s498_s16 = smov (!%p164_p10, %s264_s16), 2  ;;  %s334_s26 = scalar_lea.hbm %s333_s20, 16 }
  0x14   : > { %v179_v1 = vld [vmem:[%s489_s2] sm:$0x3]  ;;  %v173_v2 = vperm.slane %v171_v0, 0  ;;  %v174_v3 = vperm.slane %v171_v0, 1  ;;  %s277_s4 = sshll.u32 %s498_s16, 4  ;;  %s190_s16 = scalar_lea.sflag [#allocation3], %s161_s24 }
  0x15   : > { %s168_s10 = scalar_lea.vmem %s487_s0, %s277_s4  ;;  %v181_v4 = vperm.slane %v179_v1, 0  ;;  %v182_v5 = vperm.slane %v179_v1, 1  ;;  %p335_p11 = scmp.ne.s32.totalorder %s333_s20, %s334_s26 }
  0x16   : > { %v169_v6 = vld [vmem:[%s168_s10] sm:$0xff]  ;;  %v170_v7 = vld [vmem:[%s168_s10 + $0x8] sm:$0xff]  ;;  %p339_p0 = scmp.lt.s32.totalorder %s333_s20, %s490_s3  ;;  %p340_p1 = scmp.lt.s32.totalorder %s338_s25, %s334_s26 }
  0x17   : > { %v177_v8 = vmul.f32 %v173_v2, %v169_v6  ;;  %v178_v9 = vmul.f32 %v174_v3, %v170_v7  ;;  %p336_p12 = pnand %p335_p11, %p437_p5 }
  0x18   : > { %p341_p2 = por %p340_p1, %p339_p0 }
  0x19   : > { %v185_v10 = vadd.f32 %v181_v4, %v177_v8  ;;  %v186_v11 = vadd.f32 %v182_v5, %v178_v9  ;;  %p337_p13 = pneg %p336_p12 }
  0x1b   : > { %187 = vst [vmem:[%s163_s11] sm:$0xff] %v185_v10  ;;  %p342_p3 = pnand %p341_p2, %p337_p13 }
  0x1c   : > { %188 = vst [vmem:[%s163_s11 + $0x8] sm:$0xff] %v186_v11 }
  0x1d   : > { %345 = shalt.err (!%p342_p3)
}
  0x1e   : > { %279 = dma.vmem_to_hbm [thread:$0]  (%p437_p5), %s204_s17, 256, %s206_s19, %s190_s16  }
  0x1f PF: > { %p285_p4 = scmp.ge.s32.totalorder %s380_s15, 2  ;;  %s217_s24 = sand.u32 1, %s368_s12  }
  0x20   : > { %s218_s4 = scalar_lea.sflag [#allocation3], %s217_s24 }
  0x21   : > { %p282_p7 = pnand %p285_p4, %p441_p6 }
  0x23   : > { %p283_p8 = pneg %p282_p7 }
  0x25   : > { %363 = dma.done.wait (%p283_p8), %s218_s4, 256  }
  0x26   : > { %365 = vsyncadd (%p283_p8), %s218_s4, 4294967040  ;;  %p13_p9 = scmp.ge.s32.totalorder %s425_s18, 5   ;;  %s493_s12 = smov %s372_s13 }
  0x27   : > { %s494_s13 = smov %s376_s14  ;;  %s495_s14 = smov %s435_s21 }
  0x28   : > { %s496_s15 = smov %s425_s18  ;;  %15 = sbr.rel (!%p13_p9) target bundleno = 3 (0x3), region = 67 }
  0x2d   :  { %224 = vsyncpa [#allocation3], 1 }
  0x2e   :  { %226 = vsyncpa [#allocation3 + $0x1], 1 }

</bundles_post_ra>
